<compile_context>
chip_gen: v7x
topology: tpu7x:2x2x1
jax: 0.10.0
libtpu: 0.0.40
codegen_flags: <defaults>
</compile_context>

<pallas_src>
import jax
import jax.numpy as jnp
from jax.experimental import pallas as pl
from jax.experimental.pallas import tpu as pltpu

# ---------------- model hyperparameters (small config) ----------------
D_MODEL = 32
NHEAD = 4
HEAD_DIM = D_MODEL // NHEAD          # 8
NUM_LAYERS = 2
DIM_FF = 64
MAX_SEQ = 8
NUM_CLASSES = 3
LN_EPS = 1e-5

ROUND_V, CARD_V, ACTION_V = 4, 16, 8
VOCAB_TOTAL = ROUND_V + CARD_V + ACTION_V     # 28

BATCH = 2
SEQ = 8
M_ROWS = BATCH * SEQ                          # 16

# ---------------- packed-weight slab layout (row offsets) ----------------
# pk32: every parameter whose lane (last) dim is D_MODEL=32, stacked by rows.
# All section starts are multiples of 8 so in-kernel slices stay tile-aligned.
POS_OFF = 0                                   # (MAX_SEQ, 32) positional embedding
CLSW_OFF = POS_OFF + MAX_SEQ                  # (32, 32) classifier weight (cols >= 3 are 0)
CLSB_OFF = CLSW_OFF + D_MODEL                 # 1 row classifier bias (section padded to 8)
LAYER0_OFF = CLSB_OFF + 8                     # per-layer blocks start here

WQ_OFF, WK_OFF, WV_OFF, WO_OFF = 0, 32, 64, 96
W2_OFF = 128                                  # (DIM_FF, 32) linear2 weight
VEC_OFF = 192                                 # 16 rows of per-layer bias / LN vectors
VEC_ROWS = 16
LAYER_ROWS = VEC_OFF + VEC_ROWS               # 208
R32 = LAYER0_OFF + NUM_LAYERS * LAYER_ROWS    # 464

(VEC_BQ, VEC_BK, VEC_BV, VEC_BO, VEC_B2,
 VEC_LN1G, VEC_LN1B, VEC_LN2G, VEC_LN2B) = range(9)

# pk64: parameters with lane dim DIM_FF=64 (linear1 weight + bias), per layer.
LAYER64_ROWS = D_MODEL + 8                    # 40
R64 = NUM_LAYERS * LAYER64_ROWS               # 80


# ------------------------------ fused kernel ---------------------------------
def _layer_norm(x, gamma, beta):
    mu = jnp.mean(x, axis=-1, keepdims=True)
    var = jnp.mean((x - mu) ** 2, axis=-1, keepdims=True)
    return (x - mu) * jax.lax.rsqrt(var + LN_EPS) * gamma + beta


def fused_forward_kernel(tok_ref, typ_ref, emb_ref, pk32_ref, pk64_ref,
                         out_ref, x_scratch):
    """Embedding gather + pos add + both encoder layers + classifier."""
    # ---- fused embedding gather (token/type ids scalar-prefetched to SMEM) ----
    for i in range(M_ROWS):                               # static 16-row loop
        t = typ_ref[i]
        off = jnp.where(t == 0, 0, jnp.where(t == 1, ROUND_V, ROUND_V + CARD_V))
        x_scratch[pl.ds(i, 1), :] = emb_ref[tok_ref[i] + off]     # (1, D) row

    pos = pk32_ref[POS_OFF:POS_OFF + SEQ, :]              # (S, D)
    xf = (x_scratch[...].reshape(BATCH, SEQ, D_MODEL) + pos).reshape(M_ROWS, D_MODEL)

    for li in range(NUM_LAYERS):                          # static layer loop
        base = LAYER0_OFF + li * LAYER_ROWS
        wq = pk32_ref[base + WQ_OFF:base + WQ_OFF + D_MODEL, :]   # scale pre-folded
        wk = pk32_ref[base + WK_OFF:base + WK_OFF + D_MODEL, :]
        wv = pk32_ref[base + WV_OFF:base + WV_OFF + D_MODEL, :]
        wo = pk32_ref[base + WO_OFF:base + WO_OFF + D_MODEL, :]
        w2 = pk32_ref[base + W2_OFF:base + W2_OFF + DIM_FF, :]
        vec = pk32_ref[base + VEC_OFF:base + VEC_OFF + VEC_ROWS, :]
        b64 = li * LAYER64_ROWS
        w1 = pk64_ref[b64:b64 + D_MODEL, :]
        b1 = pk64_ref[b64 + D_MODEL, :]

        # --- self-attention: 3 full-width projections (one MXU push each) ---
        q = jnp.dot(xf, wq, preferred_element_type=jnp.float32) + vec[VEC_BQ]
        k = jnp.dot(xf, wk, preferred_element_type=jnp.float32) + vec[VEC_BK]
        v = jnp.dot(xf, wv, preferred_element_type=jnp.float32) + vec[VEC_BV]

        def to_heads(m):
            # (B*S, D) -> (NHEAD*B, S, HEAD_DIM); group g = h*B + b
            return jnp.concatenate(
                [m[:, h * HEAD_DIM:(h + 1) * HEAD_DIM].reshape(BATCH, SEQ, HEAD_DIM)
                 for h in range(NHEAD)], axis=0)

        qh, kh, vh = to_heads(q), to_heads(k), to_heads(v)

        # two head-batched dot_generals instead of a per-head/per-batch loop
        s = jnp.einsum('gqd,gkd->gqk', qh, kh, preferred_element_type=jnp.float32)
        s = s - jnp.max(s, axis=-1, keepdims=True)
        p = jnp.exp(s)
        p = p * pl.reciprocal(jnp.sum(p, axis=-1, keepdims=True), approx=True)
        ctx = jnp.einsum('gqk,gkd->gqd', p, vh, preferred_element_type=jnp.float32)

        # out-projection accumulated per head via sublane-aligned row slices of
        # wo: no lane-axis concatenation of head contexts.
        attn = jnp.zeros((M_ROWS, D_MODEL), jnp.float32)
        for h in range(NHEAD):
            ctx_h = ctx[h * BATCH:(h + 1) * BATCH].reshape(M_ROWS, HEAD_DIM)
            attn = attn + jnp.dot(ctx_h, wo[h * HEAD_DIM:(h + 1) * HEAD_DIM, :],
                                  preferred_element_type=jnp.float32)
        attn = attn + vec[VEC_BO]

        x1 = _layer_norm(xf + attn, vec[VEC_LN1G], vec[VEC_LN1B])

        # --- feedforward (relu) ---
        h1 = jnp.maximum(jnp.dot(x1, w1, preferred_element_type=jnp.float32) + b1, 0.0)
        ff = jnp.dot(h1, w2, preferred_element_type=jnp.float32) + vec[VEC_B2]

        xf = _layer_norm(x1 + ff, vec[VEC_LN2G], vec[VEC_LN2B])

    # --- classifier on the last sequence position (output padded to 32 lanes) ---
    x_last = xf.reshape(BATCH, SEQ, D_MODEL)[:, SEQ - 1, :]        # (B, D)
    cls_w = pk32_ref[CLSW_OFF:CLSW_OFF + D_MODEL, :]               # (D, 32), cols>=3 zero
    cls_b = pk32_ref[CLSB_OFF, :]                                  # (32,)
    out_ref[...] = jnp.dot(x_last, cls_w, preferred_element_type=jnp.float32) + cls_b


# ------------------------------ wrapper / glue --------------------------------
@jax.jit
def poker_transformer_forward(params, tokens, types):
    """tokens, types: (B, S) int32. Returns logits (B, NUM_CLASSES)."""
    tok = tokens.reshape(-1).astype(jnp.int32)
    typ = types.reshape(-1).astype(jnp.int32)

    grid_spec = pltpu.PrefetchScalarGridSpec(
        num_scalar_prefetch=2,                 # tok, typ -> SMEM before the step
        grid=(1,),
        in_specs=[
            pl.BlockSpec((VOCAB_TOTAL, 1, D_MODEL), lambda i, t0, t1: (0, 0, 0)),
            pl.BlockSpec((R32, D_MODEL), lambda i, t0, t1: (0, 0)),
            pl.BlockSpec((R64, DIM_FF), lambda i, t0, t1: (0, 0)),
        ],
        out_specs=pl.BlockSpec((BATCH, D_MODEL), lambda i, t0, t1: (0, 0)),
        scratch_shapes=[pltpu.VMEM((M_ROWS, D_MODEL), jnp.float32)],
    )
    out = pl.pallas_call(
        fused_forward_kernel,
        out_shape=jax.ShapeDtypeStruct((BATCH, D_MODEL), jnp.float32),
        grid_spec=grid_spec,
        compiler_params=pltpu.CompilerParams(dimension_semantics=("arbitrary",)),
    )(tok, typ, params["emb"], params["pk32"], params["pk64"])
    return out[:, :NUM_CLASSES]


# ------------------------------ parameter init --------------------------------
def init_params(key):
    keys = jax.random.split(key, 5 + NUM_LAYERS)
    f32 = jnp.float32

    round_e = 0.1 * jax.random.normal(keys[0], (ROUND_V, D_MODEL), f32)
    card_e = 0.1 * jax.random.normal(keys[1], (CARD_V, D_MODEL), f32)
    action_e = 0.1 * jax.random.normal(keys[2], (ACTION_V, D_MODEL), f32)
    # concatenated table, shaped so the token row is a leading (non-tiled) axis
    emb = jnp.concatenate([round_e, card_e, action_e], axis=0)
    emb = emb.reshape(VOCAB_TOTAL, 1, D_MODEL)

    pos = 0.1 * jax.random.normal(keys[3], (MAX_SEQ, D_MODEL), f32)
    cls_w = 0.1 * jax.random.normal(keys[4], (NUM_CLASSES, D_MODEL), f32)

    pk32 = jnp.zeros((R32, D_MODEL), f32)
    pk64 = jnp.zeros((R64, DIM_FF), f32)

    pk32 = pk32.at[POS_OFF:POS_OFF + MAX_SEQ].set(pos)
    pk32 = pk32.at[CLSW_OFF:CLSW_OFF + D_MODEL, :NUM_CLASSES].set(cls_w.T)
    # TODO(synk): classifier / out_proj / linear2 biases kept at zero instead of
    # PyTorch's default uniform init; load real weights for bit-parity.

    scale = 1.0 / (HEAD_DIM ** 0.5)
    for li in range(NUM_LAYERS):
        lk = jax.random.split(keys[5 + li], 6)
        # PyTorch shapes: in_proj (3D, D) rows [q; k; v], out_proj (D, D),
        # linear1 (F, D), linear2 (D, F)
        in_proj_w = 0.1 * jax.random.normal(lk[0], (3 * D_MODEL, D_MODEL), f32)
        in_proj_b = 0.01 * jax.random.normal(lk[1], (3 * D_MODEL,), f32)
        out_proj_w = 0.1 * jax.random.normal(lk[2], (D_MODEL, D_MODEL), f32)
        lin1_w = 0.1 * jax.random.normal(lk[3], (DIM_FF, D_MODEL), f32)
        lin1_b = 0.01 * jax.random.normal(lk[4], (DIM_FF,), f32)
        lin2_w = 0.1 * jax.random.normal(lk[5], (D_MODEL, DIM_FF), f32)

        base = LAYER0_OFF + li * LAYER_ROWS
        # q projection (and its bias) pre-scaled by 1/sqrt(head_dim)
        pk32 = pk32.at[base + WQ_OFF:base + WQ_OFF + D_MODEL].set(in_proj_w[:D_MODEL].T * scale)
        pk32 = pk32.at[base + WK_OFF:base + WK_OFF + D_MODEL].set(in_proj_w[D_MODEL:2 * D_MODEL].T)
        pk32 = pk32.at[base + WV_OFF:base + WV_OFF + D_MODEL].set(in_proj_w[2 * D_MODEL:].T)
        pk32 = pk32.at[base + WO_OFF:base + WO_OFF + D_MODEL].set(out_proj_w.T)
        pk32 = pk32.at[base + W2_OFF:base + W2_OFF + DIM_FF].set(lin2_w.T)

        vbase = base + VEC_OFF
        pk32 = pk32.at[vbase + VEC_BQ].set(in_proj_b[:D_MODEL] * scale)
        pk32 = pk32.at[vbase + VEC_BK].set(in_proj_b[D_MODEL:2 * D_MODEL])
        pk32 = pk32.at[vbase + VEC_BV].set(in_proj_b[2 * D_MODEL:])
        # VEC_BO / VEC_B2 rows stay zero; LayerNorm gammas = 1, betas = 0.
        pk32 = pk32.at[vbase + VEC_LN1G].set(jnp.ones((D_MODEL,), f32))
        pk32 = pk32.at[vbase + VEC_LN2G].set(jnp.ones((D_MODEL,), f32))

        b64 = li * LAYER64_ROWS
        pk64 = pk64.at[b64:b64 + D_MODEL].set(lin1_w.T)
        pk64 = pk64.at[b64 + D_MODEL].set(lin1_b)

    return {"emb": emb, "pk32": pk32, "pk64": pk64}


# ---------------------------------- main ---------------------------------------
if __name__ == "__main__":
    key = jax.random.PRNGKey(0)
    pkey, tkey, ykey = jax.random.split(key, 3)

    params = init_params(pkey)

    # tokens kept within the smallest vocab so every (token, type) pair is valid
    tokens = jax.random.randint(tkey, (BATCH, SEQ), 0, ROUND_V, dtype=jnp.int32)
    types = jax.random.randint(ykey, (BATCH, SEQ), 0, 3, dtype=jnp.int32)

    logits = poker_transformer_forward(params, tokens, types)
    logits = jax.block_until_ready(logits)
    assert logits.shape == (BATCH, NUM_CLASSES)
    assert bool(jnp.all(jnp.isfinite(logits)))
    print("KERNEL_OK")
</pallas_src>

<mosaic_0001>
module attributes {stable_mosaic.version = 11 : i64} {
  func.func @fused_forward_kernel(%arg0: i32, %arg1: memref<16xi32, #tpu.memory_space<smem>>, %arg2: memref<16xi32, #tpu.memory_space<smem>>, %arg3: memref<28x1x32xf32, #tpu.memory_space<vmem>>, %arg4: memref<464x32xf32, #tpu.memory_space<vmem>>, %arg5: memref<80x64xf32, #tpu.memory_space<vmem>>, %arg6: memref<2x32xf32, #tpu.memory_space<vmem>>, %arg7: memref<16x32xf32, #tpu.memory_space<vmem>>) attributes {dimension_semantics = [#tpu.dimension_semantics<arbitrary>], iteration_bounds = array<i64: 1>, scalar_prefetch = 2 : i64, scratch_operands = 1 : i64, tpu.core_type = #tpu.core_type<tc>, window_params = [{pipeline_mode = #tpu.pipeline_mode<synchronous>, transform_indices = @transform_0, window_bounds = array<i64: 28, 1, 32>}, {pipeline_mode = #tpu.pipeline_mode<synchronous>, transform_indices = @transform_1, window_bounds = array<i64: 464, 32>}, {pipeline_mode = #tpu.pipeline_mode<synchronous>, transform_indices = @transform_2, window_bounds = array<i64: 80, 64>}, {pipeline_mode = #tpu.pipeline_mode<synchronous>, transform_indices = @transform_3, window_bounds = array<i64: 2, 32>}]} {
    %c0 = arith.constant 0 : index
    %0 = memref.load %arg2[%c0] : memref<16xi32, #tpu.memory_space<smem>>
    %c0_i32 = arith.constant 0 : i32
    %1 = arith.cmpi eq, %0, %c0_i32 : i32
    %c1_i32 = arith.constant 1 : i32
    %2 = arith.cmpi eq, %0, %c1_i32 : i32
    %c4_i32 = arith.constant 4 : i32
    %c20_i32 = arith.constant 20 : i32
    %3 = arith.select %2, %c4_i32, %c20_i32 : i32
    %c0_i32_0 = arith.constant 0 : i32
    %4 = arith.select %1, %c0_i32_0, %3 : i32
    %c0_1 = arith.constant 0 : index
    %5 = memref.load %arg1[%c0_1] : memref<16xi32, #tpu.memory_space<smem>>
    %6 = arith.addi %5, %4 : i32
    %7 = arith.index_cast %6 : i32 to index
    %c0_2 = arith.constant 0 : index
    %c0_3 = arith.constant 0 : index
    %8 = vector.load %arg3[%7, %c0_2, %c0_3] : memref<28x1x32xf32, #tpu.memory_space<vmem>>, vector<1x1x32xf32>
    %9 = vector.shape_cast %8 : vector<1x1x32xf32> to vector<1x32xf32>
    %c0_4 = arith.constant 0 : index
    %c0_5 = arith.constant 0 : index
    %10 = vector.load %arg7[%c0_4, %c0_5] : memref<16x32xf32, #tpu.memory_space<vmem>>, vector<1x32xf32>
    tpu.vector_store %arg7[%c0_4, %c0_5], %9 {strides = array<i32>} : memref<16x32xf32, #tpu.memory_space<vmem>>, vector<1x32xf32>,
    %c1 = arith.constant 1 : index
    %11 = memref.load %arg2[%c1] : memref<16xi32, #tpu.memory_space<smem>>
    %c0_i32_6 = arith.constant 0 : i32
    %12 = arith.cmpi eq, %11, %c0_i32_6 : i32
    %c1_i32_7 = arith.constant 1 : i32
    %13 = arith.cmpi eq, %11, %c1_i32_7 : i32
    %c4_i32_8 = arith.constant 4 : i32
    %c20_i32_9 = arith.constant 20 : i32
    %14 = arith.select %13, %c4_i32_8, %c20_i32_9 : i32
    %c0_i32_10 = arith.constant 0 : i32
    %15 = arith.select %12, %c0_i32_10, %14 : i32
    %c1_11 = arith.constant 1 : index
    %16 = memref.load %arg1[%c1_11] : memref<16xi32, #tpu.memory_space<smem>>
    %17 = arith.addi %16, %15 : i32
    %18 = arith.index_cast %17 : i32 to index
    %c0_12 = arith.constant 0 : index
    %c0_13 = arith.constant 0 : index
    %19 = vector.load %arg3[%18, %c0_12, %c0_13] : memref<28x1x32xf32, #tpu.memory_space<vmem>>, vector<1x1x32xf32>
    %20 = vector.shape_cast %19 : vector<1x1x32xf32> to vector<1x32xf32>
    %c1_14 = arith.constant 1 : index
    %c0_15 = arith.constant 0 : index
    %21 = vector.load %arg7[%c1_14, %c0_15] : memref<16x32xf32, #tpu.memory_space<vmem>>, vector<1x32xf32>
    tpu.vector_store %arg7[%c1_14, %c0_15], %20 {strides = array<i32>} : memref<16x32xf32, #tpu.memory_space<vmem>>, vector<1x32xf32>,
    %c2 = arith.constant 2 : index
    %22 = memref.load %arg2[%c2] : memref<16xi32, #tpu.memory_space<smem>>
    %c0_i32_16 = arith.constant 0 : i32
    %23 = arith.cmpi eq, %22, %c0_i32_16 : i32
    %c1_i32_17 = arith.constant 1 : i32
    %24 = arith.cmpi eq, %22, %c1_i32_17 : i32
    %c4_i32_18 = arith.constant 4 : i32
    %c20_i32_19 = arith.constant 20 : i32
    %25 = arith.select %24, %c4_i32_18, %c20_i32_19 : i32
    %c0_i32_20 = arith.constant 0 : i32
    %26 = arith.select %23, %c0_i32_20, %25 : i32
    %c2_21 = arith.constant 2 : index
    %27 = memref.load %arg1[%c2_21] : memref<16xi32, #tpu.memory_space<smem>>
    %28 = arith.addi %27, %26 : i32
    %29 = arith.index_cast %28 : i32 to index
    %c0_22 = arith.constant 0 : index
    %c0_23 = arith.constant 0 : index
    %30 = vector.load %arg3[%29, %c0_22, %c0_23] : memref<28x1x32xf32, #tpu.memory_space<vmem>>, vector<1x1x32xf32>
    %31 = vector.shape_cast %30 : vector<1x1x32xf32> to vector<1x32xf32>
    %c2_24 = arith.constant 2 : index
    %c0_25 = arith.constant 0 : index
    %32 = vector.load %arg7[%c2_24, %c0_25] : memref<16x32xf32, #tpu.memory_space<vmem>>, vector<1x32xf32>
    tpu.vector_store %arg7[%c2_24, %c0_25], %31 {strides = array<i32>} : memref<16x32xf32, #tpu.memory_space<vmem>>, vector<1x32xf32>,
    %c3 = arith.constant 3 : index
    %33 = memref.load %arg2[%c3] : memref<16xi32, #tpu.memory_space<smem>>
    %c0_i32_26 = arith.constant 0 : i32
    %34 = arith.cmpi eq, %33, %c0_i32_26 : i32
    %c1_i32_27 = arith.constant 1 : i32
    %35 = arith.cmpi eq, %33, %c1_i32_27 : i32
    %c4_i32_28 = arith.constant 4 : i32
    %c20_i32_29 = arith.constant 20 : i32
    %36 = arith.select %35, %c4_i32_28, %c20_i32_29 : i32
    %c0_i32_30 = arith.constant 0 : i32
    %37 = arith.select %34, %c0_i32_30, %36 : i32
    %c3_31 = arith.constant 3 : index
    %38 = memref.load %arg1[%c3_31] : memref<16xi32, #tpu.memory_space<smem>>
    %39 = arith.addi %38, %37 : i32
    %40 = arith.index_cast %39 : i32 to index
    %c0_32 = arith.constant 0 : index
    %c0_33 = arith.constant 0 : index
    %41 = vector.load %arg3[%40, %c0_32, %c0_33] : memref<28x1x32xf32, #tpu.memory_space<vmem>>, vector<1x1x32xf32>
    %42 = vector.shape_cast %41 : vector<1x1x32xf32> to vector<1x32xf32>
    %c3_34 = arith.constant 3 : index
    %c0_35 = arith.constant 0 : index
    %43 = vector.load %arg7[%c3_34, %c0_35] : memref<16x32xf32, #tpu.memory_space<vmem>>, vector<1x32xf32>
    tpu.vector_store %arg7[%c3_34, %c0_35], %42 {strides = array<i32>} : memref<16x32xf32, #tpu.memory_space<vmem>>, vector<1x32xf32>,
    %c4 = arith.constant 4 : index
    %44 = memref.load %arg2[%c4] : memref<16xi32, #tpu.memory_space<smem>>
    %c0_i32_36 = arith.constant 0 : i32
    %45 = arith.cmpi eq, %44, %c0_i32_36 : i32
    %c1_i32_37 = arith.constant 1 : i32
    %46 = arith.cmpi eq, %44, %c1_i32_37 : i32
    %c4_i32_38 = arith.constant 4 : i32
    %c20_i32_39 = arith.constant 20 : i32
    %47 = arith.select %46, %c4_i32_38, %c20_i32_39 : i32
    %c0_i32_40 = arith.constant 0 : i32
    %48 = arith.select %45, %c0_i32_40, %47 : i32
    %c4_41 = arith.constant 4 : index
    %49 = memref.load %arg1[%c4_41] : memref<16xi32, #tpu.memory_space<smem>>
    %50 = arith.addi %49, %48 : i32
    %51 = arith.index_cast %50 : i32 to index
    %c0_42 = arith.constant 0 : index
    %c0_43 = arith.constant 0 : index
    %52 = vector.load %arg3[%51, %c0_42, %c0_43] : memref<28x1x32xf32, #tpu.memory_space<vmem>>, vector<1x1x32xf32>
    %53 = vector.shape_cast %52 : vector<1x1x32xf32> to vector<1x32xf32>
    %c4_44 = arith.constant 4 : index
    %c0_45 = arith.constant 0 : index
    %54 = vector.load %arg7[%c4_44, %c0_45] : memref<16x32xf32, #tpu.memory_space<vmem>>, vector<1x32xf32>
    tpu.vector_store %arg7[%c4_44, %c0_45], %53 {strides = array<i32>} : memref<16x32xf32, #tpu.memory_space<vmem>>, vector<1x32xf32>,
    %c5 = arith.constant 5 : index
    %55 = memref.load %arg2[%c5] : memref<16xi32, #tpu.memory_space<smem>>
    %c0_i32_46 = arith.constant 0 : i32
    %56 = arith.cmpi eq, %55, %c0_i32_46 : i32
    %c1_i32_47 = arith.constant 1 : i32
    %57 = arith.cmpi eq, %55, %c1_i32_47 : i32
    %c4_i32_48 = arith.constant 4 : i32
    %c20_i32_49 = arith.constant 20 : i32
    %58 = arith.select %57, %c4_i32_48, %c20_i32_49 : i32
    %c0_i32_50 = arith.constant 0 : i32
    %59 = arith.select %56, %c0_i32_50, %58 : i32
    %c5_51 = arith.constant 5 : index
    %60 = memref.load %arg1[%c5_51] : memref<16xi32, #tpu.memory_space<smem>>
    %61 = arith.addi %60, %59 : i32
    %62 = arith.index_cast %61 : i32 to index
    %c0_52 = arith.constant 0 : index
    %c0_53 = arith.constant 0 : index
    %63 = vector.load %arg3[%62, %c0_52, %c0_53] : memref<28x1x32xf32, #tpu.memory_space<vmem>>, vector<1x1x32xf32>
    %64 = vector.shape_cast %63 : vector<1x1x32xf32> to vector<1x32xf32>
    %c5_54 = arith.constant 5 : index
    %c0_55 = arith.constant 0 : index
    %65 = vector.load %arg7[%c5_54, %c0_55] : memref<16x32xf32, #tpu.memory_space<vmem>>, vector<1x32xf32>
    tpu.vector_store %arg7[%c5_54, %c0_55], %64 {strides = array<i32>} : memref<16x32xf32, #tpu.memory_space<vmem>>, vector<1x32xf32>,
    %c6 = arith.constant 6 : index
    %66 = memref.load %arg2[%c6] : memref<16xi32, #tpu.memory_space<smem>>
    %c0_i32_56 = arith.constant 0 : i32
    %67 = arith.cmpi eq, %66, %c0_i32_56 : i32
    %c1_i32_57 = arith.constant 1 : i32
    %68 = arith.cmpi eq, %66, %c1_i32_57 : i32
    %c4_i32_58 = arith.constant 4 : i32
    %c20_i32_59 = arith.constant 20 : i32
    %69 = arith.select %68, %c4_i32_58, %c20_i32_59 : i32
    %c0_i32_60 = arith.constant 0 : i32
    %70 = arith.select %67, %c0_i32_60, %69 : i32
    %c6_61 = arith.constant 6 : index
    %71 = memref.load %arg1[%c6_61] : memref<16xi32, #tpu.memory_space<smem>>
    %72 = arith.addi %71, %70 : i32
    %73 = arith.index_cast %72 : i32 to index
    %c0_62 = arith.constant 0 : index
    %c0_63 = arith.constant 0 : index
    %74 = vector.load %arg3[%73, %c0_62, %c0_63] : memref<28x1x32xf32, #tpu.memory_space<vmem>>, vector<1x1x32xf32>
    %75 = vector.shape_cast %74 : vector<1x1x32xf32> to vector<1x32xf32>
    %c6_64 = arith.constant 6 : index
    %c0_65 = arith.constant 0 : index
    %76 = vector.load %arg7[%c6_64, %c0_65] : memref<16x32xf32, #tpu.memory_space<vmem>>, vector<1x32xf32>
    tpu.vector_store %arg7[%c6_64, %c0_65], %75 {strides = array<i32>} : memref<16x32xf32, #tpu.memory_space<vmem>>, vector<1x32xf32>,
    %c7 = arith.constant 7 : index
    %77 = memref.load %arg2[%c7] : memref<16xi32, #tpu.memory_space<smem>>
    %c0_i32_66 = arith.constant 0 : i32
    %78 = arith.cmpi eq, %77, %c0_i32_66 : i32
    %c1_i32_67 = arith.constant 1 : i32
    %79 = arith.cmpi eq, %77, %c1_i32_67 : i32
    %c4_i32_68 = arith.constant 4 : i32
    %c20_i32_69 = arith.constant 20 : i32
    %80 = arith.select %79, %c4_i32_68, %c20_i32_69 : i32
    %c0_i32_70 = arith.constant 0 : i32
    %81 = arith.select %78, %c0_i32_70, %80 : i32
    %c7_71 = arith.constant 7 : index
    %82 = memref.load %arg1[%c7_71] : memref<16xi32, #tpu.memory_space<smem>>
    %83 = arith.addi %82, %81 : i32
    %84 = arith.index_cast %83 : i32 to index
    %c0_72 = arith.constant 0 : index
    %c0_73 = arith.constant 0 : index
    %85 = vector.load %arg3[%84, %c0_72, %c0_73] : memref<28x1x32xf32, #tpu.memory_space<vmem>>, vector<1x1x32xf32>
    %86 = vector.shape_cast %85 : vector<1x1x32xf32> to vector<1x32xf32>
    %c7_74 = arith.constant 7 : index
    %c0_75 = arith.constant 0 : index
    %87 = vector.load %arg7[%c7_74, %c0_75] : memref<16x32xf32, #tpu.memory_space<vmem>>, vector<1x32xf32>
    tpu.vector_store %arg7[%c7_74, %c0_75], %86 {strides = array<i32>} : memref<16x32xf32, #tpu.memory_space<vmem>>, vector<1x32xf32>,
    %c8 = arith.constant 8 : index
    %88 = memref.load %arg2[%c8] : memref<16xi32, #tpu.memory_space<smem>>
    %c0_i32_76 = arith.constant 0 : i32
    %89 = arith.cmpi eq, %88, %c0_i32_76 : i32
    %c1_i32_77 = arith.constant 1 : i32
    %90 = arith.cmpi eq, %88, %c1_i32_77 : i32
    %c4_i32_78 = arith.constant 4 : i32
    %c20_i32_79 = arith.constant 20 : i32
    %91 = arith.select %90, %c4_i32_78, %c20_i32_79 : i32
    %c0_i32_80 = arith.constant 0 : i32
    %92 = arith.select %89, %c0_i32_80, %91 : i32
    %c8_81 = arith.constant 8 : index
    %93 = memref.load %arg1[%c8_81] : memref<16xi32, #tpu.memory_space<smem>>
    %94 = arith.addi %93, %92 : i32
    %95 = arith.index_cast %94 : i32 to index
    %c0_82 = arith.constant 0 : index
    %c0_83 = arith.constant 0 : index
    %96 = vector.load %arg3[%95, %c0_82, %c0_83] : memref<28x1x32xf32, #tpu.memory_space<vmem>>, vector<1x1x32xf32>
    %97 = vector.shape_cast %96 : vector<1x1x32xf32> to vector<1x32xf32>
    %c8_84 = arith.constant 8 : index
    %c0_85 = arith.constant 0 : index
    %98 = vector.load %arg7[%c8_84, %c0_85] : memref<16x32xf32, #tpu.memory_space<vmem>>, vector<1x32xf32>
    tpu.vector_store %arg7[%c8_84, %c0_85], %97 {strides = array<i32>} : memref<16x32xf32, #tpu.memory_space<vmem>>, vector<1x32xf32>,
    %c9 = arith.constant 9 : index
    %99 = memref.load %arg2[%c9] : memref<16xi32, #tpu.memory_space<smem>>
    %c0_i32_86 = arith.constant 0 : i32
    %100 = arith.cmpi eq, %99, %c0_i32_86 : i32
    %c1_i32_87 = arith.constant 1 : i32
    %101 = arith.cmpi eq, %99, %c1_i32_87 : i32
    %c4_i32_88 = arith.constant 4 : i32
    %c20_i32_89 = arith.constant 20 : i32
    %102 = arith.select %101, %c4_i32_88, %c20_i32_89 : i32
    %c0_i32_90 = arith.constant 0 : i32
    %103 = arith.select %100, %c0_i32_90, %102 : i32
    %c9_91 = arith.constant 9 : index
    %104 = memref.load %arg1[%c9_91] : memref<16xi32, #tpu.memory_space<smem>>
    %105 = arith.addi %104, %103 : i32
    %106 = arith.index_cast %105 : i32 to index
    %c0_92 = arith.constant 0 : index
    %c0_93 = arith.constant 0 : index
    %107 = vector.load %arg3[%106, %c0_92, %c0_93] : memref<28x1x32xf32, #tpu.memory_space<vmem>>, vector<1x1x32xf32>
    %108 = vector.shape_cast %107 : vector<1x1x32xf32> to vector<1x32xf32>
    %c9_94 = arith.constant 9 : index
    %c0_95 = arith.constant 0 : index
    %109 = vector.load %arg7[%c9_94, %c0_95] : memref<16x32xf32, #tpu.memory_space<vmem>>, vector<1x32xf32>
    tpu.vector_store %arg7[%c9_94, %c0_95], %108 {strides = array<i32>} : memref<16x32xf32, #tpu.memory_space<vmem>>, vector<1x32xf32>,
    %c10 = arith.constant 10 : index
    %110 = memref.load %arg2[%c10] : memref<16xi32, #tpu.memory_space<smem>>
    %c0_i32_96 = arith.constant 0 : i32
    %111 = arith.cmpi eq, %110, %c0_i32_96 : i32
    %c1_i32_97 = arith.constant 1 : i32
    %112 = arith.cmpi eq, %110, %c1_i32_97 : i32
    %c4_i32_98 = arith.constant 4 : i32
    %c20_i32_99 = arith.constant 20 : i32
    %113 = arith.select %112, %c4_i32_98, %c20_i32_99 : i32
    %c0_i32_100 = arith.constant 0 : i32
    %114 = arith.select %111, %c0_i32_100, %113 : i32
    %c10_101 = arith.constant 10 : index
    %115 = memref.load %arg1[%c10_101] : memref<16xi32, #tpu.memory_space<smem>>
    %116 = arith.addi %115, %114 : i32
    %117 = arith.index_cast %116 : i32 to index
    %c0_102 = arith.constant 0 : index
    %c0_103 = arith.constant 0 : index
    %118 = vector.load %arg3[%117, %c0_102, %c0_103] : memref<28x1x32xf32, #tpu.memory_space<vmem>>, vector<1x1x32xf32>
    %119 = vector.shape_cast %118 : vector<1x1x32xf32> to vector<1x32xf32>
    %c10_104 = arith.constant 10 : index
    %c0_105 = arith.constant 0 : index
    %120 = vector.load %arg7[%c10_104, %c0_105] : memref<16x32xf32, #tpu.memory_space<vmem>>, vector<1x32xf32>
    tpu.vector_store %arg7[%c10_104, %c0_105], %119 {strides = array<i32>} : memref<16x32xf32, #tpu.memory_space<vmem>>, vector<1x32xf32>,
    %c11 = arith.constant 11 : index
    %121 = memref.load %arg2[%c11] : memref<16xi32, #tpu.memory_space<smem>>
    %c0_i32_106 = arith.constant 0 : i32
    %122 = arith.cmpi eq, %121, %c0_i32_106 : i32
    %c1_i32_107 = arith.constant 1 : i32
    %123 = arith.cmpi eq, %121, %c1_i32_107 : i32
    %c4_i32_108 = arith.constant 4 : i32
    %c20_i32_109 = arith.constant 20 : i32
    %124 = arith.select %123, %c4_i32_108, %c20_i32_109 : i32
    %c0_i32_110 = arith.constant 0 : i32
    %125 = arith.select %122, %c0_i32_110, %124 : i32
    %c11_111 = arith.constant 11 : index
    %126 = memref.load %arg1[%c11_111] : memref<16xi32, #tpu.memory_space<smem>>
    %127 = arith.addi %126, %125 : i32
    %128 = arith.index_cast %127 : i32 to index
    %c0_112 = arith.constant 0 : index
    %c0_113 = arith.constant 0 : index
    %129 = vector.load %arg3[%128, %c0_112, %c0_113] : memref<28x1x32xf32, #tpu.memory_space<vmem>>, vector<1x1x32xf32>
    %130 = vector.shape_cast %129 : vector<1x1x32xf32> to vector<1x32xf32>
    %c11_114 = arith.constant 11 : index
    %c0_115 = arith.constant 0 : index
    %131 = vector.load %arg7[%c11_114, %c0_115] : memref<16x32xf32, #tpu.memory_space<vmem>>, vector<1x32xf32>
    tpu.vector_store %arg7[%c11_114, %c0_115], %130 {strides = array<i32>} : memref<16x32xf32, #tpu.memory_space<vmem>>, vector<1x32xf32>,
    %c12 = arith.constant 12 : index
    %132 = memref.load %arg2[%c12] : memref<16xi32, #tpu.memory_space<smem>>
    %c0_i32_116 = arith.constant 0 : i32
    %133 = arith.cmpi eq, %132, %c0_i32_116 : i32
    %c1_i32_117 = arith.constant 1 : i32
    %134 = arith.cmpi eq, %132, %c1_i32_117 : i32
    %c4_i32_118 = arith.constant 4 : i32
    %c20_i32_119 = arith.constant 20 : i32
    %135 = arith.select %134, %c4_i32_118, %c20_i32_119 : i32
    %c0_i32_120 = arith.constant 0 : i32
    %136 = arith.select %133, %c0_i32_120, %135 : i32
    %c12_121 = arith.constant 12 : index
    %137 = memref.load %arg1[%c12_121] : memref<16xi32, #tpu.memory_space<smem>>
    %138 = arith.addi %137, %136 : i32
    %139 = arith.index_cast %138 : i32 to index
    %c0_122 = arith.constant 0 : index
    %c0_123 = arith.constant 0 : index
    %140 = vector.load %arg3[%139, %c0_122, %c0_123] : memref<28x1x32xf32, #tpu.memory_space<vmem>>, vector<1x1x32xf32>
    %141 = vector.shape_cast %140 : vector<1x1x32xf32> to vector<1x32xf32>
    %c12_124 = arith.constant 12 : index
    %c0_125 = arith.constant 0 : index
    %142 = vector.load %arg7[%c12_124, %c0_125] : memref<16x32xf32, #tpu.memory_space<vmem>>, vector<1x32xf32>
    tpu.vector_store %arg7[%c12_124, %c0_125], %141 {strides = array<i32>} : memref<16x32xf32, #tpu.memory_space<vmem>>, vector<1x32xf32>,
    %c13 = arith.constant 13 : index
    %143 = memref.load %arg2[%c13] : memref<16xi32, #tpu.memory_space<smem>>
    %c0_i32_126 = arith.constant 0 : i32
    %144 = arith.cmpi eq, %143, %c0_i32_126 : i32
    %c1_i32_127 = arith.constant 1 : i32
    %145 = arith.cmpi eq, %143, %c1_i32_127 : i32
    %c4_i32_128 = arith.constant 4 : i32
    %c20_i32_129 = arith.constant 20 : i32
    %146 = arith.select %145, %c4_i32_128, %c20_i32_129 : i32
    %c0_i32_130 = arith.constant 0 : i32
    %147 = arith.select %144, %c0_i32_130, %146 : i32
    %c13_131 = arith.constant 13 : index
    %148 = memref.load %arg1[%c13_131] : memref<16xi32, #tpu.memory_space<smem>>
    %149 = arith.addi %148, %147 : i32
    %150 = arith.index_cast %149 : i32 to index
    %c0_132 = arith.constant 0 : index
    %c0_133 = arith.constant 0 : index
    %151 = vector.load %arg3[%150, %c0_132, %c0_133] : memref<28x1x32xf32, #tpu.memory_space<vmem>>, vector<1x1x32xf32>
    %152 = vector.shape_cast %151 : vector<1x1x32xf32> to vector<1x32xf32>
    %c13_134 = arith.constant 13 : index
    %c0_135 = arith.constant 0 : index
    %153 = vector.load %arg7[%c13_134, %c0_135] : memref<16x32xf32, #tpu.memory_space<vmem>>, vector<1x32xf32>
    tpu.vector_store %arg7[%c13_134, %c0_135], %152 {strides = array<i32>} : memref<16x32xf32, #tpu.memory_space<vmem>>, vector<1x32xf32>,
    %c14 = arith.constant 14 : index
    %154 = memref.load %arg2[%c14] : memref<16xi32, #tpu.memory_space<smem>>
    %c0_i32_136 = arith.constant 0 : i32
    %155 = arith.cmpi eq, %154, %c0_i32_136 : i32
    %c1_i32_137 = arith.constant 1 : i32
    %156 = arith.cmpi eq, %154, %c1_i32_137 : i32
    %c4_i32_138 = arith.constant 4 : i32
    %c20_i32_139 = arith.constant 20 : i32
    %157 = arith.select %156, %c4_i32_138, %c20_i32_139 : i32
    %c0_i32_140 = arith.constant 0 : i32
    %158 = arith.select %155, %c0_i32_140, %157 : i32
    %c14_141 = arith.constant 14 : index
    %159 = memref.load %arg1[%c14_141] : memref<16xi32, #tpu.memory_space<smem>>
    %160 = arith.addi %159, %158 : i32
    %161 = arith.index_cast %160 : i32 to index
    %c0_142 = arith.constant 0 : index
    %c0_143 = arith.constant 0 : index
    %162 = vector.load %arg3[%161, %c0_142, %c0_143] : memref<28x1x32xf32, #tpu.memory_space<vmem>>, vector<1x1x32xf32>
    %163 = vector.shape_cast %162 : vector<1x1x32xf32> to vector<1x32xf32>
    %c14_144 = arith.constant 14 : index
    %c0_145 = arith.constant 0 : index
    %164 = vector.load %arg7[%c14_144, %c0_145] : memref<16x32xf32, #tpu.memory_space<vmem>>, vector<1x32xf32>
    tpu.vector_store %arg7[%c14_144, %c0_145], %163 {strides = array<i32>} : memref<16x32xf32, #tpu.memory_space<vmem>>, vector<1x32xf32>,
    %c15 = arith.constant 15 : index
    %165 = memref.load %arg2[%c15] : memref<16xi32, #tpu.memory_space<smem>>
    %c0_i32_146 = arith.constant 0 : i32
    %166 = arith.cmpi eq, %165, %c0_i32_146 : i32
    %c1_i32_147 = arith.constant 1 : i32
    %167 = arith.cmpi eq, %165, %c1_i32_147 : i32
    %c4_i32_148 = arith.constant 4 : i32
    %c20_i32_149 = arith.constant 20 : i32
    %168 = arith.select %167, %c4_i32_148, %c20_i32_149 : i32
    %c0_i32_150 = arith.constant 0 : i32
    %169 = arith.select %166, %c0_i32_150, %168 : i32
    %c15_151 = arith.constant 15 : index
    %170 = memref.load %arg1[%c15_151] : memref<16xi32, #tpu.memory_space<smem>>
    %171 = arith.addi %170, %169 : i32
    %172 = arith.index_cast %171 : i32 to index
    %c0_152 = arith.constant 0 : index
    %c0_153 = arith.constant 0 : index
    %173 = vector.load %arg3[%172, %c0_152, %c0_153] : memref<28x1x32xf32, #tpu.memory_space<vmem>>, vector<1x1x32xf32>
    %174 = vector.shape_cast %173 : vector<1x1x32xf32> to vector<1x32xf32>
    %c15_154 = arith.constant 15 : index
    %c0_155 = arith.constant 0 : index
    %175 = vector.load %arg7[%c15_154, %c0_155] : memref<16x32xf32, #tpu.memory_space<vmem>>, vector<1x32xf32>
    tpu.vector_store %arg7[%c15_154, %c0_155], %174 {strides = array<i32>} : memref<16x32xf32, #tpu.memory_space<vmem>>, vector<1x32xf32>,
    %c0_156 = arith.constant 0 : index
    %c0_157 = arith.constant 0 : index
    %176 = vector.load %arg4[%c0_156, %c0_157] : memref<464x32xf32, #tpu.memory_space<vmem>>, vector<8x32xf32>
    %c0_158 = arith.constant 0 : index
    %c0_159 = arith.constant 0 : index
    %177 = vector.load %arg7[%c0_158, %c0_159] : memref<16x32xf32, #tpu.memory_space<vmem>>, vector<16x32xf32>
    %178 = vector.shape_cast %177 : vector<16x32xf32> to vector<2x8x32xf32>
    %179 = vector.shape_cast %176 : vector<8x32xf32> to vector<1x8x32xf32>
    %180 = vector.broadcast %179 : vector<1x8x32xf32> to vector<2x8x32xf32>
    %181 = arith.addf %178, %180 : vector<2x8x32xf32>
    %182 = vector.shape_cast %181 : vector<2x8x32xf32> to vector<16x32xf32>
    %c48 = arith.constant 48 : index
    %c0_160 = arith.constant 0 : index
    %183 = vector.load %arg4[%c48, %c0_160] : memref<464x32xf32, #tpu.memory_space<vmem>>, vector<32x32xf32>
    %c80 = arith.constant 80 : index
    %c0_161 = arith.constant 0 : index
    %184 = vector.load %arg4[%c80, %c0_161] : memref<464x32xf32, #tpu.memory_space<vmem>>, vector<32x32xf32>
    %c112 = arith.constant 112 : index
    %c0_162 = arith.constant 0 : index
    %185 = vector.load %arg4[%c112, %c0_162] : memref<464x32xf32, #tpu.memory_space<vmem>>, vector<32x32xf32>
    %c144 = arith.constant 144 : index
    %c0_163 = arith.constant 0 : index
    %186 = vector.load %arg4[%c144, %c0_163] : memref<464x32xf32, #tpu.memory_space<vmem>>, vector<32x32xf32>
    %c176 = arith.constant 176 : index
    %c0_164 = arith.constant 0 : index
    %187 = vector.load %arg4[%c176, %c0_164] : memref<464x32xf32, #tpu.memory_space<vmem>>, vector<64x32xf32>
    %c240 = arith.constant 240 : index
    %c0_165 = arith.constant 0 : index
    %188 = vector.load %arg4[%c240, %c0_165] : memref<464x32xf32, #tpu.memory_space<vmem>>, vector<16x32xf32>
    %c0_166 = arith.constant 0 : index
    %c0_167 = arith.constant 0 : index
    %189 = vector.load %arg5[%c0_166, %c0_167] : memref<80x64xf32, #tpu.memory_space<vmem>>, vector<32x64xf32>
    %c32 = arith.constant 32 : index
    %c0_168 = arith.constant 0 : index
    %190 = vector.load %arg5[%c32, %c0_168] : memref<80x64xf32, #tpu.memory_space<vmem>>, vector<1x64xf32>
    %191 = vector.shape_cast %190 : vector<1x64xf32> to vector<64xf32>
    %cst = arith.constant dense<0.000000e+00> : vector<16x32xf32>
    %192 = tpu.matmul %182, %183, %cst {dimension_numbers = #tpu.dot_dimension_numbers<[1], [0], [0], [1], [0, 0, 1, 1], [], []>} : vector<16x32xf32>, vector<32x32xf32>, vector<16x32xf32> -> vector<16x32xf32>
    %193 = vector.extract_strided_slice %188 {offsets = [0, 0], sizes = [1, 32], strides = [1, 1]} : vector<16x32xf32> to vector<1x32xf32>
    %194 = vector.shape_cast %193 : vector<1x32xf32> to vector<32xf32>
    %195 = vector.shape_cast %194 : vector<32xf32> to vector<1x32xf32>
    %196 = vector.broadcast %195 : vector<1x32xf32> to vector<16x32xf32>
    %197 = arith.addf %192, %196 : vector<16x32xf32>
    %cst_169 = arith.constant dense<0.000000e+00> : vector<16x32xf32>
    %198 = tpu.matmul %182, %184, %cst_169 {dimension_numbers = #tpu.dot_dimension_numbers<[1], [0], [0], [1], [0, 0, 1, 1], [], []>} : vector<16x32xf32>, vector<32x32xf32>, vector<16x32xf32> -> vector<16x32xf32>
    %199 = vector.extract_strided_slice %188 {offsets = [1, 0], sizes = [1, 32], strides = [1, 1]} : vector<16x32xf32> to vector<1x32xf32>
    %200 = vector.shape_cast %199 : vector<1x32xf32> to vector<32xf32>
    %201 = vector.shape_cast %200 : vector<32xf32> to vector<1x32xf32>
    %202 = vector.broadcast %201 : vector<1x32xf32> to vector<16x32xf32>
    %203 = arith.addf %198, %202 : vector<16x32xf32>
    %cst_170 = arith.constant dense<0.000000e+00> : vector<16x32xf32>
    %204 = tpu.matmul %182, %185, %cst_170 {dimension_numbers = #tpu.dot_dimension_numbers<[1], [0], [0], [1], [0, 0, 1, 1], [], []>} : vector<16x32xf32>, vector<32x32xf32>, vector<16x32xf32> -> vector<16x32xf32>
    %205 = vector.extract_strided_slice %188 {offsets = [2, 0], sizes = [1, 32], strides = [1, 1]} : vector<16x32xf32> to vector<1x32xf32>
    %206 = vector.shape_cast %205 : vector<1x32xf32> to vector<32xf32>
    %207 = vector.shape_cast %206 : vector<32xf32> to vector<1x32xf32>
    %208 = vector.broadcast %207 : vector<1x32xf32> to vector<16x32xf32>
    %209 = arith.addf %204, %208 : vector<16x32xf32>
    %210 = vector.extract_strided_slice %197 {offsets = [0, 0], sizes = [16, 8], strides = [1, 1]} : vector<16x32xf32> to vector<16x8xf32>
    %211 = vector.shape_cast %210 : vector<16x8xf32> to vector<2x8x8xf32>
    %212 = vector.extract_strided_slice %197 {offsets = [0, 8], sizes = [16, 8], strides = [1, 1]} : vector<16x32xf32> to vector<16x8xf32>
    %213 = vector.shape_cast %212 : vector<16x8xf32> to vector<2x8x8xf32>
    %214 = vector.extract_strided_slice %197 {offsets = [0, 16], sizes = [16, 8], strides = [1, 1]} : vector<16x32xf32> to vector<16x8xf32>
    %215 = vector.shape_cast %214 : vector<16x8xf32> to vector<2x8x8xf32>
    %216 = vector.extract_strided_slice %197 {offsets = [0, 24], sizes = [16, 8], strides = [1, 1]} : vector<16x32xf32> to vector<16x8xf32>
    %217 = vector.shape_cast %216 : vector<16x8xf32> to vector<2x8x8xf32>
    %218 = tpu.concatenate %211, %213, %215, %217 in 0 : vector<2x8x8xf32>, vector<2x8x8xf32>, vector<2x8x8xf32>, vector<2x8x8xf32> -> vector<8x8x8xf32>
    %219 = vector.extract_strided_slice %203 {offsets = [0, 0], sizes = [16, 8], strides = [1, 1]} : vector<16x32xf32> to vector<16x8xf32>
    %220 = vector.shape_cast %219 : vector<16x8xf32> to vector<2x8x8xf32>
    %221 = vector.extract_strided_slice %203 {offsets = [0, 8], sizes = [16, 8], strides = [1, 1]} : vector<16x32xf32> to vector<16x8xf32>
    %222 = vector.shape_cast %221 : vector<16x8xf32> to vector<2x8x8xf32>
    %223 = vector.extract_strided_slice %203 {offsets = [0, 16], sizes = [16, 8], strides = [1, 1]} : vector<16x32xf32> to vector<16x8xf32>
    %224 = vector.shape_cast %223 : vector<16x8xf32> to vector<2x8x8xf32>
    %225 = vector.extract_strided_slice %203 {offsets = [0, 24], sizes = [16, 8], strides = [1, 1]} : vector<16x32xf32> to vector<16x8xf32>
    %226 = vector.shape_cast %225 : vector<16x8xf32> to vector<2x8x8xf32>
    %227 = tpu.concatenate %220, %222, %224, %226 in 0 : vector<2x8x8xf32>, vector<2x8x8xf32>, vector<2x8x8xf32>, vector<2x8x8xf32> -> vector<8x8x8xf32>
    %228 = vector.extract_strided_slice %209 {offsets = [0, 0], sizes = [16, 8], strides = [1, 1]} : vector<16x32xf32> to vector<16x8xf32>
    %229 = vector.shape_cast %228 : vector<16x8xf32> to vector<2x8x8xf32>
    %230 = vector.extract_strided_slice %209 {offsets = [0, 8], sizes = [16, 8], strides = [1, 1]} : vector<16x32xf32> to vector<16x8xf32>
    %231 = vector.shape_cast %230 : vector<16x8xf32> to vector<2x8x8xf32>
    %232 = vector.extract_strided_slice %209 {offsets = [0, 16], sizes = [16, 8], strides = [1, 1]} : vector<16x32xf32> to vector<16x8xf32>
    %233 = vector.shape_cast %232 : vector<16x8xf32> to vector<2x8x8xf32>
    %234 = vector.extract_strided_slice %209 {offsets = [0, 24], sizes = [16, 8], strides = [1, 1]} : vector<16x32xf32> to vector<16x8xf32>
    %235 = vector.shape_cast %234 : vector<16x8xf32> to vector<2x8x8xf32>
    %236 = tpu.concatenate %229, %231, %233, %235 in 0 : vector<2x8x8xf32>, vector<2x8x8xf32>, vector<2x8x8xf32>, vector<2x8x8xf32> -> vector<8x8x8xf32>
    "tpu.trace_start"() <{level = 10 : i32, message = "gqd,gkd->gqk"}> : () -> ()
    %cst_171 = arith.constant dense<0.000000e+00> : vector<8x8x8xf32>
    %237 = tpu.matmul %218, %227, %cst_171 {dimension_numbers = #tpu.dot_dimension_numbers<[2], [2], [1], [1], [0, 0, 0, 1, 1, 1], [0], [0]>} : vector<8x8x8xf32>, vector<8x8x8xf32>, vector<8x8x8xf32> -> vector<8x8x8xf32>
    "tpu.trace_stop"() : () -> ()
    %cst_172 = arith.constant dense<0xFF800000> : vector<8x8xf32>
    %238 = vector.multi_reduction <maximumf>, %237, %cst_172 [2] : vector<8x8x8xf32> to vector<8x8xf32>
    %239 = vector.shape_cast %238 : vector<8x8xf32> to vector<8x8x1xf32>
    %240 = vector.broadcast %239 : vector<8x8x1xf32> to vector<8x8x8xf32>
    %241 = arith.subf %237, %240 : vector<8x8x8xf32>
    %242 = math.exp %241 : vector<8x8x8xf32>
    %cst_173 = arith.constant dense<0.000000e+00> : vector<8x8xf32>
    %243 = vector.multi_reduction <add>, %242, %cst_173 [2] : vector<8x8x8xf32> to vector<8x8xf32>
    %244 = vector.shape_cast %243 : vector<8x8xf32> to vector<8x8x1xf32>
    %245 = tpu.reciprocal %244 {approx = true} : vector<8x8x1xf32> -> vector<8x8x1xf32>
    %246 = vector.broadcast %245 : vector<8x8x1xf32> to vector<8x8x8xf32>
    %247 = arith.mulf %242, %246 : vector<8x8x8xf32>
    "tpu.trace_start"() <{level = 10 : i32, message = "gqk,gkd->gqd"}> : () -> ()
    %cst_174 = arith.constant dense<0.000000e+00> : vector<8x8x8xf32>
    %248 = tpu.matmul %247, %236, %cst_174 {dimension_numbers = #tpu.dot_dimension_numbers<[2], [1], [1], [2], [0, 0, 0, 1, 1, 2], [0], [0]>} : vector<8x8x8xf32>, vector<8x8x8xf32>, vector<8x8x8xf32> -> vector<8x8x8xf32>
    %cst_175 = arith.constant 0.000000e+00 : f32
    "tpu.trace_stop"() : () -> ()
    %249 = vector.broadcast %cst_175 : f32 to vector<16x32xf32>
    %250 = vector.extract_strided_slice %248 {offsets = [0, 0, 0], sizes = [2, 8, 8], strides = [1, 1, 1]} : vector<8x8x8xf32> to vector<2x8x8xf32>
    %251 = vector.shape_cast %250 : vector<2x8x8xf32> to vector<16x8xf32>
    %252 = vector.extract_strided_slice %186 {offsets = [0, 0], sizes = [8, 32], strides = [1, 1]} : vector<32x32xf32> to vector<8x32xf32>
    %cst_176 = arith.constant dense<0.000000e+00> : vector<16x32xf32>
    %253 = tpu.matmul %251, %252, %cst_176 {dimension_numbers = #tpu.dot_dimension_numbers<[1], [0], [0], [1], [0, 0, 1, 1], [], []>} : vector<16x8xf32>, vector<8x32xf32>, vector<16x32xf32> -> vector<16x32xf32>
    %254 = arith.addf %249, %253 : vector<16x32xf32>
    %255 = vector.extract_strided_slice %248 {offsets = [2, 0, 0], sizes = [2, 8, 8], strides = [1, 1, 1]} : vector<8x8x8xf32> to vector<2x8x8xf32>
    %256 = vector.shape_cast %255 : vector<2x8x8xf32> to vector<16x8xf32>
    %257 = vector.extract_strided_slice %186 {offsets = [8, 0], sizes = [8, 32], strides = [1, 1]} : vector<32x32xf32> to vector<8x32xf32>
    %cst_177 = arith.constant dense<0.000000e+00> : vector<16x32xf32>
    %258 = tpu.matmul %256, %257, %cst_177 {dimension_numbers = #tpu.dot_dimension_numbers<[1], [0], [0], [1], [0, 0, 1, 1], [], []>} : vector<16x8xf32>, vector<8x32xf32>, vector<16x32xf32> -> vector<16x32xf32>
    %259 = arith.addf %254, %258 : vector<16x32xf32>
    %260 = vector.extract_strided_slice %248 {offsets = [4, 0, 0], sizes = [2, 8, 8], strides = [1, 1, 1]} : vector<8x8x8xf32> to vector<2x8x8xf32>
    %261 = vector.shape_cast %260 : vector<2x8x8xf32> to vector<16x8xf32>
    %262 = vector.extract_strided_slice %186 {offsets = [16, 0], sizes = [8, 32], strides = [1, 1]} : vector<32x32xf32> to vector<8x32xf32>
    %cst_178 = arith.constant dense<0.000000e+00> : vector<16x32xf32>
    %263 = tpu.matmul %261, %262, %cst_178 {dimension_numbers = #tpu.dot_dimension_numbers<[1], [0], [0], [1], [0, 0, 1, 1], [], []>} : vector<16x8xf32>, vector<8x32xf32>, vector<16x32xf32> -> vector<16x32xf32>
    %264 = arith.addf %259, %263 : vector<16x32xf32>
    %265 = vector.extract_strided_slice %248 {offsets = [6, 0, 0], sizes = [2, 8, 8], strides = [1, 1, 1]} : vector<8x8x8xf32> to vector<2x8x8xf32>
    %266 = vector.shape_cast %265 : vector<2x8x8xf32> to vector<16x8xf32>
    %267 = vector.extract_strided_slice %186 {offsets = [24, 0], sizes = [8, 32], strides = [1, 1]} : vector<32x32xf32> to vector<8x32xf32>
    %cst_179 = arith.constant dense<0.000000e+00> : vector<16x32xf32>
    %268 = tpu.matmul %266, %267, %cst_179 {dimension_numbers = #tpu.dot_dimension_numbers<[1], [0], [0], [1], [0, 0, 1, 1], [], []>} : vector<16x8xf32>, vector<8x32xf32>, vector<16x32xf32> -> vector<16x32xf32>
    %269 = arith.addf %264, %268 : vector<16x32xf32>
    %270 = vector.extract_strided_slice %188 {offsets = [3, 0], sizes = [1, 32], strides = [1, 1]} : vector<16x32xf32> to vector<1x32xf32>
    %271 = vector.shape_cast %270 : vector<1x32xf32> to vector<32xf32>
    %272 = vector.shape_cast %271 : vector<32xf32> to vector<1x32xf32>
    %273 = vector.broadcast %272 : vector<1x32xf32> to vector<16x32xf32>
    %274 = arith.addf %269, %273 : vector<16x32xf32>
    %275 = arith.addf %182, %274 : vector<16x32xf32>
    %276 = vector.extract_strided_slice %188 {offsets = [5, 0], sizes = [1, 32], strides = [1, 1]} : vector<16x32xf32> to vector<1x32xf32>
    %277 = vector.shape_cast %276 : vector<1x32xf32> to vector<32xf32>
    %278 = vector.extract_strided_slice %188 {offsets = [6, 0], sizes = [1, 32], strides = [1, 1]} : vector<16x32xf32> to vector<1x32xf32>
    %279 = vector.shape_cast %278 : vector<1x32xf32> to vector<32xf32>
    %cst_180 = arith.constant dense<0.000000e+00> : vector<16xf32>
    %280 = vector.multi_reduction <add>, %275, %cst_180 [1] : vector<16x32xf32> to vector<16xf32>
    %281 = vector.shape_cast %280 : vector<16xf32> to vector<16x1xf32>
    %cst_181 = arith.constant 3.200000e+01 : f32
    %282 = vector.broadcast %cst_181 : f32 to vector<16x1xf32>
    %283 = arith.divf %281, %282 : vector<16x1xf32>
    %284 = vector.broadcast %283 : vector<16x1xf32> to vector<16x32xf32>
    %285 = arith.subf %275, %284 : vector<16x32xf32>
    %286 = arith.mulf %285, %285 : vector<16x32xf32>
    %cst_182 = arith.constant dense<0.000000e+00> : vector<16xf32>
    %287 = vector.multi_reduction <add>, %286, %cst_182 [1] : vector<16x32xf32> to vector<16xf32>
    %288 = vector.shape_cast %287 : vector<16xf32> to vector<16x1xf32>
    %cst_183 = arith.constant 3.200000e+01 : f32
    %289 = vector.broadcast %cst_183 : f32 to vector<16x1xf32>
    %290 = arith.divf %288, %289 : vector<16x1xf32>
    %291 = vector.broadcast %283 : vector<16x1xf32> to vector<16x32xf32>
    %292 = arith.subf %275, %291 : vector<16x32xf32>
    %cst_184 = arith.constant 9.99999974E-6 : f32
    %293 = vector.broadcast %cst_184 : f32 to vector<16x1xf32>
    %294 = arith.addf %290, %293 : vector<16x1xf32>
    %295 = math.rsqrt %294 : vector<16x1xf32>
    %296 = vector.broadcast %295 : vector<16x1xf32> to vector<16x32xf32>
    %297 = arith.mulf %292, %296 : vector<16x32xf32>
    %298 = vector.shape_cast %277 : vector<32xf32> to vector<1x32xf32>
    %299 = vector.broadcast %298 : vector<1x32xf32> to vector<16x32xf32>
    %300 = arith.mulf %297, %299 : vector<16x32xf32>
    %301 = vector.shape_cast %279 : vector<32xf32> to vector<1x32xf32>
    %302 = vector.broadcast %301 : vector<1x32xf32> to vector<16x32xf32>
    %303 = arith.addf %300, %302 : vector<16x32xf32>
    %cst_185 = arith.constant dense<0.000000e+00> : vector<16x64xf32>
    %304 = tpu.matmul %303, %189, %cst_185 {dimension_numbers = #tpu.dot_dimension_numbers<[1], [0], [0], [1], [0, 0, 1, 1], [], []>} : vector<16x32xf32>, vector<32x64xf32>, vector<16x64xf32> -> vector<16x64xf32>
    %305 = vector.shape_cast %191 : vector<64xf32> to vector<1x64xf32>
    %306 = vector.broadcast %305 : vector<1x64xf32> to vector<16x64xf32>
    %307 = arith.addf %304, %306 : vector<16x64xf32>
    %cst_186 = arith.constant 0.000000e+00 : f32
    %308 = vector.broadcast %cst_186 : f32 to vector<16x64xf32>
    %309 = arith.maximumf %307, %308 : vector<16x64xf32>
    %cst_187 = arith.constant dense<0.000000e+00> : vector<16x32xf32>
    %310 = tpu.matmul %309, %187, %cst_187 {dimension_numbers = #tpu.dot_dimension_numbers<[1], [0], [0], [1], [0, 0, 1, 1], [], []>} : vector<16x64xf32>, vector<64x32xf32>, vector<16x32xf32> -> vector<16x32xf32>
    %311 = vector.extract_strided_slice %188 {offsets = [4, 0], sizes = [1, 32], strides = [1, 1]} : vector<16x32xf32> to vector<1x32xf32>
    %312 = vector.shape_cast %311 : vector<1x32xf32> to vector<32xf32>
    %313 = vector.shape_cast %312 : vector<32xf32> to vector<1x32xf32>
    %314 = vector.broadcast %313 : vector<1x32xf32> to vector<16x32xf32>
    %315 = arith.addf %310, %314 : vector<16x32xf32>
    %316 = arith.addf %303, %315 : vector<16x32xf32>
    %317 = vector.extract_strided_slice %188 {offsets = [7, 0], sizes = [1, 32], strides = [1, 1]} : vector<16x32xf32> to vector<1x32xf32>
    %318 = vector.shape_cast %317 : vector<1x32xf32> to vector<32xf32>
    %319 = vector.extract_strided_slice %188 {offsets = [8, 0], sizes = [1, 32], strides = [1, 1]} : vector<16x32xf32> to vector<1x32xf32>
    %320 = vector.shape_cast %319 : vector<1x32xf32> to vector<32xf32>
    %cst_188 = arith.constant dense<0.000000e+00> : vector<16xf32>
    %321 = vector.multi_reduction <add>, %316, %cst_188 [1] : vector<16x32xf32> to vector<16xf32>
    %322 = vector.shape_cast %321 : vector<16xf32> to vector<16x1xf32>
    %cst_189 = arith.constant 3.200000e+01 : f32
    %323 = vector.broadcast %cst_189 : f32 to vector<16x1xf32>
    %324 = arith.divf %322, %323 : vector<16x1xf32>
    %325 = vector.broadcast %324 : vector<16x1xf32> to vector<16x32xf32>
    %326 = arith.subf %316, %325 : vector<16x32xf32>
    %327 = arith.mulf %326, %326 : vector<16x32xf32>
    %cst_190 = arith.constant dense<0.000000e+00> : vector<16xf32>
    %328 = vector.multi_reduction <add>, %327, %cst_190 [1] : vector<16x32xf32> to vector<16xf32>
    %329 = vector.shape_cast %328 : vector<16xf32> to vector<16x1xf32>
    %cst_191 = arith.constant 3.200000e+01 : f32
    %330 = vector.broadcast %cst_191 : f32 to vector<16x1xf32>
    %331 = arith.divf %329, %330 : vector<16x1xf32>
    %332 = vector.broadcast %324 : vector<16x1xf32> to vector<16x32xf32>
    %333 = arith.subf %316, %332 : vector<16x32xf32>
    %cst_192 = arith.constant 9.99999974E-6 : f32
    %334 = vector.broadcast %cst_192 : f32 to vector<16x1xf32>
    %335 = arith.addf %331, %334 : vector<16x1xf32>
    %336 = math.rsqrt %335 : vector<16x1xf32>
    %337 = vector.broadcast %336 : vector<16x1xf32> to vector<16x32xf32>
    %338 = arith.mulf %333, %337 : vector<16x32xf32>
    %339 = vector.shape_cast %318 : vector<32xf32> to vector<1x32xf32>
    %340 = vector.broadcast %339 : vector<1x32xf32> to vector<16x32xf32>
    %341 = arith.mulf %338, %340 : vector<16x32xf32>
    %342 = vector.shape_cast %320 : vector<32xf32> to vector<1x32xf32>
    %343 = vector.broadcast %342 : vector<1x32xf32> to vector<16x32xf32>
    %344 = arith.addf %341, %343 : vector<16x32xf32>
    %c256 = arith.constant 256 : index
    %c0_193 = arith.constant 0 : index
    %345 = vector.load %arg4[%c256, %c0_193] : memref<464x32xf32, #tpu.memory_space<vmem>>, vector<32x32xf32>
    %c288 = arith.constant 288 : index
    %c0_194 = arith.constant 0 : index
    %346 = vector.load %arg4[%c288, %c0_194] : memref<464x32xf32, #tpu.memory_space<vmem>>, vector<32x32xf32>
    %c320 = arith.constant 320 : index
    %c0_195 = arith.constant 0 : index
    %347 = vector.load %arg4[%c320, %c0_195] : memref<464x32xf32, #tpu.memory_space<vmem>>, vector<32x32xf32>
    %c352 = arith.constant 352 : index
    %c0_196 = arith.constant 0 : index
    %348 = vector.load %arg4[%c352, %c0_196] : memref<464x32xf32, #tpu.memory_space<vmem>>, vector<32x32xf32>
    %c384 = arith.constant 384 : index
    %c0_197 = arith.constant 0 : index
    %349 = vector.load %arg4[%c384, %c0_197] : memref<464x32xf32, #tpu.memory_space<vmem>>, vector<64x32xf32>
    %c448 = arith.constant 448 : index
    %c0_198 = arith.constant 0 : index
    %350 = vector.load %arg4[%c448, %c0_198] : memref<464x32xf32, #tpu.memory_space<vmem>>, vector<16x32xf32>
    %c40 = arith.constant 40 : index
    %c0_199 = arith.constant 0 : index
    %351 = vector.load %arg5[%c40, %c0_199] : memref<80x64xf32, #tpu.memory_space<vmem>>, vector<32x64xf32>
    %c72 = arith.constant 72 : index
    %c0_200 = arith.constant 0 : index
    %352 = vector.load %arg5[%c72, %c0_200] : memref<80x64xf32, #tpu.memory_space<vmem>>, vector<1x64xf32>
    %353 = vector.shape_cast %352 : vector<1x64xf32> to vector<64xf32>
    %cst_201 = arith.constant dense<0.000000e+00> : vector<16x32xf32>
    %354 = tpu.matmul %344, %345, %cst_201 {dimension_numbers = #tpu.dot_dimension_numbers<[1], [0], [0], [1], [0, 0, 1, 1], [], []>} : vector<16x32xf32>, vector<32x32xf32>, vector<16x32xf32> -> vector<16x32xf32>
    %355 = vector.extract_strided_slice %350 {offsets = [0, 0], sizes = [1, 32], strides = [1, 1]} : vector<16x32xf32> to vector<1x32xf32>
    %356 = vector.shape_cast %355 : vector<1x32xf32> to vector<32xf32>
    %357 = vector.shape_cast %356 : vector<32xf32> to vector<1x32xf32>
    %358 = vector.broadcast %357 : vector<1x32xf32> to vector<16x32xf32>
    %359 = arith.addf %354, %358 : vector<16x32xf32>
    %cst_202 = arith.constant dense<0.000000e+00> : vector<16x32xf32>
    %360 = tpu.matmul %344, %346, %cst_202 {dimension_numbers = #tpu.dot_dimension_numbers<[1], [0], [0], [1], [0, 0, 1, 1], [], []>} : vector<16x32xf32>, vector<32x32xf32>, vector<16x32xf32> -> vector<16x32xf32>
    %361 = vector.extract_strided_slice %350 {offsets = [1, 0], sizes = [1, 32], strides = [1, 1]} : vector<16x32xf32> to vector<1x32xf32>
    %362 = vector.shape_cast %361 : vector<1x32xf32> to vector<32xf32>
    %363 = vector.shape_cast %362 : vector<32xf32> to vector<1x32xf32>
    %364 = vector.broadcast %363 : vector<1x32xf32> to vector<16x32xf32>
    %365 = arith.addf %360, %364 : vector<16x32xf32>
    %cst_203 = arith.constant dense<0.000000e+00> : vector<16x32xf32>
    %366 = tpu.matmul %344, %347, %cst_203 {dimension_numbers = #tpu.dot_dimension_numbers<[1], [0], [0], [1], [0, 0, 1, 1], [], []>} : vector<16x32xf32>, vector<32x32xf32>, vector<16x32xf32> -> vector<16x32xf32>
    %367 = vector.extract_strided_slice %350 {offsets = [2, 0], sizes = [1, 32], strides = [1, 1]} : vector<16x32xf32> to vector<1x32xf32>
    %368 = vector.shape_cast %367 : vector<1x32xf32> to vector<32xf32>
    %369 = vector.shape_cast %368 : vector<32xf32> to vector<1x32xf32>
    %370 = vector.broadcast %369 : vector<1x32xf32> to vector<16x32xf32>
    %371 = arith.addf %366, %370 : vector<16x32xf32>
    %372 = vector.extract_strided_slice %359 {offsets = [0, 0], sizes = [16, 8], strides = [1, 1]} : vector<16x32xf32> to vector<16x8xf32>
    %373 = vector.shape_cast %372 : vector<16x8xf32> to vector<2x8x8xf32>
    %374 = vector.extract_strided_slice %359 {offsets = [0, 8], sizes = [16, 8], strides = [1, 1]} : vector<16x32xf32> to vector<16x8xf32>
    %375 = vector.shape_cast %374 : vector<16x8xf32> to vector<2x8x8xf32>
    %376 = vector.extract_strided_slice %359 {offsets = [0, 16], sizes = [16, 8], strides = [1, 1]} : vector<16x32xf32> to vector<16x8xf32>
    %377 = vector.shape_cast %376 : vector<16x8xf32> to vector<2x8x8xf32>
    %378 = vector.extract_strided_slice %359 {offsets = [0, 24], sizes = [16, 8], strides = [1, 1]} : vector<16x32xf32> to vector<16x8xf32>
    %379 = vector.shape_cast %378 : vector<16x8xf32> to vector<2x8x8xf32>
    %380 = tpu.concatenate %373, %375, %377, %379 in 0 : vector<2x8x8xf32>, vector<2x8x8xf32>, vector<2x8x8xf32>, vector<2x8x8xf32> -> vector<8x8x8xf32>
    %381 = vector.extract_strided_slice %365 {offsets = [0, 0], sizes = [16, 8], strides = [1, 1]} : vector<16x32xf32> to vector<16x8xf32>
    %382 = vector.shape_cast %381 : vector<16x8xf32> to vector<2x8x8xf32>
    %383 = vector.extract_strided_slice %365 {offsets = [0, 8], sizes = [16, 8], strides = [1, 1]} : vector<16x32xf32> to vector<16x8xf32>
    %384 = vector.shape_cast %383 : vector<16x8xf32> to vector<2x8x8xf32>
    %385 = vector.extract_strided_slice %365 {offsets = [0, 16], sizes = [16, 8], strides = [1, 1]} : vector<16x32xf32> to vector<16x8xf32>
    %386 = vector.shape_cast %385 : vector<16x8xf32> to vector<2x8x8xf32>
    %387 = vector.extract_strided_slice %365 {offsets = [0, 24], sizes = [16, 8], strides = [1, 1]} : vector<16x32xf32> to vector<16x8xf32>
    %388 = vector.shape_cast %387 : vector<16x8xf32> to vector<2x8x8xf32>
    %389 = tpu.concatenate %382, %384, %386, %388 in 0 : vector<2x8x8xf32>, vector<2x8x8xf32>, vector<2x8x8xf32>, vector<2x8x8xf32> -> vector<8x8x8xf32>
    %390 = vector.extract_strided_slice %371 {offsets = [0, 0], sizes = [16, 8], strides = [1, 1]} : vector<16x32xf32> to vector<16x8xf32>
    %391 = vector.shape_cast %390 : vector<16x8xf32> to vector<2x8x8xf32>
    %392 = vector.extract_strided_slice %371 {offsets = [0, 8], sizes = [16, 8], strides = [1, 1]} : vector<16x32xf32> to vector<16x8xf32>
    %393 = vector.shape_cast %392 : vector<16x8xf32> to vector<2x8x8xf32>
    %394 = vector.extract_strided_slice %371 {offsets = [0, 16], sizes = [16, 8], strides = [1, 1]} : vector<16x32xf32> to vector<16x8xf32>
    %395 = vector.shape_cast %394 : vector<16x8xf32> to vector<2x8x8xf32>
    %396 = vector.extract_strided_slice %371 {offsets = [0, 24], sizes = [16, 8], strides = [1, 1]} : vector<16x32xf32> to vector<16x8xf32>
    %397 = vector.shape_cast %396 : vector<16x8xf32> to vector<2x8x8xf32>
    %398 = tpu.concatenate %391, %393, %395, %397 in 0 : vector<2x8x8xf32>, vector<2x8x8xf32>, vector<2x8x8xf32>, vector<2x8x8xf32> -> vector<8x8x8xf32>
    "tpu.trace_start"() <{level = 10 : i32, message = "gqd,gkd->gqk"}> : () -> ()
    %cst_204 = arith.constant dense<0.000000e+00> : vector<8x8x8xf32>
    %399 = tpu.matmul %380, %389, %cst_204 {dimension_numbers = #tpu.dot_dimension_numbers<[2], [2], [1], [1], [0, 0, 0, 1, 1, 1], [0], [0]>} : vector<8x8x8xf32>, vector<8x8x8xf32>, vector<8x8x8xf32> -> vector<8x8x8xf32>
    "tpu.trace_stop"() : () -> ()
    %cst_205 = arith.constant dense<0xFF800000> : vector<8x8xf32>
    %400 = vector.multi_reduction <maximumf>, %399, %cst_205 [2] : vector<8x8x8xf32> to vector<8x8xf32>
    %401 = vector.shape_cast %400 : vector<8x8xf32> to vector<8x8x1xf32>
    %402 = vector.broadcast %401 : vector<8x8x1xf32> to vector<8x8x8xf32>
    %403 = arith.subf %399, %402 : vector<8x8x8xf32>
    %404 = math.exp %403 : vector<8x8x8xf32>
    %cst_206 = arith.constant dense<0.000000e+00> : vector<8x8xf32>
    %405 = vector.multi_reduction <add>, %404, %cst_206 [2] : vector<8x8x8xf32> to vector<8x8xf32>
    %406 = vector.shape_cast %405 : vector<8x8xf32> to vector<8x8x1xf32>
    %407 = tpu.reciprocal %406 {approx = true} : vector<8x8x1xf32> -> vector<8x8x1xf32>
    %408 = vector.broadcast %407 : vector<8x8x1xf32> to vector<8x8x8xf32>
    %409 = arith.mulf %404, %408 : vector<8x8x8xf32>
    "tpu.trace_start"() <{level = 10 : i32, message = "gqk,gkd->gqd"}> : () -> ()
    %cst_207 = arith.constant dense<0.000000e+00> : vector<8x8x8xf32>
    %410 = tpu.matmul %409, %398, %cst_207 {dimension_numbers = #tpu.dot_dimension_numbers<[2], [1], [1], [2], [0, 0, 0, 1, 1, 2], [0], [0]>} : vector<8x8x8xf32>, vector<8x8x8xf32>, vector<8x8x8xf32> -> vector<8x8x8xf32>
    %cst_208 = arith.constant 0.000000e+00 : f32
    "tpu.trace_stop"() : () -> ()
    %411 = vector.broadcast %cst_208 : f32 to vector<16x32xf32>
    %412 = vector.extract_strided_slice %410 {offsets = [0, 0, 0], sizes = [2, 8, 8], strides = [1, 1, 1]} : vector<8x8x8xf32> to vector<2x8x8xf32>
    %413 = vector.shape_cast %412 : vector<2x8x8xf32> to vector<16x8xf32>
    %414 = vector.extract_strided_slice %348 {offsets = [0, 0], sizes = [8, 32], strides = [1, 1]} : vector<32x32xf32> to vector<8x32xf32>
    %cst_209 = arith.constant dense<0.000000e+00> : vector<16x32xf32>
    %415 = tpu.matmul %413, %414, %cst_209 {dimension_numbers = #tpu.dot_dimension_numbers<[1], [0], [0], [1], [0, 0, 1, 1], [], []>} : vector<16x8xf32>, vector<8x32xf32>, vector<16x32xf32> -> vector<16x32xf32>
    %416 = arith.addf %411, %415 : vector<16x32xf32>
    %417 = vector.extract_strided_slice %410 {offsets = [2, 0, 0], sizes = [2, 8, 8], strides = [1, 1, 1]} : vector<8x8x8xf32> to vector<2x8x8xf32>
    %418 = vector.shape_cast %417 : vector<2x8x8xf32> to vector<16x8xf32>
    %419 = vector.extract_strided_slice %348 {offsets = [8, 0], sizes = [8, 32], strides = [1, 1]} : vector<32x32xf32> to vector<8x32xf32>
    %cst_210 = arith.constant dense<0.000000e+00> : vector<16x32xf32>
    %420 = tpu.matmul %418, %419, %cst_210 {dimension_numbers = #tpu.dot_dimension_numbers<[1], [0], [0], [1], [0, 0, 1, 1], [], []>} : vector<16x8xf32>, vector<8x32xf32>, vector<16x32xf32> -> vector<16x32xf32>
    %421 = arith.addf %416, %420 : vector<16x32xf32>
    %422 = vector.extract_strided_slice %410 {offsets = [4, 0, 0], sizes = [2, 8, 8], strides = [1, 1, 1]} : vector<8x8x8xf32> to vector<2x8x8xf32>
    %423 = vector.shape_cast %422 : vector<2x8x8xf32> to vector<16x8xf32>
    %424 = vector.extract_strided_slice %348 {offsets = [16, 0], sizes = [8, 32], strides = [1, 1]} : vector<32x32xf32> to vector<8x32xf32>
    %cst_211 = arith.constant dense<0.000000e+00> : vector<16x32xf32>
    %425 = tpu.matmul %423, %424, %cst_211 {dimension_numbers = #tpu.dot_dimension_numbers<[1], [0], [0], [1], [0, 0, 1, 1], [], []>} : vector<16x8xf32>, vector<8x32xf32>, vector<16x32xf32> -> vector<16x32xf32>
    %426 = arith.addf %421, %425 : vector<16x32xf32>
    %427 = vector.extract_strided_slice %410 {offsets = [6, 0, 0], sizes = [2, 8, 8], strides = [1, 1, 1]} : vector<8x8x8xf32> to vector<2x8x8xf32>
    %428 = vector.shape_cast %427 : vector<2x8x8xf32> to vector<16x8xf32>
    %429 = vector.extract_strided_slice %348 {offsets = [24, 0], sizes = [8, 32], strides = [1, 1]} : vector<32x32xf32> to vector<8x32xf32>
    %cst_212 = arith.constant dense<0.000000e+00> : vector<16x32xf32>
    %430 = tpu.matmul %428, %429, %cst_212 {dimension_numbers = #tpu.dot_dimension_numbers<[1], [0], [0], [1], [0, 0, 1, 1], [], []>} : vector<16x8xf32>, vector<8x32xf32>, vector<16x32xf32> -> vector<16x32xf32>
    %431 = arith.addf %426, %430 : vector<16x32xf32>
    %432 = vector.extract_strided_slice %350 {offsets = [3, 0], sizes = [1, 32], strides = [1, 1]} : vector<16x32xf32> to vector<1x32xf32>
    %433 = vector.shape_cast %432 : vector<1x32xf32> to vector<32xf32>
    %434 = vector.shape_cast %433 : vector<32xf32> to vector<1x32xf32>
    %435 = vector.broadcast %434 : vector<1x32xf32> to vector<16x32xf32>
    %436 = arith.addf %431, %435 : vector<16x32xf32>
    %437 = arith.addf %344, %436 : vector<16x32xf32>
    %438 = vector.extract_strided_slice %350 {offsets = [5, 0], sizes = [1, 32], strides = [1, 1]} : vector<16x32xf32> to vector<1x32xf32>
    %439 = vector.shape_cast %438 : vector<1x32xf32> to vector<32xf32>
    %440 = vector.extract_strided_slice %350 {offsets = [6, 0], sizes = [1, 32], strides = [1, 1]} : vector<16x32xf32> to vector<1x32xf32>
    %441 = vector.shape_cast %440 : vector<1x32xf32> to vector<32xf32>
    %cst_213 = arith.constant dense<0.000000e+00> : vector<16xf32>
    %442 = vector.multi_reduction <add>, %437, %cst_213 [1] : vector<16x32xf32> to vector<16xf32>
    %443 = vector.shape_cast %442 : vector<16xf32> to vector<16x1xf32>
    %cst_214 = arith.constant 3.200000e+01 : f32
    %444 = vector.broadcast %cst_214 : f32 to vector<16x1xf32>
    %445 = arith.divf %443, %444 : vector<16x1xf32>
    %446 = vector.broadcast %445 : vector<16x1xf32> to vector<16x32xf32>
    %447 = arith.subf %437, %446 : vector<16x32xf32>
    %448 = arith.mulf %447, %447 : vector<16x32xf32>
    %cst_215 = arith.constant dense<0.000000e+00> : vector<16xf32>
    %449 = vector.multi_reduction <add>, %448, %cst_215 [1] : vector<16x32xf32> to vector<16xf32>
    %450 = vector.shape_cast %449 : vector<16xf32> to vector<16x1xf32>
    %cst_216 = arith.constant 3.200000e+01 : f32
    %451 = vector.broadcast %cst_216 : f32 to vector<16x1xf32>
    %452 = arith.divf %450, %451 : vector<16x1xf32>
    %453 = vector.broadcast %445 : vector<16x1xf32> to vector<16x32xf32>
    %454 = arith.subf %437, %453 : vector<16x32xf32>
    %cst_217 = arith.constant 9.99999974E-6 : f32
    %455 = vector.broadcast %cst_217 : f32 to vector<16x1xf32>
    %456 = arith.addf %452, %455 : vector<16x1xf32>
    %457 = math.rsqrt %456 : vector<16x1xf32>
    %458 = vector.broadcast %457 : vector<16x1xf32> to vector<16x32xf32>
    %459 = arith.mulf %454, %458 : vector<16x32xf32>
    %460 = vector.shape_cast %439 : vector<32xf32> to vector<1x32xf32>
    %461 = vector.broadcast %460 : vector<1x32xf32> to vector<16x32xf32>
    %462 = arith.mulf %459, %461 : vector<16x32xf32>
    %463 = vector.shape_cast %441 : vector<32xf32> to vector<1x32xf32>
    %464 = vector.broadcast %463 : vector<1x32xf32> to vector<16x32xf32>
    %465 = arith.addf %462, %464 : vector<16x32xf32>
    %cst_218 = arith.constant dense<0.000000e+00> : vector<16x64xf32>
    %466 = tpu.matmul %465, %351, %cst_218 {dimension_numbers = #tpu.dot_dimension_numbers<[1], [0], [0], [1], [0, 0, 1, 1], [], []>} : vector<16x32xf32>, vector<32x64xf32>, vector<16x64xf32> -> vector<16x64xf32>
    %467 = vector.shape_cast %353 : vector<64xf32> to vector<1x64xf32>
    %468 = vector.broadcast %467 : vector<1x64xf32> to vector<16x64xf32>
    %469 = arith.addf %466, %468 : vector<16x64xf32>
    %cst_219 = arith.constant 0.000000e+00 : f32
    %470 = vector.broadcast %cst_219 : f32 to vector<16x64xf32>
    %471 = arith.maximumf %469, %470 : vector<16x64xf32>
    %cst_220 = arith.constant dense<0.000000e+00> : vector<16x32xf32>
    %472 = tpu.matmul %471, %349, %cst_220 {dimension_numbers = #tpu.dot_dimension_numbers<[1], [0], [0], [1], [0, 0, 1, 1], [], []>} : vector<16x64xf32>, vector<64x32xf32>, vector<16x32xf32> -> vector<16x32xf32>
    %473 = vector.extract_strided_slice %350 {offsets = [4, 0], sizes = [1, 32], strides = [1, 1]} : vector<16x32xf32> to vector<1x32xf32>
    %474 = vector.shape_cast %473 : vector<1x32xf32> to vector<32xf32>
    %475 = vector.shape_cast %474 : vector<32xf32> to vector<1x32xf32>
    %476 = vector.broadcast %475 : vector<1x32xf32> to vector<16x32xf32>
    %477 = arith.addf %472, %476 : vector<16x32xf32>
    %478 = arith.addf %465, %477 : vector<16x32xf32>
    %479 = vector.extract_strided_slice %350 {offsets = [7, 0], sizes = [1, 32], strides = [1, 1]} : vector<16x32xf32> to vector<1x32xf32>
    %480 = vector.shape_cast %479 : vector<1x32xf32> to vector<32xf32>
    %481 = vector.extract_strided_slice %350 {offsets = [8, 0], sizes = [1, 32], strides = [1, 1]} : vector<16x32xf32> to vector<1x32xf32>
    %482 = vector.shape_cast %481 : vector<1x32xf32> to vector<32xf32>
    %cst_221 = arith.constant dense<0.000000e+00> : vector<16xf32>
    %483 = vector.multi_reduction <add>, %478, %cst_221 [1] : vector<16x32xf32> to vector<16xf32>
    %484 = vector.shape_cast %483 : vector<16xf32> to vector<16x1xf32>
    %cst_222 = arith.constant 3.200000e+01 : f32
    %485 = vector.broadcast %cst_222 : f32 to vector<16x1xf32>
    %486 = arith.divf %484, %485 : vector<16x1xf32>
    %487 = vector.broadcast %486 : vector<16x1xf32> to vector<16x32xf32>
    %488 = arith.subf %478, %487 : vector<16x32xf32>
    %489 = arith.mulf %488, %488 : vector<16x32xf32>
    %cst_223 = arith.constant dense<0.000000e+00> : vector<16xf32>
    %490 = vector.multi_reduction <add>, %489, %cst_223 [1] : vector<16x32xf32> to vector<16xf32>
    %491 = vector.shape_cast %490 : vector<16xf32> to vector<16x1xf32>
    %cst_224 = arith.constant 3.200000e+01 : f32
    %492 = vector.broadcast %cst_224 : f32 to vector<16x1xf32>
    %493 = arith.divf %491, %492 : vector<16x1xf32>
    %494 = vector.broadcast %486 : vector<16x1xf32> to vector<16x32xf32>
    %495 = arith.subf %478, %494 : vector<16x32xf32>
    %cst_225 = arith.constant 9.99999974E-6 : f32
    %496 = vector.broadcast %cst_225 : f32 to vector<16x1xf32>
    %497 = arith.addf %493, %496 : vector<16x1xf32>
    %498 = math.rsqrt %497 : vector<16x1xf32>
    %499 = vector.broadcast %498 : vector<16x1xf32> to vector<16x32xf32>
    %500 = arith.mulf %495, %499 : vector<16x32xf32>
    %501 = vector.shape_cast %480 : vector<32xf32> to vector<1x32xf32>
    %502 = vector.broadcast %501 : vector<1x32xf32> to vector<16x32xf32>
    %503 = arith.mulf %500, %502 : vector<16x32xf32>
    %504 = vector.shape_cast %482 : vector<32xf32> to vector<1x32xf32>
    %505 = vector.broadcast %504 : vector<1x32xf32> to vector<16x32xf32>
    %506 = arith.addf %503, %505 : vector<16x32xf32>
    %507 = vector.shape_cast %506 : vector<16x32xf32> to vector<2x8x32xf32>
    %508 = vector.extract_strided_slice %507 {offsets = [0, 7, 0], sizes = [2, 1, 32], strides = [1, 1, 1]} : vector<2x8x32xf32> to vector<2x1x32xf32>
    %509 = vector.shape_cast %508 : vector<2x1x32xf32> to vector<2x32xf32>
    %c8_226 = arith.constant 8 : index
    %c0_227 = arith.constant 0 : index
    %510 = vector.load %arg4[%c8_226, %c0_227] : memref<464x32xf32, #tpu.memory_space<vmem>>, vector<32x32xf32>
    %c40_228 = arith.constant 40 : index
    %c0_229 = arith.constant 0 : index
    %511 = vector.load %arg4[%c40_228, %c0_229] : memref<464x32xf32, #tpu.memory_space<vmem>>, vector<1x32xf32>
    %512 = vector.shape_cast %511 : vector<1x32xf32> to vector<32xf32>
    %cst_230 = arith.constant dense<0.000000e+00> : vector<2x32xf32>
    %513 = tpu.matmul %509, %510, %cst_230 {dimension_numbers = #tpu.dot_dimension_numbers<[1], [0], [0], [1], [0, 0, 1, 1], [], []>} : vector<2x32xf32>, vector<32x32xf32>, vector<2x32xf32> -> vector<2x32xf32>
    %514 = vector.shape_cast %512 : vector<32xf32> to vector<1x32xf32>
    %515 = vector.broadcast %514 : vector<1x32xf32> to vector<2x32xf32>
    %516 = arith.addf %513, %515 : vector<2x32xf32>
    %c0_231 = arith.constant 0 : index
    %c0_232 = arith.constant 0 : index
    %517 = vector.load %arg6[%c0_231, %c0_232] : memref<2x32xf32, #tpu.memory_space<vmem>>, vector<2x32xf32>
    tpu.vector_store %arg6[%c0_231, %c0_232], %516 {strides = array<i32>} : memref<2x32xf32, #tpu.memory_space<vmem>>, vector<2x32xf32>,
    return
  }
  func.func @transform_0(%arg0: i32, %arg1: memref<16xi32, #tpu.memory_space<smem>>, %arg2: memref<16xi32, #tpu.memory_space<smem>>) -> (i32, i32, i32) {
    %c0_i32 = arith.constant 0 : i32
    %c0_i32_0 = arith.constant 0 : i32
    %c0_i32_1 = arith.constant 0 : i32
    %c0_i32_2 = arith.constant 0 : i32
    return %c0_i32, %c0_i32_0, %c0_i32_1 : i32, i32, i32
  }
  func.func @transform_1(%arg0: i32, %arg1: memref<16xi32, #tpu.memory_space<smem>>, %arg2: memref<16xi32, #tpu.memory_space<smem>>) -> (i32, i32) {
    %c0_i32 = arith.constant 0 : i32
    %c0_i32_0 = arith.constant 0 : i32
    %c0_i32_1 = arith.constant 0 : i32
    return %c0_i32, %c0_i32_0 : i32, i32
  }
  func.func @transform_2(%arg0: i32, %arg1: memref<16xi32, #tpu.memory_space<smem>>, %arg2: memref<16xi32, #tpu.memory_space<smem>>) -> (i32, i32) {
    %c0_i32 = arith.constant 0 : i32
    %c0_i32_0 = arith.constant 0 : i32
    %c0_i32_1 = arith.constant 0 : i32
    return %c0_i32, %c0_i32_0 : i32, i32
  }
  func.func @transform_3(%arg0: i32, %arg1: memref<16xi32, #tpu.memory_space<smem>>, %arg2: memref<16xi32, #tpu.memory_space<smem>>) -> (i32, i32) {
    %c0_i32 = arith.constant 0 : i32
    %c0_i32_0 = arith.constant 0 : i32
    %c0_i32_1 = arith.constant 0 : i32
    return %c0_i32, %c0_i32_0 : i32, i32
  }
}

</mosaic_0001>

<bundles_post_ra>
// kernel: poker_transformer_forward.1
= control target key start
LH: loop header
LB: loop body
LE: loop exit
PB: predicated region body
PF: predicated region fallthrough
CT: control target
= control target key end

     0   :  { %s6332_s0 = inlined_call_operand.vmem [shape: s32[16], index: 0, kind: input, shape index: {}]   ;;  %s6333_s2 = inlined_call_operand.vmem [shape: f32[28,1,32], index: 2, kind: input, shape index: {}]   ;;  %s6334_s3 = inlined_call_operand.vmem [shape: f32[464,32], index: 3, kind: input, shape index: {}]   ;;  %s6335_s4 = inlined_call_operand.vmem [shape: f32[80,64], index: 4, kind: input, shape index: {}]   ;;  %s6336_s5 = inlined_call_operand.hbm [shape: f32[2,32], index: 5, kind: output, shape index: {}]   ;;  %s6337_s1 = inlined_call_operand.vmem [shape: s32[16], index: 1, kind: input, shape index: {}]  }
   0x1   :  { %s10_s20 = sshll.u32 %s6332_s0, 4  ;;  %s14_s23 = sshll.u32 %s6337_s1, 4  ;;  %s11_s20 = int_to_ptr.vmem [resolvable:$true] %s10_s20  ;;  %s15_s23 = int_to_ptr.vmem [resolvable:$true] %s14_s23 }
   0x2   :  { %s5495_s24 = scalar_lea.vmem %s11_s20, 16  ;;  %p5500_p1 = scmp.lt.s32.totalorder %s11_s20, %s11_s20 }
   0x3   :  { %p5496_p0 = scmp.ne.s32.totalorder %s11_s20, %s5495_s24  ;;  %p5501_p2 = scmp.lt.s32.totalorder %s5495_s24, %s5495_s24 }
   0x5   :  { %p5502_p3 = por %p5501_p2, %p5500_p1 }
   0x7   :  { %p5503_p4 = pnand %p5502_p3, %p5496_p0 }
   0x9   :  { %5506 = shalt.err (!%p5503_p4)  }
   0xa   :  { %s5545_s25 = smov [#allocation4]   ;;  %s5507_s26 = scalar_lea.vmem %s15_s23, 16 }
   0xb   :  { %13 = dma.vmem_to_smem %s11_s20, 16, %s5545_s25, [#allocation3] }
   0xc   :  { %p5508_p5 = scmp.ne.s32.totalorder %s15_s23, %s5507_s26  ;;  %p5512_p6 = scmp.lt.s32.totalorder %s15_s23, %s15_s23 }
   0xd   :  { %p5513_p7 = scmp.lt.s32.totalorder %s5507_s26, %s5507_s26 }
   0xf   :  { %p5514_p8 = por %p5513_p7, %p5512_p6 }
  0x11   :  { %p5515_p9 = pnand %p5514_p8, %p5508_p5 }
  0x13   :  { %5518 = shalt.err (!%p5515_p9)  }
  0x14   :  { %s5546_s0 = smov [#allocation5]  }
  0x15   :  { %17 = dma.vmem_to_smem %s15_s23, 16, %s5546_s0, [#allocation3] }
  0x16   :  { %5541 = dma.done.wait [#allocation3], 32 }
  0x17   :  { %5542 = vsyncadd [#allocation3], 4294967264 }
  0x18   :  { %19 = sfence }
  0x19   :  { %v193_v0 = vld [vmem:[%s6334_s3 + $0x30] sm:$0xff]  ;;  %v194_v1 = vld [vmem:[%s6334_s3 + $0x38] sm:$0xff]  ;;  %s5599_s7 = sld [smem:[#allocation5]]  ;;  %v195_v5 = vld [vmem:[%s6334_s3 + $0x40] sm:$0xff]  ;;  %s5618_s19 = sld [smem:[#allocation5 + $0x1]] }
  0x1a   :  { %v197_v2 = vld [vmem:[%s6334_s3 + $0x50] sm:$0xff]  ;;  %v5292_v3 = vpack.c.bf16 %v194_v1, %v193_v0  ;;  %v198_v4 = vld [vmem:[%s6334_s3 + $0x58] sm:$0xff]  ;;  %v196_v6 = vld [vmem:[%s6334_s3 + $0x48] sm:$0xff]  ;;  %s5610_s14 = sld [smem:[#allocation4]]  ;;  %s5620_s20 = sld [smem:[#allocation4 + $0x1]] }
  0x1b   :  { %v5300_v7 = vpack.c.bf16 %v198_v4, %v197_v2  ;;  %v5296_v8 = vpack.c.bf16 %v196_v6, %v195_v5  ;;  %v199_v9 = vld [vmem:[%s6334_s3 + $0x60] sm:$0xff]  ;;  %v200_v10 = vld [vmem:[%s6334_s3 + $0x68] sm:$0xff]  ;;  %s5622_s21 = sld [smem:[#allocation5 + $0x2]]  ;;  %s5626_s23 = sld [smem:[#allocation5 + $0x3]] }
  0x1c   :  { %5293 = vmatprep.subr.bf16.mxu0 %v5292_v3  ;;  %v5304_v11 = vpack.c.bf16 %v200_v10, %v199_v9  ;;  %s5624_s22 = sld [smem:[#allocation4 + $0x2]]  ;;  %s5628_s24 = sld [smem:[#allocation4 + $0x3]] }
  0x1d   :  { %5301 = vmatprep.subr.bf16.mxu1 %v5300_v7  ;;  %5295 = vmatpush3.bf16.msra.mxu0 %v5292_v3  ;;  %s5630_s25 = sld [smem:[#allocation5 + $0x4]] }
  0x1e   :  { %5303 = vmatpush3.bf16.msra.mxu1 %v5300_v7  ;;  %5297 = vmatprep.subr.bf16.mxu0 %v5296_v8  ;;  %s5632_s26 = sld [smem:[#allocation4 + $0x4]] }
  0x1f   :  { %20 = vsyncpa [#allocation7], 0  ;;  %5305 = vmatprep.subr.bf16.mxu1 %v5304_v11  ;;  %p28_p10 = scmp.eq.s32.totalorder %s5599_s7, 0  ;;  %p29_p11 = scmp.eq.s32.totalorder %s5599_s7, 1  ;;  %vm36_vm0 = vcmask 253952   ;;  %v5704_v21 = vld [vmem:[%s6334_s3] sm:$0xff]  ;;  %v224_v40 = vlaneseq }
  0x20   :  { %s5636_s0 = sld [smem:[#allocation5 + $0x5]]  ;;  %p39_p12 = scmp.eq.s32.totalorder %s5618_s19, 0  ;;  %vm228_vm1 = vcmask 261120   ;;  %v5547_v33 = vmov 0.0   ;;  %vm5548_vm2 = vmmov 0   ;;  %v201_v34 = vld [vmem:[%s6334_s3 + $0x70] sm:$0xff] }
  0x21   :  { %s5638_s1 = sld [smem:[#allocation4 + $0x5]]  ;;  %5299 = vmatpush3.bf16.msra.mxu0 %v5296_v8  ;;  %p40_p13 = scmp.eq.s32.totalorder %s5618_s19, 1  ;;  %v202_v35 = vld [vmem:[%s6334_s3 + $0x78] sm:$0xff]  ;;  %v203_v36 = vld [vmem:[%s6334_s3 + $0x80] sm:$0xff]  ;;  %v204_v38 = vld [vmem:[%s6334_s3 + $0x88] sm:$0xff]  ;;  %v5787_v41 = vshrl.u32 %v224_v40, 7 }
  0x22   :  { %s30_s27 = scalar_select %p29_p11, 4, 20  ;;  %5307 = vmatpush3.bf16.msra.mxu1 %v5304_v11  ;;  %v5308_v37 = vpack.c.bf16 %v202_v35, %v201_v34  ;;  %v5312_v39 = vpack.c.bf16 %v204_v38, %v203_v36  ;;  %v5796_v44 = vld [vmem:[%s6334_s3 + $0xf0] sm:$0xff]  ;;  %vm516_vm3 = vcmask 64512   ;;  %vm2247_vm4 = vcmask 523264  }
  0x23   :  { %s41_s28 = scalar_select %p40_p13, 4, 20  ;;  %4988 = vmatprep.subr.mxu1 %v5547_v33  ;;  %v5790_v42 = vsub.s32 0, %v5787_v41  ;;  %v312_v43 = vsub.s32 1, %v5787_v41  ;;  %v391_v63 = vsub.s32 2, %v5787_v41  ;;  %vm4554_vm5 = vcmask 1041409  }
  0x24   :  { %s6339_s27 = smov (%p28_p10, %s30_s27), 0  ;;  %p49_p0 = scmp.eq.s32.totalorder %s5622_s21, 0  ;;  %5309 = vmatprep.subr.bf16.mxu0 %v5308_v37  ;;  %vm4628_vm6 = vcmask 254976  }
  0x25   :  { %s33_s29 = sadd.s32 %s5610_s14, %s6339_s27  ;;  %p50_p1 = scmp.eq.s32.totalorder %s5622_s21, 1  ;;  %v227_v45 = vrot.slane %v5796_v44, %v5790_v42  ;;  %v313_v46 = vrot.slane %v5796_v44, %v312_v43  ;;  %v392_v2 = vrot.slane %v5796_v44, %v391_v63 }
  0x26   :  { %s34_s7 = scalar_lea.vmem %s6333_s2, %s33_s29  ;;  %s6341_s28 = smov (%p39_p12, %s41_s28), 0 }
  0x27   :  { %v35_v12 = vld [vmem:[%s34_s7] sm:$0x1]  ;;  %s51_s8 = scalar_select %p50_p1, 4, 20 }
  0x28   :  { %37 = vst.msk [vmem:[#allocation2] sm:$0x1] %vm36_vm0, %v35_v12  ;;  %s44_s9 = sadd.s32 %s5620_s20, %s6341_s28  ;;  %p59_p2 = scmp.eq.s32.totalorder %s5626_s23, 0 }
  0x29   :  { %s45_s12 = scalar_lea.vmem %s6333_s2, %s44_s9  ;;  %p60_p3 = scmp.eq.s32.totalorder %s5626_s23, 1 }
  0x2a   :  { %v46_v13 = vld [vmem:[%s45_s12] sm:$0x1]  ;;  %s6343_s8 = smov (%p49_p0, %s51_s8), 0  ;;  %p69_p4 = scmp.eq.s32.totalorder %s5630_s25, 0 }
  0x2b   :  { %47 = vst.msk [vmem:[#allocation2 + $0x1] sm:$0x1] %vm36_vm0, %v46_v13  ;;  %s61_s13 = scalar_select %p60_p3, 4, 20 }
  0x2c   :  { %s54_s14 = sadd.s32 %s5624_s22, %s6343_s8  ;;  %p70_p5 = scmp.eq.s32.totalorder %s5630_s25, 1 }
  0x2d   :  { %s55_s17 = scalar_lea.vmem %s6333_s2, %s54_s14  ;;  %s6345_s13 = smov (%p59_p2, %s61_s13), 0 }
  0x2e   :  { %v56_v14 = vld [vmem:[%s55_s17] sm:$0x1]  ;;  %s71_s18 = scalar_select %p70_p5, 4, 20 }
  0x2f   :  { %57 = vst.msk [vmem:[#allocation2 + $0x2] sm:$0x1] %vm36_vm0, %v56_v14  ;;  %s64_s19 = sadd.s32 %s5628_s24, %s6345_s13  ;;  %p79_p6 = scmp.eq.s32.totalorder %s5636_s0, 0 }
  0x30   :  { %s65_s23 = scalar_lea.vmem %s6333_s2, %s64_s19  ;;  %p80_p7 = scmp.eq.s32.totalorder %s5636_s0, 1 }
  0x31   :  { %v66_v15 = vld [vmem:[%s65_s23] sm:$0x1]  ;;  %s6347_s18 = smov (%p69_p4, %s71_s18), 0  ;;  %s4686_s25 = sld [smem:[#allocation5 + $0x6]] }
  0x32   :  { %67 = vst.msk [vmem:[#allocation2 + $0x3] sm:$0x1] %vm36_vm0, %v66_v15  ;;  %s81_s22 = scalar_select %p80_p7, 4, 20 }
  0x33   :  { %s74_s27 = sadd.s32 %s5632_s26, %s6347_s18  ;;  %s4687_s6 = sld [smem:[#allocation4 + $0x6]] }
  0x34   :  { %s75_s30 = scalar_lea.vmem %s6333_s2, %s74_s27  ;;  %s6349_s22 = smov (%p79_p6, %s81_s22), 0 }
  0x35   :  { %v76_v16 = vld [vmem:[%s75_s30] sm:$0x1]  ;;  %s4688_s24 = sld [smem:[#allocation5 + $0x7]]  ;;  %s84_s8 = sadd.s32 %s5638_s1, %s6349_s22 }
  0x36   :  { %77 = vst.msk [vmem:[#allocation2 + $0x4] sm:$0x1] %vm36_vm0, %v76_v16  ;;  %s4689_s7 = sld [smem:[#allocation4 + $0x7]]  ;;  %s4690_s0 = sld [smem:[#allocation5 + $0x8]] }
  0x37   :  { %s85_s11 = scalar_lea.vmem %s6333_s2, %s84_s8  ;;  %s5679_s12 = sld [smem:[#allocation4 + $0x8]] }
  0x38   :  { %v86_v17 = vld [vmem:[%s85_s11] sm:$0x1]  ;;  %p89_p8 = scmp.eq.s32.totalorder %s4686_s25, 0  ;;  %p90_p9 = scmp.eq.s32.totalorder %s4686_s25, 1 }
  0x39   :  { %87 = vst.msk [vmem:[#allocation2 + $0x5] sm:$0x1] %vm36_vm0, %v86_v17  ;;  %s4692_s26 = sld [smem:[#allocation5 + $0x9]]  ;;  %s4694_s28 = sld [smem:[#allocation5 + $0xa]] }
  0x3a   :  { %s5682_s13 = sld [smem:[#allocation4 + $0x9]]  ;;  %s5699_s8 = sld [smem:[#allocation4 + $0xb]] }
  0x3b   :  { %s91_s14 = scalar_select %p90_p9, 4, 20 }
  0x3c   :  { %p99_p10 = scmp.eq.s32.totalorder %s4688_s24, 0  ;;  %p100_p11 = scmp.eq.s32.totalorder %s4688_s24, 1 }
  0x3d   :  { %s6351_s14 = smov (%p89_p8, %s91_s14), 0  ;;  %p109_p12 = scmp.eq.s32.totalorder %s4690_s0, 0 }
  0x3e   :  { %s101_s1 = scalar_select %p100_p11, 4, 20 }
  0x3f   :  { %s94_s15 = sadd.s32 %s4687_s6, %s6351_s14  ;;  %p110_p13 = scmp.eq.s32.totalorder %s4690_s0, 1 }
  0x40   :  { %s95_s18 = scalar_lea.vmem %s6333_s2, %s94_s15  ;;  %s6353_s1 = smov (%p99_p10, %s101_s1), 0 }
  0x41   :  { %v96_v18 = vld [vmem:[%s95_s18] sm:$0x1]  ;;  %s111_s19 = scalar_select %p110_p13, 4, 20 }
  0x42   :  { %97 = vst.msk [vmem:[#allocation2 + $0x6] sm:$0x1] %vm36_vm0, %v96_v18  ;;  %s104_s20 = sadd.s32 %s4689_s7, %s6353_s1  ;;  %p119_p0 = scmp.eq.s32.totalorder %s4692_s26, 0 }
  0x43   :  { %s105_s22 = scalar_lea.vmem %s6333_s2, %s104_s20  ;;  %p120_p1 = scmp.eq.s32.totalorder %s4692_s26, 1 }
  0x44   :  { %v106_v19 = vld [vmem:[%s105_s22] sm:$0x1]  ;;  %s6355_s19 = smov (%p109_p12, %s111_s19), 0  ;;  %s5696_s24 = sld [smem:[#allocation4 + $0xa]] }
  0x45   :  { %107 = vst.msk [vmem:[#allocation2 + $0x7] sm:$0x1] %vm36_vm0, %v106_v19  ;;  %s121_s27 = scalar_select %p120_p1, 4, 20 }
  0x46   :  { %s114_s25 = sadd.s32 %s5679_s12, %s6355_s19  ;;  %s4696_s7 = sld [smem:[#allocation5 + $0xb]] }
  0x47   :  { %s115_s6 = scalar_lea.vmem %s6333_s2, %s114_s25  ;;  %s6357_s27 = smov (%p119_p0, %s121_s27), 0 }
  0x48   :  { %v116_v20 = vld [vmem:[%s115_s6] sm:$0x1]  ;;  %s124_s10 = sadd.s32 %s5682_s13, %s6357_s27  ;;  %s5707_s11 = sld [smem:[#allocation5 + $0xc]] }
  0x49   :  { %117 = vst.msk [vmem:[#allocation2 + $0x8] sm:$0x1] %vm36_vm0, %v116_v20  ;;  %s125_s14 = scalar_lea.vmem %s6333_s2, %s124_s10  ;;  %s5712_s1 = sld [smem:[#allocation4 + $0xc]] }
  0x4a   :  { %v126_v23 = vld [vmem:[%s125_s14] sm:$0x1]  ;;  %p129_p2 = scmp.eq.s32.totalorder %s4694_s28, 0  ;;  %p130_p3 = scmp.eq.s32.totalorder %s4694_s28, 1 }
  0x4b   :  { %127 = vst.msk [vmem:[#allocation2 + $0x9] sm:$0x1] %vm36_vm0, %v126_v23  ;;  %s5718_s13 = sld [smem:[#allocation5 + $0xd]]  ;;  %s4702_s6 = sld [smem:[#allocation5 + $0xe]] }
  0x4c   :  { %v189_v22 = vld [vmem:[#allocation2] sm:$0xff]  ;;  %s5720_s15 = sld [smem:[#allocation4 + $0xd]]  ;;  %p139_p4 = scmp.eq.s32.totalorder %s4696_s7, 0 }
  0x4d   :  { %v5715_v24 = vadd.f32 %v189_v22, %v5704_v21  ;;  %s131_s16 = scalar_select %p130_p3, 4, 20 }
  0x4e   :  { %p140_p5 = scmp.eq.s32.totalorder %s4696_s7, 1  ;;  %p149_p6 = scmp.eq.s32.totalorder %s5707_s11, 0 }
  0x4f   :  { %4963 = vmatprep.mubr.msk.f32.mxu0 %vm228_vm1, %v5715_v24  ;;  %4974 = vmatprep.mubr.msk.f32.mxu1 %vm228_vm1, %v5715_v24  ;;  %s6359_s16 = smov (%p129_p2, %s131_s16), 0  ;;  %p150_p7 = scmp.eq.s32.totalorder %s5707_s11, 1 }
  0x50   :  { %s141_s17 = scalar_select %p140_p5, 4, 20 }
  0x51   :  { %s134_s18 = sadd.s32 %s5696_s24, %s6359_s16  ;;  %p159_p8 = scmp.eq.s32.totalorder %s5718_s13, 0 }
  0x52   :  { %s135_s21 = scalar_lea.vmem %s6333_s2, %s134_s18  ;;  %s6361_s17 = smov (%p139_p4, %s141_s17), 0 }
  0x53   :  { %v136_v25 = vld [vmem:[%s135_s21] sm:$0x1]  ;;  %s151_s23 = scalar_select %p150_p7, 4, 20 }
  0x54   :  { %137 = vst.msk [vmem:[#allocation2 + $0xa] sm:$0x1] %vm36_vm0, %v136_v25  ;;  %s144_s22 = sadd.s32 %s5699_s8, %s6361_s17  ;;  %p160_p9 = scmp.eq.s32.totalorder %s5718_s13, 1 }
  0x55   :  { %s145_s28 = scalar_lea.vmem %s6333_s2, %s144_s22  ;;  %s6363_s23 = smov (%p149_p6, %s151_s23), 0 }
  0x56   :  { %v146_v26 = vld [vmem:[%s145_s28] sm:$0x1]  ;;  %s161_s29 = scalar_select %p160_p9, 4, 20 }
  0x57   :  { %147 = vst.msk [vmem:[#allocation2 + $0xb] sm:$0x1] %vm36_vm0, %v146_v26  ;;  %s154_s30 = sadd.s32 %s5712_s1, %s6363_s23  ;;  %s4704_s8 = sld [smem:[#allocation5 + $0xf]] }
  0x58   :  { %s155_s0 = scalar_lea.vmem %s6333_s2, %s154_s30  ;;  %s6365_s29 = smov (%p159_p8, %s161_s29), 0 }
  0x59   :  { %v156_v27 = vld [vmem:[%s155_s0] sm:$0x1]  ;;  %s164_s9 = sadd.s32 %s5720_s15, %s6365_s29  ;;  %s4703_s10 = sld [smem:[#allocation4 + $0xe]] }
  0x5a   :  { %157 = vst.msk [vmem:[#allocation2 + $0xc] sm:$0x1] %vm36_vm0, %v156_v27  ;;  %s165_s26 = scalar_lea.vmem %s6333_s2, %s164_s9  ;;  %p169_p10 = scmp.eq.s32.totalorder %s4702_s6, 0 }
  0x5b   :  { %v166_v28 = vld [vmem:[%s165_s26] sm:$0x1]  ;;  %p170_p11 = scmp.eq.s32.totalorder %s4702_s6, 1  ;;  %s4705_s14 = sld [smem:[#allocation4 + $0xf]] }
  0x5c   :  { %167 = vst.msk [vmem:[#allocation2 + $0xd] sm:$0x1] %vm36_vm0, %v166_v28  ;;  %s5549_s0 = smov 120   ;;  %s5551_s9 = smov 104  }
  0x5d   :  { %s171_s1 = scalar_select %p170_p11, 4, 20 }
  0x5e   :  { %p179_p12 = scmp.eq.s32.totalorder %s4704_s8, 0  ;;  %p180_p13 = scmp.eq.s32.totalorder %s4704_s8, 1 }
  0x5f   :  { %s6367_s1 = smov (%p169_p10, %s171_s1), 0  ;;  %s5550_s8 = smov 112  }
  0x60   :  { %s181_s13 = scalar_select %p180_p13, 4, 20 }
  0x61   :  { %s174_s16 = sadd.s32 %s4703_s10, %s6367_s1  ;;  %s5553_s11 = smov [#allocation6]  }
  0x62   :  { %s175_s15 = scalar_lea.vmem %s6333_s2, %s174_s16  ;;  %s6369_s13 = smov (%p179_p12, %s181_s13), 0 }
  0x63   :  { %v176_v29 = vld [vmem:[%s175_s15] sm:$0x1]  ;;  %s184_s19 = sadd.s32 %s4705_s14, %s6369_s13  ;;  %s4636_s12 = sshll.u32 %s5553_s11, 4  ;;  %s4637_s12 = int_to_ptr.vmem [resolvable:$true] %s4636_s12 }
  0x64   :  { %177 = vst.msk [vmem:[#allocation2 + $0xe] sm:$0x1] %vm36_vm0, %v176_v29  ;;  %s185_s23 = scalar_lea.vmem %s6333_s2, %s184_s19  ;;  %s5519_s26 = scalar_lea.vmem %s4637_s12, 32 }
  0x65   :  { %v186_v30 = vld [vmem:[%s185_s23] sm:$0x1]  ;;  %p5520_p0 = scmp.ne.s32.totalorder %s4637_s12, %s5519_s26  ;;  %p5524_p1 = scmp.lt.s32.totalorder %s4637_s12, %s4637_s12 }
  0x66   :  { %187 = vst.msk [vmem:[#allocation2 + $0xf] sm:$0x1] %vm36_vm0, %v186_v30  ;;  %p5525_p2 = scmp.lt.s32.totalorder %s5519_s26, %s5519_s26 }
  0x68   :  { %p5526_p3 = por %p5525_p2, %p5524_p1 }
  0x6a   :  { %p5527_p4 = pnand %p5526_p3, %p5520_p0 }
  0x6d   :  { %v190_v31 = vld [vmem:[#allocation2 + $0x8] sm:$0xff] }
  0x6e   :  { %v5759_v32 = vadd.f32 %v190_v31, %v5704_v21 }
  0x70   :  { %4964 = vmatmul.mubr.msk.f32.vlgmr.msra.gmra.mrb[0].mxu0 %vm228_vm1, %v5759_v32  ;;  %4975 = vmatmul.mubr.msk.f32.vlgmr.msra.gmra.mrb[0].mxu1 %vm228_vm1, %v5759_v32 }
  0x71   :  { %4985 = vmatprep.mubr.msk.f32.mxu0 %vm228_vm1, %v5715_v24  ;;  %4990 = vmatprep.mubr.msk.f32.mxu1 %vm5548_vm2, %v5547_v33 }
  0x72   :  { %5311 = vmatpush3.bf16.msra.mxu0 %v5308_v37 }
  0x73   :  { %5313 = vmatprep.subr.bf16.mxu0 %v5312_v39 }
  0x76   :  { %5315 = vmatpush3.bf16.msra.mxu0 %v5312_v39 }
  0x77   :  { %4998 = vmatprep.subr.mxu0 %v5547_v33 }
  0x79   :  { %4986 = vmatmul.mubr.msk.f32.vlgmr.msra.gmra.mrb[2].mxu0 %vm228_vm1, %v5759_v32 }
  0x7a   :  { %5000 = vmatprep.mubr.msk.f32.mxu0 %vm5548_vm2, %v5547_v33 }
 0x143   :  { %v4965_v47 = vpop.f32.mrb[0].mxu0  ;;  %v4976_v48 = vpop.f32.mrb[0].mxu1 }
 0x144   :  { %v301_v49 = vpop.f32.mrb[1].mxu0  ;;  %v380_v50 = vpop.f32.mrb[1].mxu1  ;;  %v386_v53 = vadd.f32 %v4976_v48, %v313_v46  ;;  %v307_v54 = vadd.f32 %v4965_v47, %v227_v45 }
 0x145   :  { %v302_v51 = vadd.f32 %v301_v49, %v227_v45  ;;  %v381_v52 = vadd.f32 %v380_v50, %v313_v46 }
 0x147   :  { %484 = vrot.lane.b32.xlu0 %v381_v52, %s5549_s0  ;;  %4989 = vmatpush3.xpose.msk.msra.mxu1 %vm516_vm3, %v381_v52 }
 0x148   :  { %470 = vrot.lane.b32.xlu1 %v302_v51, %s5549_s0  ;;  %4993 = vmatprep.subr.mxu1 %v5547_v33 }
 0x14a   :  { %4991 = vmatmul.mubr.msk.f32.vlgmr.msra.gmra.mrb[2].mxu1 %vm516_vm3, %v302_v51 }
 0x14b   :  { %486 = vrot.lane.b32.xlu0 %v386_v53, %s5549_s0  ;;  %4994 = vmatpush3.xpose.msk.msra.mxu1 %vm516_vm3, %v386_v53 }
 0x14c   :  { %472 = vrot.lane.b32.xlu1 %v307_v54, %s5549_s0  ;;  %4995 = vmatprep.mubr.msk.f32.mxu1 %vm5548_vm2, %v5547_v33  ;;  %v4987_v57 = vpop.f32.mrb[2].mxu0 }
 0x14d   :  { %5003 = vmatprep.subr.mxu1 %v5547_v33  ;;  %v459_v58 = vpop.f32.mrb[3].mxu0  ;;  %v5854_v6 = vadd.f32 %v4987_v57, %v392_v2 }
 0x14e   :  { %4996 = vmatmul.mubr.msk.f32.vlgmr.msra.gmra.mrb[4].mxu1 %vm516_vm3, %v307_v54  ;;  %v5851_v5 = vadd.f32 %v459_v58, %v392_v2 }
 0x14f   :  { %488 = vrot.lane.b32.xlu0 %v381_v52, %s5550_s8  ;;  %5005 = vmatprep.mubr.msk.f32.mxu1 %vm5548_vm2, %v5547_v33 }
 0x150   :  { %490 = vrot.lane.b32.xlu1 %v386_v53, %s5550_s8 }
 0x153   :  { %474 = vrot.lane.b32.xlu0 %v302_v51, %s5550_s8 }
 0x154   :  { %476 = vrot.lane.b32.xlu1 %v307_v54, %s5550_s8 }
 0x157   :  { %492 = vrot.lane.b32.xlu0 %v381_v52, %s5551_s9 }
 0x158   :  { %494 = vrot.lane.b32.xlu1 %v386_v53, %s5551_s9 }
 0x15b   :  { %478 = vrot.lane.b32.xlu0 %v302_v51, %s5551_s9 }
 0x15c   :  { %480 = vrot.lane.b32.xlu1 %v307_v54, %s5551_s9 }
 0x1b9   :  { %v485_v55 = vpop.permute.xlu0 %484 }
 0x1ba   :  { %v471_v56 = vpop.permute.xlu1 %470  ;;  %4999 = vmatpush3.xpose.msk.msra.mxu0 %vm516_vm3, %v485_v55 }
 0x1bb   :  { %5008 = vmatprep.subr.mxu0 %v5547_v33 }
 0x1bd   :  { %v487_v59 = vpop.permute.xlu0 %486  ;;  %5001 = vmatmul.mubr.msk.f32.vlgmr.msra.gmra.mrb[4].mxu0 %vm516_vm3, %v471_v56 }
 0x1be   :  { %v473_v60 = vpop.permute.xlu1 %472  ;;  %5004 = vmatpush3.xpose.msk.msra.mxu1 %vm516_vm3, %v487_v59  ;;  %5010 = vmatprep.mubr.msk.f32.mxu0 %vm5548_vm2, %v5547_v33 }
 0x1bf   :  { %5013 = vmatprep.subr.mxu1 %v5547_v33 }
 0x1c1   :  { %v489_v61 = vpop.permute.xlu0 %488  ;;  %5006 = vmatmul.mubr.msk.f32.vlgmr.msra.gmra.mrb[6].mxu1 %vm516_vm3, %v473_v60 }
 0x1c2   :  { %v491_v62 = vpop.permute.xlu1 %490  ;;  %5009 = vmatpush3.xpose.msk.msra.mxu0 %vm516_vm3, %v489_v61  ;;  %5015 = vmatprep.mubr.msk.f32.mxu1 %vm5548_vm2, %v5547_v33 }
 0x1c3   :  { %5014 = vmatpush3.xpose.msk.msra.mxu1 %vm516_vm3, %v491_v62  ;;  %5018 = vmatprep.subr.mxu0 %v5547_v33 }
 0x1c4   :  { %5023 = vmatprep.subr.mxu1 %v5547_v33 }
 0x1c5   :  { %v475_v0 = vpop.permute.xlu0 %474 }
 0x1c6   :  { %v477_v1 = vpop.permute.xlu1 %476  ;;  %5011 = vmatmul.mubr.msk.f32.vlgmr.msra.gmra.mrb[6].mxu0 %vm516_vm3, %v475_v0 }
 0x1c7   :  { %5016 = vmatmul.mubr.msk.f32.vlgmr.msra.gmra.mrb[8].mxu1 %vm516_vm3, %v477_v1  ;;  %5020 = vmatprep.mubr.msk.f32.mxu0 %vm5548_vm2, %v5547_v33 }
 0x1c8   :  { %5025 = vmatprep.mubr.msk.f32.mxu1 %vm5548_vm2, %v5547_v33 }
 0x1c9   :  { %v493_v3 = vpop.permute.xlu0 %492 }
 0x1ca   :  { %v495_v4 = vpop.permute.xlu1 %494  ;;  %5019 = vmatpush3.xpose.msk.msra.mxu0 %vm516_vm3, %v493_v3 }
 0x1cb   :  { %5024 = vmatpush3.xpose.msk.msra.mxu1 %vm516_vm3, %v495_v4  ;;  %5028 = vmatprep.subr.mxu0 %v5547_v33 }
 0x1cc   :  { %5033 = vmatprep.subr.mxu1 %v5547_v33 }
 0x1cd   :  { %v479_v7 = vpop.permute.xlu0 %478 }
 0x1ce   :  { %v481_v8 = vpop.permute.xlu1 %480  ;;  %5021 = vmatmul.mubr.msk.f32.vlgmr.msra.gmra.mrb[8].mxu0 %vm516_vm3, %v479_v7 }
 0x1cf   :  { %5026 = vmatmul.mubr.msk.f32.vlgmr.msra.gmra.mrb[10].mxu1 %vm516_vm3, %v481_v8  ;;  %5029 = vmatpush3.msra.mxu0 %v5851_v5 }
 0x1d0   :  { %5034 = vmatpush3.msra.mxu1 %v5854_v6  ;;  %5035 = vmatprep.mubr.msk.f32.mxu1 %vm5548_vm2, %v5547_v33 }
 0x1d1   :  { %5030 = vmatprep.mubr.msk.f32.mxu0 %vm5548_vm2, %v5547_v33  ;;  %5038 = vmatprep.subr.mxu0 %v5547_v33 }
 0x1d2   :  { %5043 = vmatprep.subr.mxu1 %v5547_v33 }
 0x21d   :  { %v587_v9 = vpop.f32.mrb[2].mxu1 }
 0x21e   :  { %v4992_v10 = vpop.f32.mrb[3].mxu1  ;;  %v1109_v11 = vsel %vm516_vm3, %v587_v9, -inf }
 0x21f   :  { %1110 = vmax.xlane.f32.xlu0 %v1109_v11 }
 0x221   :  { %v661_v12 = vpop.f32.mrb[4].mxu1 }
 0x222   :  { %v4997_v13 = vpop.f32.mrb[5].mxu1  ;;  %v1112_v14 = vsel %vm516_vm3, %v661_v12, -inf }
 0x223   :  { %1113 = vmax.xlane.f32.xlu1 %v1112_v14 }
 0x290   :  { %v735_v15 = vpop.f32.mrb[4].mxu0 }
 0x291   :  { %v5002_v16 = vpop.f32.mrb[5].mxu0  ;;  %v1115_v17 = vsel %vm516_vm3, %v735_v15, -inf }
 0x292   :  { %1116 = vmax.xlane.f32.xlu0 %v1115_v17 }
 0x294   :  { %v809_v18 = vpop.f32.mrb[6].mxu1 }
 0x295   :  { %v5007_v19 = vpop.f32.mrb[7].mxu1  ;;  %v1118_v20 = vsel %vm516_vm3, %v809_v18, -inf }
 0x296   :  { %1119 = vmax.xlane.f32.xlu0 %v1118_v20 }
 0x299   :  { %v883_v21 = vpop.f32.mrb[6].mxu0 }
 0x29a   :  { %v957_v22 = vpop.f32.mrb[8].mxu1  ;;  %v5012_v23 = vpop.f32.mrb[7].mxu0  ;;  %v1121_v25 = vsel %vm516_vm3, %v883_v21, -inf }
 0x29b   :  { %v5017_v26 = vpop.f32.mrb[9].mxu1  ;;  %1122 = vmax.xlane.f32.xlu1 %v1121_v25  ;;  %v1124_v27 = vsel %vm516_vm3, %v957_v22, -inf }
 0x29c   :  { %1125 = vmax.xlane.f32.xlu0 %v1124_v27 }
 0x2a1   :  { %v1031_v28 = vpop.f32.mrb[8].mxu0 }
 0x2a2   :  { %v1105_v29 = vpop.f32.mrb[10].mxu1  ;;  %v5022_v30 = vpop.f32.mrb[9].mxu0  ;;  %v1127_v47 = vsel %vm516_vm3, %v1031_v28, -inf }
 0x2a3   :  { %v5027_v31 = vpop.f32.mrb[11].mxu1  ;;  %v1130_v34 = vsel %vm516_vm3, %v1105_v29, -inf }
 0x2a4   :  { %1131 = vmax.xlane.f32.xlu0 %v1130_v34 }
 0x2ac   :  { %498 = vrot.lane.b32.xlu1 %v5851_v5, %s5549_s0  ;;  %v1111_v38 = vpop.xlane.xlu0 %1110 }
 0x2ad   :  { %v1133_v39 = vsub.f32 %v587_v9, %v1111_v38 }
 0x2af   :  { %v1141_v46 = vmul.f32 1.442695, %v1133_v39 }
 0x2b0   :  { %v1114_v35 = vpop.xlane.xlu1 %1113 }
 0x2b1   :  { %v1134_v36 = vsub.f32 %v661_v12, %v1114_v35 }
 0x2b3   :  { %v1143_v37 = vmul.f32 1.442695, %v1134_v36 }
 0x2b5   :  { %5415 = vpow2.f32 %v1143_v37 }
 0x2b6   :  { %5417 = vpow2.f32 %v1141_v46 }
 0x2bf   :  { %v5416_v40 = vpop.eup %5415 }
 0x2c0   :  { %v1160_v45 = vsel %vm516_vm3, %v5416_v40, 0.0  ;;  %v5418_v48 = vpop.eup %5417 }
 0x2c1   :  { %1161 = vadd.xlane.f32.xlu0 %v1160_v45  ;;  %v1157_v49 = vsel %vm516_vm3, %v5418_v48, 0.0 }
 0x2d0   :  { %1128 = vmax.xlane.f32.xlu1 %v1127_v47 }
 0x2d4   :  { %1158 = vadd.xlane.f32.xlu1 %v1157_v49 }
 0x2e5   :  { %504 = vrot.lane.b32.xlu1 %v5851_v5, %s5550_s8 }
 0x31f   :  { %v1117_v50 = vpop.xlane.xlu0 %1116 }
 0x320   :  { %v1135_v51 = vsub.f32 %v735_v15, %v1117_v50 }
 0x322   :  { %v1145_v52 = vmul.f32 1.442695, %v1135_v51 }
 0x323   :  { %v1120_v53 = vpop.xlane.xlu0 %1119 }
 0x324   :  { %5419 = vpow2.f32 %v1145_v52  ;;  %v1136_v54 = vsub.f32 %v809_v18, %v1120_v53 }
 0x326   :  { %v1147_v55 = vmul.f32 1.442695, %v1136_v54  ;;  %v206_v54 = vld [vmem:[%s6334_s3 + $0x98] sm:$0xff] }
 0x328   :  { %5421 = vpow2.f32 %v1147_v55  ;;  %v1123_v62 = vpop.xlane.xlu1 %1122  ;;  %v205_v55 = vld [vmem:[%s6334_s3 + $0x90] sm:$0xff] }
 0x329   :  { %v1126_v60 = vpop.xlane.xlu0 %1125  ;;  %v1137_v1 = vsub.f32 %v883_v21, %v1123_v62 }
 0x32a   :  { %v1138_v3 = vsub.f32 %v957_v22, %v1126_v60 }
 0x32b   :  { %v1149_v2 = vmul.f32 1.442695, %v1137_v1 }
 0x32c   :  { %v1151_v4 = vmul.f32 1.442695, %v1138_v3  ;;  %v499_v9 = vpop.permute.xlu1 %498 }
 0x32e   :  { %v5420_v56 = vpop.eup %5419 }
 0x32f   :  { %v1163_v57 = vsel %vm516_vm3, %v5420_v56, 0.0 }
 0x330   :  { %1164 = vadd.xlane.f32.xlu1 %v1163_v57 }
 0x331   :  { %v1132_v61 = vpop.xlane.xlu0 %1131 }
 0x332   :  { %v5882_v58 = vpop.eup %5421  ;;  %v1140_v7 = vsub.f32 %v1105_v29, %v1132_v61 }
 0x333   :  { %v1166_v59 = vsel %vm516_vm3, %v5882_v58, 0.0 }
 0x334   :  { %1167 = vadd.xlane.f32.xlu0 %v1166_v59  ;;  %v1155_v11 = vmul.f32 1.442695, %v1140_v7 }
 0x341   :  { %506 = vrot.lane.b32.xlu1 %v5854_v6, %s5550_s8 }
 0x34a   :  { %500 = vrot.lane.b32.xlu0 %v5854_v6, %s5549_s0 }
 0x34e   :  { %v1162_v0 = vpop.xlane.xlu0 %1161 }
 0x34f   :  { %5423 = vrcp.f32 %v1162_v0  ;;  %v207_v0 = vld [vmem:[%s6334_s3 + $0xa0] sm:$0xff] }
 0x350   :  { %5425 = vpow2.f32 %v1149_v2  ;;  %v208_v2 = vld [vmem:[%s6334_s3 + $0xa8] sm:$0xff] }
 0x351   :  { %5427 = vpow2.f32 %v1151_v4 }
 0x352   :  { %5429 = vpow2.f32 %v1155_v11 }
 0x359   :  { %v5424_v8 = vpop.eup %5423 }
 0x35a   :  { %v1190_v10 = vmul.f32 %v5424_v8, %v5416_v40  ;;  %v5426_v15 = vpop.eup %5425 }
 0x35b   :  { %v1169_v17 = vsel %vm516_vm3, %v5426_v15, 0.0  ;;  %v5428_v18 = vpop.eup %5427 }
 0x35c   :  { %5036 = vmatmul.mubr.msk.f32.vlgmr.msra.gmra.mrb[12].mxu1 %vm516_vm3, %v1190_v10  ;;  %v1172_v19 = vsel %vm516_vm3, %v5428_v18, 0.0  ;;  %v5430_v20 = vpop.eup %5429 }
 0x35d   :  { %v1129_v12 = vpop.xlane.xlu1 %1128  ;;  %5045 = vmatprep.mubr.msk.f32.mxu1 %vm5548_vm2, %v5547_v33  ;;  %v1178_v22 = vsel %vm516_vm3, %v5430_v20, 0.0 }
 0x35e   :  { %v1139_v13 = vsub.f32 %v1031_v28, %v1129_v12 }
 0x360   :  { %v1153_v14 = vmul.f32 1.442695, %v1139_v13  ;;  %v2111_v13 = vsub.s32 3, %v5787_v41 }
 0x361   :  { %v1159_v16 = vpop.xlane.xlu1 %1158 }
 0x362   :  { %5431 = vpow2.f32 %v1153_v14  ;;  %v2112_v14 = vrot.slane %v5796_v44, %v2111_v13 }
 0x363   :  { %5433 = vrcp.f32 %v1159_v16 }
 0x365   :  { %1170 = vadd.xlane.f32.xlu1 %v1169_v17  ;;  %v505_v27 = vpop.permute.xlu1 %504 }
 0x369   :  { %1173 = vadd.xlane.f32.xlu0 %v1172_v19 }
 0x36c   :  { %v5432_v21 = vpop.eup %5431 }
 0x36d   :  { %v5434_v23 = vpop.eup %5433  ;;  %1179 = vadd.xlane.f32.xlu0 %v1178_v22  ;;  %v1175_v25 = vsel %vm516_vm3, %v5432_v21, 0.0 }
 0x36e   :  { %v1189_v26 = vmul.f32 %v5434_v23, %v5418_v48  ;;  %1176 = vadd.xlane.f32.xlu1 %v1175_v25 }
 0x370   :  { %5031 = vmatmul.mubr.msk.f32.vlgmr.msra.gmra.mrb[10].mxu0 %vm516_vm3, %v1189_v26 }
 0x371   :  { %5039 = vmatpush3.msra.mxu0 %v499_v9  ;;  %5040 = vmatprep.mubr.msk.f32.mxu0 %vm5548_vm2, %v5547_v33 }
 0x372   :  { %5048 = vmatprep.subr.mxu0 %v5547_v33 }
 0x37f   :  { %512 = vrot.lane.b32.xlu1 %v5854_v6, %s5551_s9 }
 0x383   :  { %510 = vrot.lane.b32.xlu0 %v5851_v5, %s5551_s9 }
 0x3bd   :  { %v1165_v28 = vpop.xlane.xlu1 %1164 }
 0x3be   :  { %5435 = vrcp.f32 %v1165_v28 }
 0x3c1   :  { %v1168_v29 = vpop.xlane.xlu0 %1167  ;;  %v507_v6 = vpop.permute.xlu1 %506 }
 0x3c2   :  { %5437 = vrcp.f32 %v1168_v29 }
 0x3c5   :  { %v501_v30 = vpop.permute.xlu0 %500 }
 0x3c6   :  { %5044 = vmatpush3.msra.mxu1 %v501_v30 }
 0x3c7   :  { %5053 = vmatprep.subr.mxu1 %v5547_v33 }
 0x3c8   :  { %v5436_v31 = vpop.eup %5435 }
 0x3c9   :  { %v1191_v34 = vmul.f32 %v5436_v31, %v5420_v56 }
 0x3cb   :  { %5041 = vmatmul.mubr.msk.f32.vlgmr.msra.gmra.mrb[12].mxu0 %vm516_vm3, %v1191_v34 }
 0x3cc   :  { %v5438_v35 = vpop.eup %5437  ;;  %5049 = vmatpush3.msra.mxu0 %v505_v27  ;;  %5050 = vmatprep.mubr.msk.f32.mxu0 %vm5548_vm2, %v5547_v33 }
 0x3cd   :  { %v1192_v5 = vmul.f32 %v5438_v35, %v5882_v58  ;;  %5058 = vmatprep.subr.mxu0 %v5547_v33  ;;  %v220_v35 = vld [vmem:[%s6335_s4 + $0x8] sm:$0xff] }
 0x3cf   :  { %5046 = vmatmul.mubr.msk.f32.vlgmr.msra.gmra.mrb[14].mxu1 %vm516_vm3, %v1192_v5 }
 0x3d0   :  { %5054 = vmatpush3.msra.mxu1 %v507_v6  ;;  %5055 = vmatprep.mubr.msk.f32.mxu1 %vm5548_vm2, %v5547_v33  ;;  %v221_v6 = vld [vmem:[%s6335_s4 + $0x10] sm:$0xff] }
 0x3d1   :  { %5063 = vmatprep.subr.mxu1 %v5547_v33 }
 0x3f2   :  { %v1171_v36 = vpop.xlane.xlu1 %1170 }
 0x3f3   :  { %5439 = vrcp.f32 %v1171_v36  ;;  %v222_v36 = vld [vmem:[%s6335_s4 + $0x18] sm:$0xff] }
 0x3f6   :  { %v1174_v37 = vpop.xlane.xlu0 %1173 }
 0x3f7   :  { %5441 = vrcp.f32 %v1174_v37  ;;  %v5320_v37 = vpack.c.bf16 %v222_v36, %v221_v6 }
 0x3fa   :  { %v1180_v38 = vpop.xlane.xlu0 %1179 }
 0x3fb   :  { %5443 = vrcp.f32 %v1180_v38  ;;  %v1177_v39 = vpop.xlane.xlu1 %1176  ;;  %v209_v38 = vld [vmem:[%s6334_s3 + $0xb0] sm:$0xff] }
 0x3fc   :  { %5445 = vrcp.f32 %v1177_v39  ;;  %v210_v39 = vld [vmem:[%s6334_s3 + $0xb8] sm:$0xff] }
 0x3fd   :  { %v5440_v40 = vpop.eup %5439 }
 0x3fe   :  { %v1193_v45 = vmul.f32 %v5440_v40, %v5426_v15  ;;  %v511_v46 = vpop.permute.xlu0 %510  ;;  %v5324_v40 = vpack.c.bf16 %v210_v39, %v209_v38  ;;  %v2369_v38 = vld [vmem:[%s6334_s3 + $0x100] sm:$0xff]  ;;  %v2370_v39 = vld [vmem:[%s6334_s3 + $0x108] sm:$0xff] }
 0x3ff   :  { %v513_v49 = vpop.permute.xlu1 %512 }
 0x400   :  { %5051 = vmatmul.mubr.msk.f32.vlgmr.msra.gmra.mrb[14].mxu0 %vm516_vm3, %v1193_v45 }
 0x401   :  { %v5442_v47 = vpop.eup %5441  ;;  %5059 = vmatpush3.msra.mxu0 %v511_v46  ;;  %5060 = vmatprep.mubr.msk.f32.mxu0 %vm5548_vm2, %v5547_v33 }
 0x402   :  { %v1194_v48 = vmul.f32 %v5442_v47, %v5428_v18  ;;  %5068 = vmatprep.subr.mxu0 %v206_v54 }
 0x404   :  { %5056 = vmatmul.mubr.msk.f32.vlgmr.msra.gmra.mrb[16].mxu1 %vm516_vm3, %v1194_v48 }
 0x405   :  { %v5444_v50 = vpop.eup %5443  ;;  %5064 = vmatpush3.msra.mxu1 %v513_v49  ;;  %5065 = vmatprep.mubr.msk.f32.mxu1 %vm5548_vm2, %v5547_v33 }
 0x406   :  { %v5446_v51 = vpop.eup %5445  ;;  %v1196_v52 = vmul.f32 %v5444_v50, %v5430_v20 }
 0x407   :  { %v1195_v53 = vmul.f32 %v5446_v51, %v5432_v21  ;;  %v2146_v51 = vsub.s32 5, %v5787_v41 }
 0x408   :  { %5066 = vmatmul.mubr.msk.f32.vlgmr.msra.gmra.mrb[18].mxu1 %vm516_vm3, %v1196_v52  ;;  %v2152_v52 = vsub.s32 6, %v5787_v41 }
 0x409   :  { %5061 = vmatmul.mubr.msk.f32.vlgmr.msra.gmra.mrb[16].mxu0 %vm516_vm3, %v1195_v53  ;;  %v2147_v53 = vrot.slane %v5796_v44, %v2146_v51 }
 0x40a   :  { %5069 = vmatpush3.msra.mxu0 %v206_v54 }
 0x40b   :  { %5073 = vmatprep.subr.mxu0 %v205_v55 }
 0x42f   :  { %v1339_v56 = vpop.f32.mrb[12].mxu1 }
 0x430   :  { %v5037_v57 = vpop.f32.mrb[13].mxu1 }
 0x443   :  { %v1266_v58 = vpop.f32.mrb[10].mxu0 }
 0x444   :  { %v5032_v59 = vpop.f32.mrb[11].mxu0 }
 0x49e   :  { %v1412_v60 = vpop.f32.mrb[12].mxu0 }
 0x49f   :  { %v5042_v61 = vpop.f32.mrb[13].mxu0  ;;  %5070 = vmatprep.mubr.msk.f32.mxu0 %vm516_vm3, %v1412_v60 }
 0x4a0   :  { %v211_v61 = vld [vmem:[%s6334_s3 + $0xc0] sm:$0xff] }
 0x4a2   :  { %v1485_v62 = vpop.f32.mrb[14].mxu1 }
 0x4a3   :  { %v5047_v1 = vpop.f32.mrb[15].mxu1  ;;  %5071 = vmatmul.mubr.msk.f32.vlgmr.msra.gmra.mrb[18].mxu0 %vm516_vm3, %v1485_v62  ;;  %v212_v62 = vld [vmem:[%s6334_s3 + $0xc8] sm:$0xff] }
 0x4a4   :  { %5075 = vmatprep.mubr.msk.f32.mxu0 %vm516_vm3, %v1266_v58  ;;  %5074 = vmatpush3.msra.mxu0 %v205_v55 }
 0x4a5   :  { %5078 = vmatprep.subr.mxu0 %v207_v0 }
 0x4ab   :  { %5076 = vmatmul.mubr.msk.f32.vlgmr.msra.gmra.mrb[18].mxu0 %vm516_vm3, %v1339_v56  ;;  %v2153_v56 = vrot.slane %v5796_v44, %v2152_v52 }
 0x4ac   :  { %5079 = vmatpush3.msra.mxu0 %v207_v0 }
 0x4ad   :  { %5083 = vmatprep.subr.mxu0 %v208_v2 }
 0x4d3   :  { %v1558_v3 = vpop.f32.mrb[14].mxu0 }
 0x4d4   :  { %v5052_v4 = vpop.f32.mrb[15].mxu0  ;;  %5080 = vmatprep.mubr.msk.f32.mxu0 %vm516_vm3, %v1558_v3  ;;  %v213_v3 = vld [vmem:[%s6334_s3 + $0xd0] sm:$0xff] }
 0x4d5   :  { %v214_v4 = vld [vmem:[%s6334_s3 + $0xd8] sm:$0xff] }
 0x4d7   :  { %v1631_v7 = vpop.f32.mrb[16].mxu1 }
 0x4d8   :  { %v5057_v8 = vpop.f32.mrb[17].mxu1  ;;  %5081 = vmatmul.mubr.msk.f32.vlgmr.msra.gmra.mrb[18].mxu0 %vm516_vm3, %v1631_v7  ;;  %v5332_v7 = vpack.c.bf16 %v214_v4, %v213_v3  ;;  %v218_v3 = vld [vmem:[%s6334_s3 + $0xf8] sm:$0xff] }
 0x4d9   :  { %5084 = vmatpush3.msra.mxu0 %v208_v2  ;;  %v5328_v2 = vpack.c.bf16 %v212_v62, %v211_v61  ;;  %v215_v8 = vld [vmem:[%s6334_s3 + $0xe0] sm:$0xff] }
 0x4db   :  { %v1777_v9 = vpop.f32.mrb[18].mxu1 }
 0x4dc   :  { %v1704_v10 = vpop.f32.mrb[16].mxu0  ;;  %v5067_v11 = vpop.f32.mrb[19].mxu1 }
 0x4dd   :  { %v5062_v12 = vpop.f32.mrb[17].mxu0  ;;  %5085 = vmatprep.mubr.msk.f32.mxu0 %vm516_vm3, %v1704_v10  ;;  %v4744_v11 = vld [vmem:[%s6335_s4 + $0x20] ss:$0 sm:$0xff] }
 0x4e0   :  { %5086 = vmatmul.mubr.msk.f32.vlgmr.msra.gmra.mrb[18].mxu0 %vm516_vm3, %v1777_v9  ;;  %v216_v9 = vld [vmem:[%s6334_s3 + $0xe8] sm:$0xff] }
 0x4e1   :  { %v5336_v10 = vpack.c.bf16 %v216_v9, %v215_v8 }
 0x5b3   :  { %v5087_v15 = vpop.f32.mrb[18].mxu0 }
 0x5b4   :  { %v2114_v16 = vadd.f32 %v5087_v15, %v2112_v14  ;;  %v2098_v17 = vpop.f32.mrb[19].mxu0 }
 0x5b5   :  { %v2113_v18 = vadd.f32 %v2112_v14, %v2098_v17 }
 0x5b6   :  { %v2116_v19 = vadd.f32 %v2114_v16, %v5759_v32 }
 0x5b7   :  { %v2115_v20 = vadd.f32 %v2113_v18, %v5715_v24  ;;  %v219_v24 = vld [vmem:[%s6335_s4] sm:$0xff] }
 0x5b8   :  { %v2120_v21 = vsel %vm228_vm1, %v2116_v19, 0.0  ;;  %v5316_v5 = vpack.c.bf16 %v220_v35, %v219_v24 }
 0x5b9   :  { %2121 = vadd.xlane.f32.xlu1 %v2120_v21  ;;  %v2117_v22 = vsel %vm228_vm1, %v2115_v20, 0.0 }
 0x5ba   :  { %2118 = vadd.xlane.f32.xlu0 %v2117_v22  ;;  %5317 = vmatprep.subr.bf16.mxu1 %v5316_v5 }
 0x5bb   :  { %5319 = vmatpush3.bf16.msra.mxu1 %v5316_v5 }
 0x5bc   :  { %5321 = vmatprep.subr.bf16.mxu1 %v5320_v37 }
 0x5bf   :  { %5323 = vmatpush3.bf16.msra.mxu1 %v5320_v37 }
 0x5c0   :  { %5325 = vmatprep.subr.bf16.mxu1 %v5324_v40 }
 0x646   :  { %v2122_v23 = vpop.xlane.xlu1 %2121 }
 0x647   :  { %v2125_v25 = vmul.f32 0.03125, %v2122_v23  ;;  %v2119_v26 = vpop.xlane.xlu0 %2118 }
 0x648   :  { %v2124_v27 = vmul.f32 0.03125, %v2119_v26 }
 0x649   :  { %v2127_v28 = vsub.f32 %v2116_v19, %v2125_v25  ;;  %v2245_v19 = vsub.s32 4, %v5787_v41 }
 0x64a   :  { %v2126_v29 = vsub.f32 %v2115_v20, %v2124_v27 }
 0x64b   :  { %v2129_v34 = vmul.f32 %v2127_v28, %v2127_v28  ;;  %v2246_v20 = vrot.slane %v5796_v44, %v2245_v19 }
 0x64c   :  { %v2128_v30 = vmul.f32 %v2126_v29, %v2126_v29 }
 0x64d   :  { %v2133_v32 = vsel %vm228_vm1, %v2129_v34, 0.0 }
 0x64e   :  { %v2130_v31 = vsel %vm228_vm1, %v2128_v30, 0.0 }
 0x64f   :  { %2131 = vadd.xlane.f32.xlu0 %v2130_v31 }
 0x653   :  { %2134 = vadd.xlane.f32.xlu0 %v2133_v32 }
 0x6dc   :  { %v2132_v45 = vpop.xlane.xlu0 %2131 }
 0x6dd   :  { %v2136_v46 = vmul.f32 0.03125, %v2132_v45  ;;  %v2377_v45 = vld [vmem:[%s6334_s3 + $0x140] sm:$0xff] }
 0x6df   :  { %v2138_v47 = vadd.f32 1e-05, %v2136_v46  ;;  %v2378_v46 = vld [vmem:[%s6334_s3 + $0x148] sm:$0xff] }
 0x6e0   :  { %v2135_v48 = vpop.xlane.xlu0 %2134 }
 0x6e1   :  { %5447 = vrsqrt.f32 %v2138_v47  ;;  %v2137_v49 = vmul.f32 0.03125, %v2135_v48  ;;  %v5356_v47 = vpack.c.bf16 %v2378_v46, %v2377_v45  ;;  %v2371_v48 = vld [vmem:[%s6334_s3 + $0x110] sm:$0xff] }
 0x6e3   :  { %v2139_v50 = vadd.f32 1e-05, %v2137_v49  ;;  %v2372_v49 = vld [vmem:[%s6334_s3 + $0x118] sm:$0xff] }
 0x6e5   :  { %5449 = vrsqrt.f32 %v2139_v50  ;;  %v2379_v50 = vld [vmem:[%s6334_s3 + $0x150] sm:$0xff] }
 0x6eb   :  { %v5448_v54 = vpop.eup %5447 }
 0x6ec   :  { %v2142_v55 = vmul.f32 %v5448_v54, %v2126_v29  ;;  %v2380_v54 = vld [vmem:[%s6334_s3 + $0x158] sm:$0xff] }
 0x6ee   :  { %v2148_v57 = vmul.f32 %v2147_v53, %v2142_v55  ;;  %v5360_v55 = vpack.c.bf16 %v2380_v54, %v2379_v50 }
 0x6ef   :  { %v5450_v58 = vpop.eup %5449 }
 0x6f0   :  { %v2143_v59 = vmul.f32 %v5450_v58, %v2127_v28  ;;  %v2154_v60 = vadd.f32 %v2153_v56, %v2148_v57  ;;  %v2374_v57 = vld [vmem:[%s6334_s3 + $0x128] sm:$0xff] }
 0x6f2   :  { %v2149_v0 = vmul.f32 %v2147_v53, %v2143_v59  ;;  %5096 = vmatprep.mubr.msk.f32.mxu1 %vm228_vm1, %v2154_v60  ;;  %v5344_v53 = vpack.c.bf16 %v2372_v49, %v2371_v48 }
 0x6f4   :  { %v2155_v1 = vadd.f32 %v2153_v56, %v2149_v0  ;;  %v2373_v56 = vld [vmem:[%s6334_s3 + $0x120] sm:$0xff] }
 0x6f5   :  { %v5348_v58 = vpack.c.bf16 %v2374_v57, %v2373_v56 }
 0x6f6   :  { %5097 = vmatmul.mubr.msk.f32.vlgmr.msra.gmra.mrb[20].mxu1 %vm228_vm1, %v2155_v1 }
 0x6f7   :  { %5327 = vmatpush3.bf16.msra.mxu1 %v5324_v40  ;;  %v5340_v40 = vpack.c.bf16 %v2370_v39, %v2369_v38 }
 0x6f8   :  { %5329 = vmatprep.subr.bf16.mxu1 %v5328_v2 }
 0x6f9   :  { %5341 = vmatprep.subr.bf16.mxu0 %v5340_v40 }
 0x6fa   :  { %5343 = vmatpush3.bf16.msra.mxu0 %v5340_v40 }
 0x6fb   :  { %5331 = vmatpush3.bf16.msra.mxu1 %v5328_v2  ;;  %5345 = vmatprep.subr.bf16.mxu0 %v5344_v53  ;;  %v2359_v2 = vsub.s32 7, %v5787_v41  ;;  %v4792_v41 = vld [vmem:[%s6334_s3 + $0x28] ss:$0 sm:$0xff] }
 0x6fc   :  { %5333 = vmatprep.subr.bf16.mxu1 %v5332_v7 }
 0x6fd   :  { %v2360_v4 = vrot.slane %v5796_v44, %v2359_v2 }
 0x6fe   :  { %5347 = vmatpush3.bf16.msra.mxu0 %v5344_v53 }
 0x6ff   :  { %5335 = vmatpush3.bf16.msra.mxu1 %v5332_v7  ;;  %5349 = vmatprep.subr.bf16.mxu0 %v5348_v58 }
 0x700   :  { %5337 = vmatprep.subr.bf16.mxu1 %v5336_v10 }
 0x703   :  { %5339 = vmatpush3.bf16.msra.mxu1 %v5336_v10 }
 0x704   :  { %5357 = vmatprep.subr.bf16.mxu1 %v5356_v47 }
 0x7c9   :  { %v5098_v12 = vpop.f32.mrb[20].mxu1 }
 0x7ca   :  { %v2238_v14 = vadd.f32 %v5098_v12, %v4744_v11  ;;  %v2232_v15 = vpop.f32.mrb[21].mxu1 }
 0x7cb   :  { %v2233_v16 = vadd.f32 %v4744_v11, %v2232_v15  ;;  %v2366_v11 = vrot.slane %v218_v3, %v5790_v42  ;;  %v2375_v15 = vld [vmem:[%s6334_s3 + $0x130] sm:$0xff] }
 0x7cc   :  { %v2242_v18 = vmax.f32 %v2238_v14, 0.0 }
 0x7cd   :  { %v2241_v17 = vmax.f32 %v2233_v16, 0.0  ;;  %v2376_v16 = vld [vmem:[%s6334_s3 + $0x138] sm:$0xff] }
 0x7ce   :  { %v5352_v44 = vpack.c.bf16 %v2376_v16, %v2375_v15 }
 0x7cf   :  { %5115 = vmatprep.mubr.msk.f32.mxu1 %vm2247_vm4, %v2241_v17 }
 0x7d0   :  { %5116 = vmatmul.mubr.msk.f32.vlgmr.msra.gmra.mrb[22].mxu1 %vm2247_vm4, %v2242_v18 }
 0x7d1   :  { %5359 = vmatpush3.bf16.msra.mxu1 %v5356_v47 }
 0x7d2   :  { %5361 = vmatprep.subr.bf16.mxu1 %v5360_v55 }
 0x7d5   :  { %5363 = vmatpush3.bf16.msra.mxu1 %v5360_v55 }
 0x7d6   :  { %5156 = vmatprep.subr.mxu1 %v5547_v33 }
 0x8a3   :  { %v5117_v21 = vpop.f32.mrb[22].mxu1 }
 0x8a4   :  { %v2326_v22 = vadd.f32 %v5117_v21, %v2246_v20  ;;  %v2320_v23 = vpop.f32.mrb[23].mxu1 }
 0x8a5   :  { %v2321_v25 = vadd.f32 %v2320_v23, %v2246_v20  ;;  %v6081_v20 = vld [vmem:[%s6334_s3 + $0x1c0] sm:$0xff] }
 0x8a6   :  { %v2330_v26 = vadd.f32 %v2326_v22, %v2155_v1  ;;  %v2403_v21 = vrot.slane %v6081_v20, %v5790_v42  ;;  %v2567_v38 = vrot.slane %v6081_v20, %v391_v63 }
 0x8a7   :  { %v2329_v27 = vadd.f32 %v2321_v25, %v2154_v60 }
 0x8a8   :  { %v2334_v28 = vsel %vm228_vm1, %v2330_v26, 0.0 }
 0x8a9   :  { %2335 = vadd.xlane.f32.xlu0 %v2334_v28  ;;  %v2331_v29 = vsel %vm228_vm1, %v2329_v27, 0.0  ;;  %v2488_v28 = vrot.slane %v6081_v20, %v312_v43 }
 0x8aa   :  { %2332 = vadd.xlane.f32.xlu1 %v2331_v29 }
 0x936   :  { %v2336_v30 = vpop.xlane.xlu0 %2335 }
 0x937   :  { %v2338_v31 = vmul.f32 0.03125, %v2336_v30  ;;  %v2333_v34 = vpop.xlane.xlu1 %2332 }
 0x938   :  { %v2337_v32 = vmul.f32 0.03125, %v2333_v34 }
 0x939   :  { %v2340_v24 = vsub.f32 %v2330_v26, %v2338_v31 }
 0x93a   :  { %v2339_v35 = vsub.f32 %v2329_v27, %v2337_v32 }
 0x93b   :  { %v2342_v5 = vmul.f32 %v2340_v24, %v2340_v24 }
 0x93c   :  { %v2341_v6 = vmul.f32 %v2339_v35, %v2339_v35 }
 0x93d   :  { %v2346_v36 = vsel %vm228_vm1, %v2342_v5, 0.0 }
 0x93e   :  { %2347 = vadd.xlane.f32.xlu0 %v2346_v36  ;;  %v2343_v37 = vsel %vm228_vm1, %v2341_v6, 0.0 }
 0x93f   :  { %2344 = vadd.xlane.f32.xlu1 %v2343_v37 }
 0x9cb   :  { %v2348_v59 = vpop.xlane.xlu0 %2347 }
 0x9cc   :  { %v2350_v60 = vmul.f32 0.03125, %v2348_v59  ;;  %v2345_v61 = vpop.xlane.xlu1 %2344 }
 0x9cd   :  { %v2349_v62 = vmul.f32 0.03125, %v2345_v61 }
 0x9ce   :  { %v2352_v0 = vadd.f32 1e-05, %v2350_v60 }
 0x9cf   :  { %v2351_v1 = vadd.f32 1e-05, %v2349_v62 }
 0x9d0   :  { %5451 = vrsqrt.f32 %v2352_v0 }
 0x9d1   :  { %5453 = vrsqrt.f32 %v2351_v1 }
 0x9da   :  { %v5452_v7 = vpop.eup %5451 }
 0x9db   :  { %v5454_v8 = vpop.eup %5453  ;;  %v2356_v9 = vmul.f32 %v5452_v7, %v2340_v24 }
 0x9dc   :  { %v2355_v10 = vmul.f32 %v5454_v8, %v2339_v35 }
 0x9dd   :  { %v2362_v12 = vmul.f32 %v2360_v4, %v2356_v9 }
 0x9de   :  { %v2361_v14 = vmul.f32 %v2360_v4, %v2355_v10 }
 0x9df   :  { %v6059_v18 = vadd.f32 %v2366_v11, %v2362_v12 }
 0x9e0   :  { %v6057_v17 = vadd.f32 %v2366_v11, %v2361_v14 }
 0x9e2   :  { %5126 = vmatprep.mubr.msk.f32.mxu0 %vm228_vm1, %v6057_v17  ;;  %5148 = vmatprep.mubr.msk.f32.mxu1 %vm228_vm1, %v6057_v17 }
 0x9e3   :  { %5127 = vmatmul.mubr.msk.f32.vlgmr.msra.gmra.mrb[20].mxu0 %vm228_vm1, %v6059_v18  ;;  %5149 = vmatmul.mubr.msk.f32.vlgmr.msra.gmra.mrb[24].mxu1 %vm228_vm1, %v6059_v18 }
 0x9e4   :  { %5351 = vmatpush3.bf16.msra.mxu0 %v5348_v58  ;;  %5137 = vmatprep.mubr.msk.f32.mxu0 %vm228_vm1, %v6057_v17 }
 0x9e5   :  { %5353 = vmatprep.subr.bf16.mxu0 %v5352_v44  ;;  %5158 = vmatprep.mubr.msk.f32.mxu1 %vm5548_vm2, %v5547_v33 }
 0x9e8   :  { %5355 = vmatpush3.bf16.msra.mxu0 %v5352_v44 }
 0x9e9   :  { %5151 = vmatprep.subr.mxu0 %v5547_v33 }
 0x9eb   :  { %5138 = vmatmul.mubr.msk.f32.vlgmr.msra.gmra.mrb[22].mxu0 %vm228_vm1, %v6059_v18 }
 0x9ec   :  { %5153 = vmatprep.mubr.msk.f32.mxu0 %vm5548_vm2, %v5547_v33 }
 0xab6   :  { %v5128_v22 = vpop.f32.mrb[20].mxu0  ;;  %v6085_v23 = vpop.f32.mrb[24].mxu1 }
 0xab7   :  { %v2476_v25 = vpop.f32.mrb[21].mxu0  ;;  %v2634_v26 = vpop.f32.mrb[25].mxu1  ;;  %v2482_v32 = vadd.f32 %v5128_v22, %v2403_v21  ;;  %v6147_v63 = vadd.f32 %v6085_v23, %v2567_v38 }
 0xab8   :  { %v2477_v27 = vadd.f32 %v2476_v25, %v2403_v21  ;;  %v6137_v45 = vadd.f32 %v2634_v26, %v2567_v38 }
 0xaba   :  { %2645 = vrot.lane.b32.xlu1 %v2477_v27, %s5549_s0 }
 0xabe   :  { %v5139_v29 = vpop.f32.mrb[22].mxu0 }
 0xabf   :  { %v2561_v30 = vadd.f32 %v5139_v29, %v2488_v28  ;;  %v2555_v31 = vpop.f32.mrb[23].mxu0 }
 0xac0   :  { %v2556_v34 = vadd.f32 %v2555_v31, %v2488_v28 }
 0xac1   :  { %2661 = vrot.lane.b32.xlu0 %v2561_v30, %s5549_s0  ;;  %5157 = vmatpush3.xpose.msk.msra.mxu1 %vm516_vm3, %v2561_v30 }
 0xac2   :  { %5152 = vmatpush3.xpose.msk.msra.mxu0 %vm516_vm3, %v2556_v34  ;;  %2659 = vrot.lane.b32.xlu1 %v2556_v34, %s5549_s0 }
 0xac3   :  { %5166 = vmatprep.subr.mxu1 %v5547_v33  ;;  %5161 = vmatprep.subr.mxu0 %v5547_v33 }
 0xac4   :  { %5159 = vmatmul.mubr.msk.f32.vlgmr.msra.gmra.mrb[26].mxu1 %vm516_vm3, %v2482_v32 }
 0xac5   :  { %2663 = vrot.lane.b32.xlu0 %v2556_v34, %s5550_s8  ;;  %5154 = vmatmul.mubr.msk.f32.vlgmr.msra.gmra.mrb[24].mxu0 %vm516_vm3, %v2477_v27 }
 0xac6   :  { %2647 = vrot.lane.b32.xlu1 %v2482_v32, %s5549_s0  ;;  %5163 = vmatprep.mubr.msk.f32.mxu0 %vm5548_vm2, %v5547_v33 }
 0xac7   :  { %5168 = vmatprep.mubr.msk.f32.mxu1 %vm5548_vm2, %v5547_v33 }
 0xac9   :  { %2649 = vrot.lane.b32.xlu0 %v2477_v27, %s5550_s8 }
 0xaca   :  { %2665 = vrot.lane.b32.xlu1 %v2561_v30, %s5550_s8 }
 0xacd   :  { %2667 = vrot.lane.b32.xlu0 %v2556_v34, %s5551_s9 }
 0xace   :  { %2651 = vrot.lane.b32.xlu1 %v2482_v32, %s5550_s8 }
 0xad1   :  { %2653 = vrot.lane.b32.xlu0 %v2477_v27, %s5551_s9 }
 0xad2   :  { %2669 = vrot.lane.b32.xlu1 %v2561_v30, %s5551_s9 }
 0xad6   :  { %2655 = vrot.lane.b32.xlu1 %v2482_v32, %s5551_s9 }
 0xb2c   :  { %v2646_v43 = vpop.permute.xlu1 %2645 }
 0xb33   :  { %v2662_v24 = vpop.permute.xlu0 %2661 }
 0xb34   :  { %5167 = vmatpush3.xpose.msk.msra.mxu1 %vm516_vm3, %v2662_v24  ;;  %v2660_v35 = vpop.permute.xlu1 %2659 }
 0xb35   :  { %5162 = vmatpush3.xpose.msk.msra.mxu0 %vm516_vm3, %v2660_v35  ;;  %5176 = vmatprep.subr.mxu1 %v5547_v33 }
 0xb36   :  { %5171 = vmatprep.subr.mxu0 %v5547_v33 }
 0xb37   :  { %v2664_v5 = vpop.permute.xlu0 %2663 }
 0xb38   :  { %v2648_v6 = vpop.permute.xlu1 %2647  ;;  %5164 = vmatmul.mubr.msk.f32.vlgmr.msra.gmra.mrb[26].mxu0 %vm516_vm3, %v2646_v43 }
 0xb39   :  { %5169 = vmatmul.mubr.msk.f32.vlgmr.msra.gmra.mrb[28].mxu1 %vm516_vm3, %v2648_v6  ;;  %5172 = vmatpush3.xpose.msk.msra.mxu0 %vm516_vm3, %v2664_v5 }
 0xb3a   :  { %5173 = vmatprep.mubr.msk.f32.mxu0 %vm5548_vm2, %v5547_v33  ;;  %5181 = vmatprep.subr.mxu0 %v5547_v33 }
 0xb3b   :  { %v2650_v36 = vpop.permute.xlu0 %2649  ;;  %5178 = vmatprep.mubr.msk.f32.mxu1 %vm5548_vm2, %v5547_v33 }
 0xb3c   :  { %v2666_v37 = vpop.permute.xlu1 %2665  ;;  %5174 = vmatmul.mubr.msk.f32.vlgmr.msra.gmra.mrb[28].mxu0 %vm516_vm3, %v2650_v36 }
 0xb3d   :  { %5177 = vmatpush3.xpose.msk.msra.mxu1 %vm516_vm3, %v2666_v37  ;;  %5183 = vmatprep.mubr.msk.f32.mxu0 %vm5548_vm2, %v5547_v33 }
 0xb3e   :  { %5186 = vmatprep.subr.mxu1 %v5547_v33 }
 0xb3f   :  { %v2668_v39 = vpop.permute.xlu0 %2667 }
 0xb40   :  { %v2652_v40 = vpop.permute.xlu1 %2651  ;;  %5182 = vmatpush3.xpose.msk.msra.mxu0 %vm516_vm3, %v2668_v39 }
 0xb41   :  { %5179 = vmatmul.mubr.msk.f32.vlgmr.msra.gmra.mrb[30].mxu1 %vm516_vm3, %v2652_v40  ;;  %5191 = vmatprep.subr.mxu0 %v5547_v33 }
 0xb42   :  { %5188 = vmatprep.mubr.msk.f32.mxu1 %vm5548_vm2, %v5547_v33 }
 0xb43   :  { %v2654_v46 = vpop.permute.xlu0 %2653 }
 0xb44   :  { %v2670_v47 = vpop.permute.xlu1 %2669  ;;  %5184 = vmatmul.mubr.msk.f32.vlgmr.msra.gmra.mrb[30].mxu0 %vm516_vm3, %v2654_v46 }
 0xb45   :  { %5192 = vmatpush3.msra.mxu0 %v6137_v45  ;;  %5187 = vmatpush3.xpose.msk.msra.mxu1 %vm516_vm3, %v2670_v47 }
 0xb46   :  { %5196 = vmatprep.subr.mxu1 %v5547_v33  ;;  %5193 = vmatprep.mubr.msk.f32.mxu0 %vm5548_vm2, %v5547_v33 }
 0xb47   :  { %5201 = vmatprep.subr.mxu0 %v5547_v33 }
 0xb48   :  { %v2656_v48 = vpop.permute.xlu1 %2655 }
 0xb49   :  { %5189 = vmatmul.mubr.msk.f32.vlgmr.msra.gmra.mrb[32].mxu1 %vm516_vm3, %v2656_v48 }
 0xb4a   :  { %5197 = vmatpush3.msra.mxu1 %v6147_v63  ;;  %5198 = vmatprep.mubr.msk.f32.mxu1 %vm5548_vm2, %v5547_v33 }
 0xb4b   :  { %5206 = vmatprep.subr.mxu1 %v5547_v33 }
 0xb97   :  { %v2835_v49 = vpop.f32.mrb[26].mxu1 }
 0xb98   :  { %v2761_v50 = vpop.f32.mrb[24].mxu0  ;;  %v5160_v53 = vpop.f32.mrb[27].mxu1  ;;  %v3286_v54 = vsel %vm516_vm3, %v2835_v49, -inf }
 0xb99   :  { %3287 = vmax.xlane.f32.xlu1 %v3286_v54  ;;  %v5155_v55 = vpop.f32.mrb[25].mxu0  ;;  %v3283_v56 = vsel %vm516_vm3, %v2761_v50, -inf }
 0xb9a   :  { %3284 = vmax.xlane.f32.xlu0 %v3283_v56 }
 0xc0b   :  { %v2909_v57 = vpop.f32.mrb[26].mxu0 }
 0xc0c   :  { %v5165_v58 = vpop.f32.mrb[27].mxu0  ;;  %v2983_v59 = vpop.f32.mrb[28].mxu1  ;;  %v3289_v60 = vsel %vm516_vm3, %v2909_v57, -inf }
 0xc0d   :  { %v5170_v61 = vpop.f32.mrb[29].mxu1  ;;  %3290 = vmax.xlane.f32.xlu0 %v3289_v60  ;;  %v3292_v1 = vsel %vm516_vm3, %v2983_v59, -inf }
 0xc0f   :  { %v3057_v62 = vpop.f32.mrb[28].mxu0 }
 0xc10   :  { %v5175_v0 = vpop.f32.mrb[29].mxu0  ;;  %v3295_v3 = vsel %vm516_vm3, %v3057_v62, -inf }
 0xc11   :  { %3293 = vmax.xlane.f32.xlu0 %v3292_v1  ;;  %3296 = vmax.xlane.f32.xlu1 %v3295_v3 }
 0xc14   :  { %v3131_v4 = vpop.f32.mrb[30].mxu1 }
 0xc15   :  { %v5180_v7 = vpop.f32.mrb[31].mxu1  ;;  %v3298_v8 = vsel %vm516_vm3, %v3131_v4, -inf }
 0xc16   :  { %3299 = vmax.xlane.f32.xlu0 %v3298_v8 }
 0xc17   :  { %v3205_v9 = vpop.f32.mrb[30].mxu0 }
 0xc18   :  { %v5185_v10 = vpop.f32.mrb[31].mxu0  ;;  %v3301_v27 = vsel %vm516_vm3, %v3205_v9, -inf }
 0xc1c   :  { %v3279_v11 = vpop.f32.mrb[32].mxu1 }
 0xc1d   :  { %v5190_v12 = vpop.f32.mrb[33].mxu1  ;;  %v3304_v14 = vsel %vm516_vm3, %v3279_v11, -inf }
 0xc1e   :  { %3305 = vmax.xlane.f32.xlu0 %v3304_v14 }
 0xc22   :  { %2673 = vrot.lane.b32.xlu1 %v6137_v45, %s5549_s0 }
 0xc26   :  { %v3288_v15 = vpop.xlane.xlu1 %3287 }
 0xc27   :  { %v3308_v16 = vsub.f32 %v2835_v49, %v3288_v15  ;;  %v3285_v21 = vpop.xlane.xlu0 %3284 }
 0xc28   :  { %v3307_v22 = vsub.f32 %v2761_v50, %v3285_v21 }
 0xc29   :  { %v3317_v44 = vmul.f32 1.442695, %v3308_v16 }
 0xc2a   :  { %v3315_v26 = vmul.f32 1.442695, %v3307_v22 }
 0xc2b   :  { %5455 = vpow2.f32 %v3317_v44 }
 0xc2c   :  { %5457 = vpow2.f32 %v3315_v26 }
 0xc35   :  { %v5456_v23 = vpop.eup %5455 }
 0xc36   :  { %v3334_v25 = vsel %vm516_vm3, %v5456_v23, 0.0  ;;  %v5458_v28 = vpop.eup %5457 }
 0xc37   :  { %3335 = vadd.xlane.f32.xlu0 %v3334_v25  ;;  %v3331_v29 = vsel %vm516_vm3, %v5458_v28, 0.0 }
 0xc46   :  { %3302 = vmax.xlane.f32.xlu1 %v3301_v27 }
 0xc4a   :  { %3332 = vadd.xlane.f32.xlu1 %v3331_v29 }
 0xc5b   :  { %2679 = vrot.lane.b32.xlu1 %v6137_v45, %s5550_s8 }
 0xc9a   :  { %v3291_v30 = vpop.xlane.xlu0 %3290 }
 0xc9b   :  { %v3309_v31 = vsub.f32 %v2909_v57, %v3291_v30 }
 0xc9d   :  { %v3319_v34 = vmul.f32 1.442695, %v3309_v31 }
 0xc9e   :  { %v3294_v32 = vpop.xlane.xlu0 %3293  ;;  %v3297_v40 = vpop.xlane.xlu1 %3296 }
 0xc9f   :  { %5459 = vpow2.f32 %v3319_v34  ;;  %v3310_v43 = vsub.f32 %v2983_v59, %v3294_v32  ;;  %v3311_v46 = vsub.f32 %v3057_v62, %v3297_v40 }
 0xca1   :  { %v3321_v24 = vmul.f32 1.442695, %v3310_v43  ;;  %v3323_v47 = vmul.f32 1.442695, %v3311_v46 }
 0xca2   :  { %v2674_v50 = vpop.permute.xlu1 %2673 }
 0xca3   :  { %5461 = vpow2.f32 %v3321_v24  ;;  %v3300_v37 = vpop.xlane.xlu0 %3299 }
 0xca4   :  { %v3312_v48 = vsub.f32 %v3131_v4, %v3300_v37 }
 0xca6   :  { %v3325_v54 = vmul.f32 1.442695, %v3312_v48  ;;  %v2383_v48 = vld [vmem:[%s6334_s3 + $0x170] sm:$0xff] }
 0xca9   :  { %v5460_v35 = vpop.eup %5459 }
 0xcaa   :  { %v3337_v5 = vsel %vm516_vm3, %v5460_v35, 0.0 }
 0xcab   :  { %3338 = vadd.xlane.f32.xlu1 %v3337_v5  ;;  %v3306_v38 = vpop.xlane.xlu0 %3305  ;;  %v2382_v5 = vld [vmem:[%s6334_s3 + $0x168] sm:$0xff] }
 0xcac   :  { %v3314_v55 = vsub.f32 %v3279_v11, %v3306_v38 }
 0xcad   :  { %v6169_v6 = vpop.eup %5461 }
 0xcae   :  { %v3340_v36 = vsel %vm516_vm3, %v6169_v6, 0.0  ;;  %v3329_v58 = vmul.f32 1.442695, %v3314_v55 }
 0xcaf   :  { %3341 = vadd.xlane.f32.xlu0 %v3340_v36 }
 0xcbc   :  { %2681 = vrot.lane.b32.xlu1 %v6147_v63, %s5550_s8 }
 0xcc4   :  { %v3336_v39 = vpop.xlane.xlu0 %3335 }
 0xcc5   :  { %5463 = vrcp.f32 %v3336_v39  ;;  %2675 = vrot.lane.b32.xlu0 %v6147_v63, %s5549_s0 }
 0xcc6   :  { %5465 = vpow2.f32 %v3323_v47 }
 0xcc7   :  { %5467 = vpow2.f32 %v3325_v54 }
 0xccf   :  { %v5464_v49 = vpop.eup %5463 }
 0xcd0   :  { %v3364_v53 = vmul.f32 %v5464_v49, %v5456_v23  ;;  %v5466_v61 = vpop.eup %5465 }
 0xcd1   :  { %v3343_v62 = vsel %vm516_vm3, %v5466_v61, 0.0  ;;  %v5468_v0 = vpop.eup %5467 }
 0xcd2   :  { %5199 = vmatmul.mubr.msk.f32.vlgmr.msra.gmra.mrb[34].mxu1 %vm516_vm3, %v3364_v53  ;;  %v3346_v4 = vsel %vm516_vm3, %v5468_v0, 0.0 }
 0xcd3   :  { %v3303_v56 = vpop.xlane.xlu1 %3302  ;;  %5208 = vmatprep.mubr.msk.f32.mxu1 %vm5548_vm2, %v5547_v33 }
 0xcd4   :  { %v3313_v57 = vsub.f32 %v3205_v9, %v3303_v56 }
 0xcd6   :  { %v3327_v59 = vmul.f32 1.442695, %v3313_v57 }
 0xcd7   :  { %v3333_v60 = vpop.xlane.xlu1 %3332 }
 0xcd8   :  { %5469 = vpow2.f32 %v3327_v59 }
 0xcd9   :  { %5471 = vrcp.f32 %v3333_v60 }
 0xcda   :  { %5473 = vpow2.f32 %v3329_v58 }
 0xcdb   :  { %v2680_v11 = vpop.permute.xlu1 %2679 }
 0xce0   :  { %3344 = vadd.xlane.f32.xlu1 %v3343_v62 }
 0xce2   :  { %v5470_v1 = vpop.eup %5469 }
 0xce3   :  { %v5472_v3 = vpop.eup %5471  ;;  %v3349_v7 = vsel %vm516_vm3, %v5470_v1, 0.0 }
 0xce4   :  { %v5474_v8 = vpop.eup %5473  ;;  %v3363_v9 = vmul.f32 %v5472_v3, %v5458_v28  ;;  %3347 = vadd.xlane.f32.xlu0 %v3346_v4  ;;  %3350 = vadd.xlane.f32.xlu1 %v3349_v7 }
 0xce5   :  { %v3352_v10 = vsel %vm516_vm3, %v5474_v8, 0.0 }
 0xce6   :  { %5194 = vmatmul.mubr.msk.f32.vlgmr.msra.gmra.mrb[32].mxu0 %vm516_vm3, %v3363_v9 }
 0xce7   :  { %5202 = vmatpush3.msra.mxu0 %v2674_v50  ;;  %5203 = vmatprep.mubr.msk.f32.mxu0 %vm5548_vm2, %v5547_v33  ;;  %v2384_v50 = vld [vmem:[%s6334_s3 + $0x178] sm:$0xff] }
 0xce8   :  { %3353 = vadd.xlane.f32.xlu0 %v3352_v10  ;;  %5211 = vmatprep.subr.mxu0 %v5547_v33 }
 0xcf5   :  { %2687 = vrot.lane.b32.xlu1 %v6147_v63, %s5551_s9 }
 0xcfe   :  { %2685 = vrot.lane.b32.xlu0 %v6137_v45, %s5551_s9 }
 0xd38   :  { %v3339_v12 = vpop.xlane.xlu1 %3338 }
 0xd39   :  { %5475 = vrcp.f32 %v3339_v12 }
 0xd3c   :  { %v3342_v14 = vpop.xlane.xlu0 %3341  ;;  %v2682_v63 = vpop.permute.xlu1 %2681 }
 0xd3d   :  { %5477 = vrcp.f32 %v3342_v14 }
 0xd40   :  { %v2676_v15 = vpop.permute.xlu0 %2675 }
 0xd41   :  { %5207 = vmatpush3.msra.mxu1 %v2676_v15 }
 0xd42   :  { %5216 = vmatprep.subr.mxu1 %v5547_v33 }
 0xd43   :  { %v5476_v16 = vpop.eup %5475 }
 0xd44   :  { %v3365_v44 = vmul.f32 %v5476_v16, %v5460_v35 }
 0xd46   :  { %5204 = vmatmul.mubr.msk.f32.vlgmr.msra.gmra.mrb[34].mxu0 %vm516_vm3, %v3365_v44 }
 0xd47   :  { %v5478_v21 = vpop.eup %5477  ;;  %5212 = vmatpush3.msra.mxu0 %v2680_v11  ;;  %5213 = vmatprep.mubr.msk.f32.mxu0 %vm5548_vm2, %v5547_v33 }
 0xd48   :  { %v3366_v45 = vmul.f32 %v5478_v21, %v6169_v6  ;;  %5221 = vmatprep.subr.mxu0 %v5547_v33  ;;  %v2381_v6 = vld [vmem:[%s6334_s3 + $0x160] sm:$0xff]  ;;  %v2396_v21 = vld [vmem:[%s6335_s4 + $0x30] sm:$0xff] }
 0xd4a   :  { %5209 = vmatmul.mubr.msk.f32.vlgmr.msra.gmra.mrb[36].mxu1 %vm516_vm3, %v3366_v45 }
 0xd4b   :  { %5217 = vmatpush3.msra.mxu1 %v2682_v63  ;;  %5218 = vmatprep.mubr.msk.f32.mxu1 %vm5548_vm2, %v5547_v33  ;;  %v2397_v63 = vld [vmem:[%s6335_s4 + $0x38] sm:$0xff] }
 0xd4c   :  { %5226 = vmatprep.subr.mxu1 %v5547_v33 }
 0xd6d   :  { %v3345_v22 = vpop.xlane.xlu1 %3344 }
 0xd6e   :  { %5479 = vrcp.f32 %v3345_v22  ;;  %v2398_v22 = vld [vmem:[%s6335_s4 + $0x40] sm:$0xff] }
 0xd71   :  { %v3348_v23 = vpop.xlane.xlu0 %3347  ;;  %v3351_v25 = vpop.xlane.xlu1 %3350 }
 0xd72   :  { %5481 = vrcp.f32 %v3348_v23  ;;  %v5368_v23 = vpack.c.bf16 %v2398_v22, %v2397_v63  ;;  %v5552_v63 = vmov 0.0|0.0  }
 0xd73   :  { %5483 = vrcp.f32 %v3351_v25  ;;  %v2385_v25 = vld [vmem:[%s6334_s3 + $0x180] sm:$0xff] }
 0xd75   :  { %v3354_v26 = vpop.xlane.xlu0 %3353  ;;  %v2688_v43 = vpop.permute.xlu1 %2687 }
 0xd76   :  { %5485 = vrcp.f32 %v3354_v26  ;;  %v2386_v26 = vld [vmem:[%s6334_s3 + $0x188] sm:$0xff] }
 0xd78   :  { %v5480_v27 = vpop.eup %5479 }
 0xd79   :  { %v3367_v28 = vmul.f32 %v5480_v27, %v5466_v61  ;;  %v2686_v29 = vpop.permute.xlu0 %2685  ;;  %v4286_v61 = vrot.slane %v6081_v20, %v2111_v13  ;;  %v5372_v27 = vpack.c.bf16 %v2386_v26, %v2385_v25 }
 0xd7b   :  { %5214 = vmatmul.mubr.msk.f32.vlgmr.msra.gmra.mrb[36].mxu0 %vm516_vm3, %v3367_v28 }
 0xd7c   :  { %v5482_v30 = vpop.eup %5481  ;;  %5222 = vmatpush3.msra.mxu0 %v2686_v29  ;;  %5223 = vmatprep.mubr.msk.f32.mxu0 %vm5548_vm2, %v5547_v33 }
 0xd7d   :  { %v5484_v31 = vpop.eup %5483  ;;  %v3368_v34 = vmul.f32 %v5482_v30, %v5468_v0  ;;  %5231 = vmatprep.subr.mxu0 %v2382_v5 }
 0xd7e   :  { %v3369_v32 = vmul.f32 %v5484_v31, %v5470_v1 }
 0xd7f   :  { %5219 = vmatmul.mubr.msk.f32.vlgmr.msra.gmra.mrb[38].mxu1 %vm516_vm3, %v3368_v34 }
 0xd80   :  { %v5486_v24 = vpop.eup %5485  ;;  %5224 = vmatmul.mubr.msk.f32.vlgmr.msra.gmra.mrb[38].mxu0 %vm516_vm3, %v3369_v32  ;;  %5227 = vmatpush3.msra.mxu1 %v2688_v43  ;;  %v4320_v43 = vrot.slane %v6081_v20, %v2146_v51 }
 0xd81   :  { %v3370_v35 = vmul.f32 %v5486_v24, %v5474_v8  ;;  %5228 = vmatprep.mubr.msk.f32.mxu1 %vm5548_vm2, %v5547_v33  ;;  %5232 = vmatpush3.msra.mxu0 %v2382_v5  ;;  %v4326_v5 = vrot.slane %v6081_v20, %v2152_v52  ;;  %v2389_v52 = vld [vmem:[%s6334_s3 + $0x1a0] sm:$0xff] }
 0xd82   :  { %5236 = vmatprep.subr.mxu0 %v2381_v6 }
 0xd83   :  { %5229 = vmatmul.mubr.msk.f32.vlgmr.msra.gmra.mrb[40].mxu1 %vm516_vm3, %v3370_v35 }
 0xda5   :  { %v3513_v36 = vpop.f32.mrb[34].mxu1 }
 0xda6   :  { %v5200_v37 = vpop.f32.mrb[35].mxu1 }
 0xdb9   :  { %v3440_v38 = vpop.f32.mrb[32].mxu0 }
 0xdba   :  { %v5195_v39 = vpop.f32.mrb[33].mxu0 }
 0xdbb   :  { %v2387_v39 = vld [vmem:[%s6334_s3 + $0x190] sm:$0xff] }
 0xe19   :  { %v3586_v40 = vpop.f32.mrb[34].mxu0 }
 0xe1a   :  { %v5205_v46 = vpop.f32.mrb[35].mxu0  ;;  %5233 = vmatprep.mubr.msk.f32.mxu0 %vm516_vm3, %v3586_v40  ;;  %v2388_v40 = vld [vmem:[%s6334_s3 + $0x198] sm:$0xff] }
 0xe1d   :  { %v3659_v47 = vpop.f32.mrb[36].mxu1 }
 0xe1e   :  { %v5210_v49 = vpop.f32.mrb[37].mxu1  ;;  %5234 = vmatmul.mubr.msk.f32.vlgmr.msra.gmra.mrb[40].mxu0 %vm516_vm3, %v3659_v47  ;;  %v5376_v47 = vpack.c.bf16 %v2388_v40, %v2387_v39 }
 0xe1f   :  { %5238 = vmatprep.mubr.msk.f32.mxu0 %vm516_vm3, %v3440_v38  ;;  %5237 = vmatpush3.msra.mxu0 %v2381_v6 }
 0xe20   :  { %5241 = vmatprep.subr.mxu0 %v2383_v48 }
 0xe26   :  { %5239 = vmatmul.mubr.msk.f32.vlgmr.msra.gmra.mrb[40].mxu0 %vm516_vm3, %v3513_v36 }
 0xe27   :  { %5242 = vmatpush3.msra.mxu0 %v2383_v48  ;;  %v2390_v48 = vld [vmem:[%s6334_s3 + $0x1a8] sm:$0xff] }
 0xe28   :  { %5246 = vmatprep.subr.mxu0 %v2384_v50  ;;  %v5380_v49 = vpack.c.bf16 %v2390_v48, %v2389_v52 }
 0xe4e   :  { %v3732_v53 = vpop.f32.mrb[36].mxu0 }
 0xe4f   :  { %v5215_v54 = vpop.f32.mrb[37].mxu0  ;;  %5243 = vmatprep.mubr.msk.f32.mxu0 %vm516_vm3, %v3732_v53  ;;  %v2392_v53 = vld [vmem:[%s6334_s3 + $0x1b8] sm:$0xff] }
 0xe52   :  { %v3805_v55 = vpop.f32.mrb[38].mxu1 }
 0xe53   :  { %v3878_v56 = vpop.f32.mrb[38].mxu0  ;;  %v5220_v57 = vpop.f32.mrb[39].mxu1  ;;  %5244 = vmatmul.mubr.msk.f32.vlgmr.msra.gmra.mrb[40].mxu0 %vm516_vm3, %v3805_v55  ;;  %v4787_v55 = vld [vmem:[%s6335_s4 + $0x48] ss:$0 sm:$0xff] }
 0xe54   :  { %v5225_v58 = vpop.f32.mrb[39].mxu0  ;;  %5247 = vmatpush3.msra.mxu0 %v2384_v50  ;;  %5248 = vmatprep.mubr.msk.f32.mxu0 %vm516_vm3, %v3878_v56  ;;  %v2391_v50 = vld [vmem:[%s6334_s3 + $0x1b0] sm:$0xff] }
 0xe55   :  { %v5384_v54 = vpack.c.bf16 %v2392_v53, %v2391_v50  ;;  %5388 = vmatprep.subr.bf16.mxu0 %v5552_v63 }
 0xe56   :  { %v3951_v59 = vpop.f32.mrb[40].mxu1 }
 0xe57   :  { %v5230_v60 = vpop.f32.mrb[41].mxu1 }
 0xe5b   :  { %5249 = vmatmul.mubr.msk.f32.vlgmr.msra.gmra.mrb[40].mxu0 %vm516_vm3, %v3951_v59 }
 0xe5c   :  { %5289 = vmatprep.mubr.msk.f32.mxu0 %vm5548_vm2, %v5547_v33 }
 0xf2e   :  { %v5250_v62 = vpop.f32.mrb[40].mxu0 }
 0xf2f   :  { %v4288_v0 = vadd.f32 %v5250_v62, %v4286_v61  ;;  %v4272_v1 = vpop.f32.mrb[41].mxu0  ;;  %v4419_v62 = vrot.slane %v6081_v20, %v2245_v19 }
 0xf30   :  { %v4287_v3 = vadd.f32 %v4286_v61, %v4272_v1 }
 0xf31   :  { %v4290_v4 = vadd.f32 %v4288_v0, %v6059_v18 }
 0xf32   :  { %v4289_v7 = vadd.f32 %v4287_v3, %v6057_v17  ;;  %v2395_v17 = vld [vmem:[%s6335_s4 + $0x28] sm:$0xff] }
 0xf33   :  { %v4294_v8 = vsel %vm228_vm1, %v4290_v4, 0.0  ;;  %v5364_v45 = vpack.c.bf16 %v2396_v21, %v2395_v17  ;;  %v4541_v17 = vld [vmem:[%s6334_s3 + $0x8] sm:$0xff]  ;;  %v4542_v21 = vld [vmem:[%s6334_s3 + $0x10] sm:$0xff] }
 0xf34   :  { %4295 = vadd.xlane.f32.xlu1 %v4294_v8  ;;  %v4291_v9 = vsel %vm228_vm1, %v4289_v7, 0.0  ;;  %v5389_v22 = vpack.c.bf16 %v4542_v21, %v4541_v17 }
 0xf35   :  { %4292 = vadd.xlane.f32.xlu0 %v4291_v9  ;;  %5365 = vmatprep.subr.bf16.mxu1 %v5364_v45 }
 0xf36   :  { %5367 = vmatpush3.bf16.msra.mxu1 %v5364_v45  ;;  %v4543_v45 = vld [vmem:[%s6334_s3 + $0x18] sm:$0xff]  ;;  %5390 = vmatpush3.bf16.msra.mxu0 %v5389_v22 }
 0xf37   :  { %5369 = vmatprep.subr.bf16.mxu1 %v5368_v23  ;;  %5391 = vmatprep.subr.bf16.mxu0 %v5552_v63 }
 0xf3a   :  { %5371 = vmatpush3.bf16.msra.mxu1 %v5368_v23  ;;  %v4544_v23 = vld [vmem:[%s6334_s3 + $0x20] sm:$0xff] }
 0xf3b   :  { %5373 = vmatprep.subr.bf16.mxu1 %v5372_v27  ;;  %v5392_v25 = vpack.c.bf16 %v4544_v23, %v4543_v45 }
 0xf3d   :  { %5393 = vmatpush3.bf16.msra.mxu0 %v5392_v25 }
 0xfc1   :  { %v4296_v10 = vpop.xlane.xlu1 %4295 }
 0xfc2   :  { %v4298_v33 = vmul.f32 0.03125, %v4296_v10  ;;  %v4293_v11 = vpop.xlane.xlu0 %4292 }
 0xfc3   :  { %v4297_v12 = vmul.f32 0.03125, %v4293_v11 }
 0xfc4   :  { %v4300_v14 = vsub.f32 %v4290_v4, %v4298_v33 }
 0xfc5   :  { %v4299_v13 = vsub.f32 %v4289_v7, %v4297_v12 }
 0xfc6   :  { %v4302_v44 = vmul.f32 %v4300_v14, %v4300_v14 }
 0xfc7   :  { %v4301_v15 = vmul.f32 %v4299_v13, %v4299_v13 }
 0xfc8   :  { %v4306_v18 = vsel %vm228_vm1, %v4302_v44, 0.0 }
 0xfc9   :  { %v4303_v16 = vsel %vm228_vm1, %v4301_v15, 0.0 }
 0xfca   :  { %4304 = vadd.xlane.f32.xlu0 %v4303_v16 }
 0xfce   :  { %4307 = vadd.xlane.f32.xlu0 %v4306_v18 }
0x1057   :  { %v4305_v28 = vpop.xlane.xlu0 %4304 }
0x1058   :  { %v4309_v29 = vmul.f32 0.03125, %v4305_v28 }
0x105a   :  { %v4311_v30 = vadd.f32 1e-05, %v4309_v29 }
0x105b   :  { %v4308_v31 = vpop.xlane.xlu0 %4307 }
0x105c   :  { %5487 = vrsqrt.f32 %v4311_v30  ;;  %v4310_v34 = vmul.f32 0.03125, %v4308_v31 }
0x105e   :  { %v4312_v32 = vadd.f32 1e-05, %v4310_v34  ;;  %v2394_v34 = vld [vmem:[%s6334_s3 + $0x1c8] sm:$0xff] }
0x1060   :  { %5489 = vrsqrt.f32 %v4312_v32  ;;  %v4532_v32 = vrot.slane %v6081_v20, %v2359_v2 }
0x1066   :  { %v5488_v24 = vpop.eup %5487 }
0x1067   :  { %v4315_v35 = vmul.f32 %v5488_v24, %v4299_v13 }
0x1069   :  { %v4321_v6 = vmul.f32 %v4320_v43, %v4315_v35 }
0x106a   :  { %v5490_v36 = vpop.eup %5489 }
0x106b   :  { %v4316_v37 = vmul.f32 %v5490_v36, %v4300_v14  ;;  %v4327_v38 = vadd.f32 %v4326_v5, %v4321_v6 }
0x106d   :  { %v4322_v46 = vmul.f32 %v4320_v43, %v4316_v37  ;;  %5259 = vmatprep.mubr.msk.f32.mxu1 %vm228_vm1, %v4327_v38 }
0x106f   :  { %v4328_v51 = vadd.f32 %v4326_v5, %v4322_v46  ;;  %v4538_v5 = vrot.slane %v2394_v34, %v5790_v42 }
0x1071   :  { %5260 = vmatmul.mubr.msk.f32.vlgmr.msra.gmra.mrb[42].mxu1 %vm228_vm1, %v4328_v51 }
0x1072   :  { %5375 = vmatpush3.bf16.msra.mxu1 %v5372_v27 }
0x1073   :  { %5377 = vmatprep.subr.bf16.mxu1 %v5376_v47 }
0x1076   :  { %5379 = vmatpush3.bf16.msra.mxu1 %v5376_v47 }
0x1077   :  { %5381 = vmatprep.subr.bf16.mxu1 %v5380_v49 }
0x107a   :  { %5383 = vmatpush3.bf16.msra.mxu1 %v5380_v49 }
0x107b   :  { %5385 = vmatprep.subr.bf16.mxu1 %v5384_v54 }
0x107e   :  { %5387 = vmatpush3.bf16.msra.mxu1 %v5384_v54 }
0x1144   :  { %v5261_v56 = vpop.f32.mrb[42].mxu1 }
0x1145   :  { %v4411_v57 = vadd.f32 %v5261_v56, %v4787_v55  ;;  %v4405_v58 = vpop.f32.mrb[43].mxu1 }
0x1146   :  { %v4406_v59 = vadd.f32 %v4787_v55, %v4405_v58 }
0x1147   :  { %v4415_v61 = vmax.f32 %v4411_v57, 0.0 }
0x1148   :  { %v4414_v60 = vmax.f32 %v4406_v59, 0.0 }
0x114a   :  { %5278 = vmatprep.mubr.msk.f32.mxu1 %vm2247_vm4, %v4414_v60 }
0x114b   :  { %5279 = vmatmul.mubr.msk.f32.vlgmr.msra.gmra.mrb[44].mxu1 %vm2247_vm4, %v4415_v61 }
0x121e   :  { %v5280_v0 = vpop.f32.mrb[44].mxu1 }
0x121f   :  { %v4498_v1 = vadd.f32 %v5280_v0, %v4419_v62  ;;  %v4492_v3 = vpop.f32.mrb[45].mxu1 }
0x1220   :  { %v4493_v4 = vadd.f32 %v4492_v3, %v4419_v62 }
0x1221   :  { %v4502_v7 = vadd.f32 %v4498_v1, %v4328_v51 }
0x1222   :  { %v4501_v8 = vadd.f32 %v4493_v4, %v4327_v38 }
0x1223   :  { %v4506_v9 = vsel %vm228_vm1, %v4502_v7, 0.0 }
0x1224   :  { %4507 = vadd.xlane.f32.xlu0 %v4506_v9  ;;  %v4503_v10 = vsel %vm228_vm1, %v4501_v8, 0.0 }
0x1225   :  { %4504 = vadd.xlane.f32.xlu1 %v4503_v10 }
0x12b1   :  { %v4508_v33 = vpop.xlane.xlu0 %4507 }
0x12b2   :  { %v4510_v11 = vmul.f32 0.03125, %v4508_v33  ;;  %v4505_v12 = vpop.xlane.xlu1 %4504 }
0x12b3   :  { %v4509_v14 = vmul.f32 0.03125, %v4505_v12 }
0x12b4   :  { %v4512_v13 = vsub.f32 %v4502_v7, %v4510_v11 }
0x12b5   :  { %v4511_v15 = vsub.f32 %v4501_v8, %v4509_v14 }
0x12b6   :  { %v4514_v16 = vmul.f32 %v4512_v13, %v4512_v13 }
0x12b7   :  { %v4513_v19 = vmul.f32 %v4511_v15, %v4511_v15 }
0x12b8   :  { %v4518_v44 = vsel %vm228_vm1, %v4514_v16, 0.0 }
0x12b9   :  { %4519 = vadd.xlane.f32.xlu0 %v4518_v44  ;;  %v4515_v18 = vsel %vm228_vm1, %v4513_v19, 0.0 }
0x12ba   :  { %4516 = vadd.xlane.f32.xlu1 %v4515_v18 }
0x1346   :  { %v4520_v26 = vpop.xlane.xlu0 %4519 }
0x1347   :  { %v4522_v27 = vmul.f32 0.03125, %v4520_v26  ;;  %v4517_v28 = vpop.xlane.xlu1 %4516 }
0x1348   :  { %v4521_v29 = vmul.f32 0.03125, %v4517_v28 }
0x1349   :  { %v4524_v30 = vadd.f32 1e-05, %v4522_v27 }
0x134a   :  { %v4523_v31 = vadd.f32 1e-05, %v4521_v29 }
0x134b   :  { %5491 = vrsqrt.f32 %v4524_v30 }
0x134c   :  { %5493 = vrsqrt.f32 %v4523_v31 }
0x1355   :  { %v5492_v43 = vpop.eup %5491 }
0x1356   :  { %v5494_v24 = vpop.eup %5493  ;;  %v4528_v35 = vmul.f32 %v5492_v43, %v4512_v13 }
0x1357   :  { %v4527_v6 = vmul.f32 %v5494_v24, %v4511_v15 }
0x1358   :  { %v4534_v36 = vmul.f32 %v4532_v32, %v4528_v35 }
0x1359   :  { %v4533_v37 = vmul.f32 %v4532_v32, %v4527_v6 }
0x135a   :  { %v4540_v38 = vadd.f32 %v4538_v5, %v4534_v36 }
0x135b   :  { %v4539_v39 = vadd.f32 %v4538_v5, %v4533_v37 }
0x135c   :  { %v4553_v40 = vrot.slane %v4540_v38, 6 }
0x135d   :  { %v4552_v46 = vrot.slane %v4539_v39, 7 }
0x135f   :  { %v4555_v51 = vsel %vm4554_vm5, %v4553_v40, %v4552_v46 }
0x1360   :  { %5290 = vmatmul.mubr.msk.f32.vlgmr.msra.gmra.mrb[42].mxu0 %vm228_vm1, %v4555_v51 }
0x1433   :  { %v4624_v2 = vpop.f32.mrb[42].mxu0 }
0x1434   :  { %v4625_v42 = vadd.f32 %v4792_v41, %v4624_v2  ;;  %v5291_v20 = vpop.f32.mrb[43].mxu0 }
0x1436   :  { %4629 = vst.msk [vmem:[#allocation6] sm:$0x3] %vm4628_vm6, %v4625_v42 }
0x1437   :  { %5530 = shalt.err (!%p5527_p4)
}
0x1438   :  { %s5531_s13 = scalar_lea.hbm %s6336_s5, 32 }
0x1439   :  { %p5532_p5 = scmp.ne.s32.totalorder %s6336_s5, %s5531_s13  ;;  %p5535_p6 = scmp.lt.u32.totalorder %s5531_s13, %s6336_s5 }
0x143b   :  { %p5537_p7 = pnand %p5535_p6, %p5532_p5 }
0x143d   :  { %5540 = shalt.err (!%p5537_p7)
}
0x143e   :  { %4639 = dma.vmem_to_hbm [thread:$0]  %s4637_s12, 32, %s6336_s5, [#allocation7]  }
0x143f   :  { %5543 = dma.done.wait [#allocation7], 32  }
0x1440   :  { %5544 = vsyncadd [#allocation7], 4294967264 }
0x1441   :  { %4643 = vsyncpa [#allocation7], 1 }

</bundles_post_ra>
